<compile_context>
chip_gen: v7x
topology: tpu7x:2x2x1
jax: 0.10.0
libtpu: 0.0.40
codegen_flags: <defaults>
</compile_context>

<pallas_src>
import functools
from itertools import combinations

import jax
import jax.numpy as jnp
from jax import lax
from jax.experimental import pallas as pl
from jax.experimental.pallas import tpu as pltpu


def _leaky_relu(x, slope=0.2):
    return jnp.where(x > 0, x, slope * x)


# ---------------------------------------------------------------------------
# Kernel 1 (fused table builder):
#   in : anchor coords (1, 3A, T) f32, rows = [x_0..x_{A-1}, y_0.., z_0..]
#   out: packed bf16 table (1, Ct_pad, T):
#        rows [0, npairs)        intra-anchor distances
#        rows [npairs, C_if)     mlp_intra_dist output (leaky_relu(0.2))
#        rows [C_if, C_if+3A)    anchor coordinates
#        rows [C_if+3A, Ct_pad)  zero padding
# ---------------------------------------------------------------------------
def _table_kernel(c_ref, w1t_ref, b1_ref, tbl_ref, *, anchor_points, ct_pad):
    A = anchor_points
    c = c_ref[0]                                          # (3A, T) f32
    T = c.shape[1]

    rows = []
    for p, q in combinations(range(A), 2):                # (0,1),(0,2),...,(A-2,A-1)
        dx = c[p:p + 1, :] - c[q:q + 1, :]
        dy = c[A + p:A + p + 1, :] - c[A + q:A + q + 1, :]
        dz = c[2 * A + p:2 * A + p + 1, :] - c[2 * A + q:2 * A + q + 1, :]
        rows.append(jnp.sqrt(dx * dx + dy * dy + dz * dz))
    d = jnp.concatenate(rows, axis=0)                     # (npairs, T) f32

    # mlp_intra_dist: tiny matmul, keep f32 (values are also stored raw in the table).
    y1 = jnp.dot(w1t_ref[...], d, preferred_element_type=jnp.float32) + b1_ref[...]
    y1 = _leaky_relu(y1)                                  # (E1, T)

    pad = ct_pad - (d.shape[0] + y1.shape[0] + c.shape[0])
    parts = [d, y1, c]
    if pad:
        parts.append(jnp.zeros((pad, T), jnp.float32))
    tbl_ref[0] = jnp.concatenate(parts, axis=0).astype(tbl_ref.dtype)


# ---------------------------------------------------------------------------
# Kernel 2: in-kernel bf16 one-hot neighbor gather (N-chunked, MXU) + center
#   lane-expansion matmul + inter-anchor dists + mlp_relative_fea, all in a
#   channels-on-sublanes layout so MXU outputs and stores are lane dense.
# ---------------------------------------------------------------------------
def _relative_kernel(idx_ref, tbl_ref, ctr_ref, w2t_ref, b2_ref, o_ref, *,
                     anchor_points, intra_chnls, n_chunk):
    A, C_if = anchor_points, intra_chnls
    N = tbl_ref.shape[2]
    T = ctr_ref.shape[2]
    TM = idx_ref.shape[2]
    M = TM // T

    ids = idx_ref[0]                                      # (1, TM) int32, lane dense

    # ---- neighbor gather: g[:, j] = table[:, ids[j]] via bf16 one-hot matmuls -----
    g = None
    for s in range(0, N, n_chunk):
        e = min(s + n_chunk, N)
        sub = lax.broadcasted_iota(jnp.int32, (e - s, TM), 0) + s
        onehot = (sub == ids).astype(jnp.bfloat16)        # (Nc, TM), exact 0/1
        part = jnp.dot(tbl_ref[0, :, s:e], onehot,
                       preferred_element_type=jnp.float32)  # (Ct_pad, TM) f32
        g = part if g is None else g + part

    # ---- center broadcast: column t*M+m <- center t, via a tiny 0/1 matmul --------
    jj = lax.broadcasted_iota(jnp.int32, (T, TM), 1)
    tt = lax.broadcasted_iota(jnp.int32, (T, TM), 0) * M
    expand = ((jj >= tt) & (jj < tt + M)).astype(jnp.bfloat16)           # (T, TM)
    cexp = jnp.dot(ctr_ref[0], expand, preferred_element_type=jnp.float32)  # (Ct_pad, TM)

    # ---- inter-anchor dists: row p*A+q = || center anchor p - neighbor anchor q || -
    nx = g[C_if:C_if + A]
    ny = g[C_if + A:C_if + 2 * A]
    nz = g[C_if + 2 * A:C_if + 3 * A]
    cx = cexp[C_if:C_if + A]
    cy = cexp[C_if + A:C_if + 2 * A]
    cz = cexp[C_if + 2 * A:C_if + 3 * A]
    blocks = []
    for p in range(A):
        dx = cx[p:p + 1, :] - nx                          # (A, TM), row = q
        dy = cy[p:p + 1, :] - ny
        dz = cz[p:p + 1, :] - nz
        blocks.append(jnp.sqrt(dx * dx + dy * dy + dz * dz))
    inter = jnp.concatenate(blocks, axis=0)               # (A*A, TM)

    # ---- mlp_relative_fea (bf16 operands, f32 accum) with 'concat' skip -----------
    h = jnp.concatenate([cexp[:C_if], g[:C_if], inter], axis=0)   # (2*C_if+A*A, TM)
    y = jnp.dot(w2t_ref[...], h.astype(jnp.bfloat16),
                preferred_element_type=jnp.float32) + b2_ref[...]
    y = _leaky_relu(y)
    o_ref[0] = jnp.concatenate([h, y], axis=0).astype(o_ref.dtype)


# ---------------------------------------------------------------------------
# Wrapper
# ---------------------------------------------------------------------------
def _knn(xyz, k):
    """k nearest neighbors by Euclidean distance (self included, nearest first)."""
    # TODO(synk): O(N^2) XLA k-NN dominates end-to-end for very large N; would need its own kernel.
    d2 = jnp.sum((xyz[:, :, None, :] - xyz[:, None, :, :]) ** 2, axis=-1)
    _, idx = lax.top_k(-d2, k)
    nd = jnp.sqrt(jnp.maximum(jnp.take_along_axis(d2, idx, axis=2), 0.0))
    return idx.astype(jnp.int32), nd


def deep_rot_inv_dist_fea_forward(xyz, params, *, neighbor_num, anchor_points,
                                  tile_n=128, table_chunk=512):
    """xyz: (B, N, 3) f32. Returns (relative_feature (B,N,M,C_out), neighbors_idx (B,N,M))."""
    w1, b1, w2, b2 = params
    B, N, _ = xyz.shape
    M, A = neighbor_num, anchor_points
    npairs = A * (A - 1) // 2
    E1 = w1.shape[1]
    C_if = npairs + E1
    C_in2 = 2 * C_if + A * A
    E2 = w2.shape[1]
    C_out = C_in2 + E2
    Ct = C_if + 3 * A
    Ct_pad = ((Ct + 7) // 8) * 8
    assert w1.shape[0] == npairs and w2.shape[0] == C_in2

    # ---- plain-JAX glue: k-NN + anchor-coordinate gather (irregular) ----------------
    nb_idx, _ = _knn(xyz, M)                              # (B, N, M)
    anchor_idx = nb_idx[..., :A]
    bidx = jnp.arange(B)[:, None, None]
    a_xyz = xyz[bidx, anchor_idx]                         # (B, N, A, 3)
    coords = jnp.transpose(a_xyz, (0, 3, 2, 1)).reshape(B, 3 * A, N)   # (B, 3A, N)

    # ---- stage 1: fused intra dists + mlp_intra_dist -> packed bf16 table -----------
    tile_n1 = N if N <= 512 else 512
    tbl = pl.pallas_call(
        functools.partial(_table_kernel, anchor_points=A, ct_pad=Ct_pad),
        out_shape=jax.ShapeDtypeStruct((B, Ct_pad, N), jnp.bfloat16),
        grid=(B, pl.cdiv(N, tile_n1)),
        in_specs=[
            pl.BlockSpec((1, 3 * A, tile_n1), lambda b, i: (b, 0, i)),
            pl.BlockSpec((E1, npairs), lambda b, i: (0, 0)),
            pl.BlockSpec((E1, 1), lambda b, i: (0, 0)),
        ],
        out_specs=pl.BlockSpec((1, Ct_pad, tile_n1), lambda b, i: (b, 0, i)),
        compiler_params=pltpu.CompilerParams(
            dimension_semantics=("parallel", "parallel")),
    )(coords, w1.T, b1.reshape(E1, 1))

    # ---- stage 2: gather + inter-anchor dists + mlp_relative_fea --------------------
    idx_in = nb_idx.reshape(B, 1, N * M)                  # lane-dense indices
    w2t = w2.T.astype(jnp.bfloat16)                       # (E2, C_in2)
    b2c = b2.reshape(E2, 1)

    tile_n2 = min(tile_n, N)
    if tile_n2 != N and (tile_n2 * M) % 128 != 0:
        tile_n2 = N                                       # keep blocks lane-aligned
    n_tiles = pl.cdiv(N, tile_n2)
    n_chunk = min(table_chunk, N)

    rel_t = pl.pallas_call(
        functools.partial(_relative_kernel, anchor_points=A, intra_chnls=C_if,
                          n_chunk=n_chunk),
        out_shape=jax.ShapeDtypeStruct((B, C_out, N * M), jnp.float32),
        grid=(B, n_tiles),
        in_specs=[
            pl.BlockSpec((1, 1, tile_n2 * M), lambda b, i: (b, 0, i)),
            # Full per-batch bf16 table stays in VMEM; its block index is constant over
            # the inner axis so the pipeline only re-fetches it once per batch.
            # TODO(synk): for very large N, single-buffer it (pl.ANY + one manual DMA per
            # batch / pl.Buffered(1)) or switch to a scalar-prefetch gather.
            pl.BlockSpec((1, Ct_pad, N), lambda b, i: (b, 0, 0)),
            pl.BlockSpec((1, Ct_pad, tile_n2), lambda b, i: (b, 0, i)),
            pl.BlockSpec((E2, C_in2), lambda b, i: (0, 0)),
            pl.BlockSpec((E2, 1), lambda b, i: (0, 0)),
        ],
        out_specs=pl.BlockSpec((1, C_out, tile_n2 * M), lambda b, i: (b, 0, i)),
        compiler_params=pltpu.CompilerParams(
            dimension_semantics=("parallel", "parallel"),
            vmem_limit_bytes=48 * 1024 * 1024),
    )(idx_in, tbl, tbl, w2t, b2c)

    rel = jnp.transpose(rel_t, (0, 2, 1)).reshape(B, N, M, C_out)
    return rel, nb_idx


# ---------------------------------------------------------------------------
# Parameters (BN eval-mode folded into the linear layers)
# ---------------------------------------------------------------------------
def make_params(key, anchor_points, extra_intra_chnls, extra_relative_chnls):
    A = anchor_points
    npairs = A * (A - 1) // 2
    C_in2 = 2 * (npairs + extra_intra_chnls) + A * A
    eps = 1e-5
    keys = jax.random.split(key, 6)

    def lin(k, i, o):
        return 0.05 * jax.random.normal(k, (i, o), jnp.float32)

    def bias(k, o):
        return 0.05 * jax.random.normal(k, (o,), jnp.float32)

    def bn(k, o):
        k1, k2, k3, k4 = jax.random.split(k, 4)
        gamma = 1.0 + 0.1 * jax.random.normal(k1, (o,), jnp.float32)
        beta = 0.1 * jax.random.normal(k2, (o,), jnp.float32)
        mean = 0.1 * jax.random.normal(k3, (o,), jnp.float32)
        var = 1.0 + 0.1 * jnp.abs(jax.random.normal(k4, (o,), jnp.float32))
        return gamma, beta, mean, var

    def fold(W, b, bn_p):
        gamma, beta, mean, var = bn_p
        s = gamma / jnp.sqrt(var + eps)
        # Round weights through bf16 so kernel (bf16 operands) and reference use identical W.
        Wf = (W * s[None, :]).astype(jnp.bfloat16).astype(jnp.float32)
        bf = (b - mean) * s + beta
        return Wf, bf

    w1, b1 = fold(lin(keys[0], npairs, extra_intra_chnls),
                  bias(keys[1], extra_intra_chnls), bn(keys[2], extra_intra_chnls))
    w2, b2 = fold(lin(keys[3], C_in2, extra_relative_chnls),
                  bias(keys[4], extra_relative_chnls), bn(keys[5], extra_relative_chnls))
    return (w1, b1[None, :], w2, b2[None, :])


# ---------------------------------------------------------------------------
# Pure-JAX reference mirroring the PyTorch forward
# ---------------------------------------------------------------------------
def deep_rot_inv_dist_fea_reference(xyz, params, neighbor_num, anchor_points):
    w1, b1, w2, b2 = params
    B, N, _ = xyz.shape
    M, A = neighbor_num, anchor_points

    d2 = jnp.sum((xyz[:, :, None, :] - xyz[:, None, :, :]) ** 2, axis=-1)
    dists = jnp.sqrt(jnp.maximum(d2, 0.0))                    # torch.cdist
    nb_idx, nd = _knn(xyz, M)
    anchor_idx = nb_idx[..., :A]
    b2d = jnp.arange(B)[:, None]
    b3d = jnp.arange(B)[:, None, None]
    b5d = jnp.arange(B)[:, None, None, None, None]

    # gen_intra_anchor_dists
    cols = [nd[..., 1:A]]
    for pi, pj in combinations(range(1, A), 2):
        cols.append(dists[b2d, anchor_idx[..., pi], anchor_idx[..., pj]][..., None])
    intra = jnp.concatenate(cols, axis=-1)                    # (B, N, A*(A-1)/2)

    # mlp_intra_dist (concat skip)
    intra_fea = jnp.concatenate([intra, _leaky_relu(intra @ w1 + b1)], axis=-1)

    # gen_inter_anchor_dists
    nbr_anchor_idx = anchor_idx[b3d, nb_idx]                  # (B, N, M, A)
    ai = anchor_idx[:, :, None, :, None]
    aj = nbr_anchor_idx[:, :, :, None, :]
    inter = dists[b5d, ai, aj].reshape(B, N, M, A * A)

    # relative feature + mlp_relative_fea (concat skip)
    nbr_fea = intra_fea[b3d, nb_idx]                          # (B, N, M, C_if)
    ctr_fea = jnp.broadcast_to(intra_fea[:, :, None, :], nbr_fea.shape)
    h = jnp.concatenate([ctr_fea, nbr_fea, inter], axis=-1)
    rel = jnp.concatenate([h, _leaky_relu(h @ w2 + b2)], axis=-1)
    return rel, nb_idx


if __name__ == "__main__":
    B, N = 2, 256                            # batch, points
    neighbor_num, anchor_points = 8, 4       # M, A
    extra_intra, extra_rel = 10, 16
    # channels: intra dists 6 -> intra fea 16 ; relative in 2*16 + 16 = 48 -> out 48+16 = 64

    key = jax.random.PRNGKey(0)
    kx, kp = jax.random.split(key)
    xyz = jax.random.normal(kx, (B, N, 3), jnp.float32)
    params = make_params(kp, anchor_points, extra_intra, extra_rel)

    fwd = jax.jit(functools.partial(
        deep_rot_inv_dist_fea_forward,
        neighbor_num=neighbor_num, anchor_points=anchor_points,
        tile_n=128, table_chunk=512))
    rel, nb_idx = fwd(xyz, params)
    jax.block_until_ready(rel)

    rel_ref, nb_idx_ref = deep_rot_inv_dist_fea_reference(
        xyz, params, neighbor_num, anchor_points)

    assert rel.shape == (B, N, neighbor_num, 64), rel.shape
    assert jnp.array_equal(nb_idx, nb_idx_ref)
    max_err = float(jnp.max(jnp.abs(rel - rel_ref)))
    # bf16 gather table / matmul operands (f32 accumulation) loosen tolerance vs pure-f32 ref.
    assert jnp.allclose(rel, rel_ref, atol=6e-2, rtol=6e-2), max_err
    print("KERNEL_OK")
</pallas_src>

<mosaic_0001>
module attributes {stable_mosaic.version = 11 : i64} {
  func.func @_table_kernel(%arg0: i32, %arg1: i32, %arg2: memref<1x12x256xf32, #tpu.memory_space<vmem>>, %arg3: memref<10x6xf32, #tpu.memory_space<vmem>>, %arg4: memref<10x1xf32, #tpu.memory_space<vmem>>, %arg5: memref<1x32x256xbf16, #tpu.memory_space<vmem>>) attributes {dimension_semantics = [#tpu.dimension_semantics<parallel>, #tpu.dimension_semantics<parallel>], iteration_bounds = array<i64: 2, 1>, scalar_prefetch = 0 : i64, scratch_operands = 0 : i64, tpu.core_type = #tpu.core_type<tc>, window_params = [{transform_indices = @transform_0, window_bounds = array<i64: 1, 12, 256>}, {pipeline_mode = #tpu.pipeline_mode<synchronous>, transform_indices = @transform_1, window_bounds = array<i64: 10, 6>}, {pipeline_mode = #tpu.pipeline_mode<synchronous>, transform_indices = @transform_2, window_bounds = array<i64: 10, 1>}, {transform_indices = @transform_3, window_bounds = array<i64: 1, 32, 256>}]} {
    %c0 = arith.constant 0 : index
    %c0_0 = arith.constant 0 : index
    %c0_1 = arith.constant 0 : index
    %0 = vector.load %arg2[%c0, %c0_0, %c0_1] : memref<1x12x256xf32, #tpu.memory_space<vmem>>, vector<1x12x256xf32>
    %1 = vector.shape_cast %0 : vector<1x12x256xf32> to vector<12x256xf32>
    %2 = vector.extract_strided_slice %1 {offsets = [0, 0], sizes = [1, 256], strides = [1, 1]} : vector<12x256xf32> to vector<1x256xf32>
    %3 = vector.extract_strided_slice %1 {offsets = [1, 0], sizes = [1, 256], strides = [1, 1]} : vector<12x256xf32> to vector<1x256xf32>
    %4 = arith.subf %2, %3 : vector<1x256xf32>
    %5 = vector.extract_strided_slice %1 {offsets = [4, 0], sizes = [1, 256], strides = [1, 1]} : vector<12x256xf32> to vector<1x256xf32>
    %6 = vector.extract_strided_slice %1 {offsets = [5, 0], sizes = [1, 256], strides = [1, 1]} : vector<12x256xf32> to vector<1x256xf32>
    %7 = arith.subf %5, %6 : vector<1x256xf32>
    %8 = vector.extract_strided_slice %1 {offsets = [8, 0], sizes = [1, 256], strides = [1, 1]} : vector<12x256xf32> to vector<1x256xf32>
    %9 = vector.extract_strided_slice %1 {offsets = [9, 0], sizes = [1, 256], strides = [1, 1]} : vector<12x256xf32> to vector<1x256xf32>
    %10 = arith.subf %8, %9 : vector<1x256xf32>
    %11 = arith.mulf %4, %4 : vector<1x256xf32>
    %12 = arith.mulf %7, %7 : vector<1x256xf32>
    %13 = arith.addf %11, %12 : vector<1x256xf32>
    %14 = arith.mulf %10, %10 : vector<1x256xf32>
    %15 = arith.addf %13, %14 : vector<1x256xf32>
    %16 = math.sqrt %15 : vector<1x256xf32>
    %17 = vector.extract_strided_slice %1 {offsets = [0, 0], sizes = [1, 256], strides = [1, 1]} : vector<12x256xf32> to vector<1x256xf32>
    %18 = vector.extract_strided_slice %1 {offsets = [2, 0], sizes = [1, 256], strides = [1, 1]} : vector<12x256xf32> to vector<1x256xf32>
    %19 = arith.subf %17, %18 : vector<1x256xf32>
    %20 = vector.extract_strided_slice %1 {offsets = [4, 0], sizes = [1, 256], strides = [1, 1]} : vector<12x256xf32> to vector<1x256xf32>
    %21 = vector.extract_strided_slice %1 {offsets = [6, 0], sizes = [1, 256], strides = [1, 1]} : vector<12x256xf32> to vector<1x256xf32>
    %22 = arith.subf %20, %21 : vector<1x256xf32>
    %23 = vector.extract_strided_slice %1 {offsets = [8, 0], sizes = [1, 256], strides = [1, 1]} : vector<12x256xf32> to vector<1x256xf32>
    %24 = vector.extract_strided_slice %1 {offsets = [10, 0], sizes = [1, 256], strides = [1, 1]} : vector<12x256xf32> to vector<1x256xf32>
    %25 = arith.subf %23, %24 : vector<1x256xf32>
    %26 = arith.mulf %19, %19 : vector<1x256xf32>
    %27 = arith.mulf %22, %22 : vector<1x256xf32>
    %28 = arith.addf %26, %27 : vector<1x256xf32>
    %29 = arith.mulf %25, %25 : vector<1x256xf32>
    %30 = arith.addf %28, %29 : vector<1x256xf32>
    %31 = math.sqrt %30 : vector<1x256xf32>
    %32 = vector.extract_strided_slice %1 {offsets = [0, 0], sizes = [1, 256], strides = [1, 1]} : vector<12x256xf32> to vector<1x256xf32>
    %33 = vector.extract_strided_slice %1 {offsets = [3, 0], sizes = [1, 256], strides = [1, 1]} : vector<12x256xf32> to vector<1x256xf32>
    %34 = arith.subf %32, %33 : vector<1x256xf32>
    %35 = vector.extract_strided_slice %1 {offsets = [4, 0], sizes = [1, 256], strides = [1, 1]} : vector<12x256xf32> to vector<1x256xf32>
    %36 = vector.extract_strided_slice %1 {offsets = [7, 0], sizes = [1, 256], strides = [1, 1]} : vector<12x256xf32> to vector<1x256xf32>
    %37 = arith.subf %35, %36 : vector<1x256xf32>
    %38 = vector.extract_strided_slice %1 {offsets = [8, 0], sizes = [1, 256], strides = [1, 1]} : vector<12x256xf32> to vector<1x256xf32>
    %39 = vector.extract_strided_slice %1 {offsets = [11, 0], sizes = [1, 256], strides = [1, 1]} : vector<12x256xf32> to vector<1x256xf32>
    %40 = arith.subf %38, %39 : vector<1x256xf32>
    %41 = arith.mulf %34, %34 : vector<1x256xf32>
    %42 = arith.mulf %37, %37 : vector<1x256xf32>
    %43 = arith.addf %41, %42 : vector<1x256xf32>
    %44 = arith.mulf %40, %40 : vector<1x256xf32>
    %45 = arith.addf %43, %44 : vector<1x256xf32>
    %46 = math.sqrt %45 : vector<1x256xf32>
    %47 = vector.extract_strided_slice %1 {offsets = [1, 0], sizes = [1, 256], strides = [1, 1]} : vector<12x256xf32> to vector<1x256xf32>
    %48 = vector.extract_strided_slice %1 {offsets = [2, 0], sizes = [1, 256], strides = [1, 1]} : vector<12x256xf32> to vector<1x256xf32>
    %49 = arith.subf %47, %48 : vector<1x256xf32>
    %50 = vector.extract_strided_slice %1 {offsets = [5, 0], sizes = [1, 256], strides = [1, 1]} : vector<12x256xf32> to vector<1x256xf32>
    %51 = vector.extract_strided_slice %1 {offsets = [6, 0], sizes = [1, 256], strides = [1, 1]} : vector<12x256xf32> to vector<1x256xf32>
    %52 = arith.subf %50, %51 : vector<1x256xf32>
    %53 = vector.extract_strided_slice %1 {offsets = [9, 0], sizes = [1, 256], strides = [1, 1]} : vector<12x256xf32> to vector<1x256xf32>
    %54 = vector.extract_strided_slice %1 {offsets = [10, 0], sizes = [1, 256], strides = [1, 1]} : vector<12x256xf32> to vector<1x256xf32>
    %55 = arith.subf %53, %54 : vector<1x256xf32>
    %56 = arith.mulf %49, %49 : vector<1x256xf32>
    %57 = arith.mulf %52, %52 : vector<1x256xf32>
    %58 = arith.addf %56, %57 : vector<1x256xf32>
    %59 = arith.mulf %55, %55 : vector<1x256xf32>
    %60 = arith.addf %58, %59 : vector<1x256xf32>
    %61 = math.sqrt %60 : vector<1x256xf32>
    %62 = vector.extract_strided_slice %1 {offsets = [1, 0], sizes = [1, 256], strides = [1, 1]} : vector<12x256xf32> to vector<1x256xf32>
    %63 = vector.extract_strided_slice %1 {offsets = [3, 0], sizes = [1, 256], strides = [1, 1]} : vector<12x256xf32> to vector<1x256xf32>
    %64 = arith.subf %62, %63 : vector<1x256xf32>
    %65 = vector.extract_strided_slice %1 {offsets = [5, 0], sizes = [1, 256], strides = [1, 1]} : vector<12x256xf32> to vector<1x256xf32>
    %66 = vector.extract_strided_slice %1 {offsets = [7, 0], sizes = [1, 256], strides = [1, 1]} : vector<12x256xf32> to vector<1x256xf32>
    %67 = arith.subf %65, %66 : vector<1x256xf32>
    %68 = vector.extract_strided_slice %1 {offsets = [9, 0], sizes = [1, 256], strides = [1, 1]} : vector<12x256xf32> to vector<1x256xf32>
    %69 = vector.extract_strided_slice %1 {offsets = [11, 0], sizes = [1, 256], strides = [1, 1]} : vector<12x256xf32> to vector<1x256xf32>
    %70 = arith.subf %68, %69 : vector<1x256xf32>
    %71 = arith.mulf %64, %64 : vector<1x256xf32>
    %72 = arith.mulf %67, %67 : vector<1x256xf32>
    %73 = arith.addf %71, %72 : vector<1x256xf32>
    %74 = arith.mulf %70, %70 : vector<1x256xf32>
    %75 = arith.addf %73, %74 : vector<1x256xf32>
    %76 = math.sqrt %75 : vector<1x256xf32>
    %77 = vector.extract_strided_slice %1 {offsets = [2, 0], sizes = [1, 256], strides = [1, 1]} : vector<12x256xf32> to vector<1x256xf32>
    %78 = vector.extract_strided_slice %1 {offsets = [3, 0], sizes = [1, 256], strides = [1, 1]} : vector<12x256xf32> to vector<1x256xf32>
    %79 = arith.subf %77, %78 : vector<1x256xf32>
    %80 = vector.extract_strided_slice %1 {offsets = [6, 0], sizes = [1, 256], strides = [1, 1]} : vector<12x256xf32> to vector<1x256xf32>
    %81 = vector.extract_strided_slice %1 {offsets = [7, 0], sizes = [1, 256], strides = [1, 1]} : vector<12x256xf32> to vector<1x256xf32>
    %82 = arith.subf %80, %81 : vector<1x256xf32>
    %83 = vector.extract_strided_slice %1 {offsets = [10, 0], sizes = [1, 256], strides = [1, 1]} : vector<12x256xf32> to vector<1x256xf32>
    %84 = vector.extract_strided_slice %1 {offsets = [11, 0], sizes = [1, 256], strides = [1, 1]} : vector<12x256xf32> to vector<1x256xf32>
    %85 = arith.subf %83, %84 : vector<1x256xf32>
    %86 = arith.mulf %79, %79 : vector<1x256xf32>
    %87 = arith.mulf %82, %82 : vector<1x256xf32>
    %88 = arith.addf %86, %87 : vector<1x256xf32>
    %89 = arith.mulf %85, %85 : vector<1x256xf32>
    %90 = arith.addf %88, %89 : vector<1x256xf32>
    %91 = math.sqrt %90 : vector<1x256xf32>
    %92 = tpu.concatenate %16, %31, %46, %61, %76, %91 in 0 : vector<1x256xf32>, vector<1x256xf32>, vector<1x256xf32>, vector<1x256xf32>, vector<1x256xf32>, vector<1x256xf32> -> vector<6x256xf32>
    %c0_2 = arith.constant 0 : index
    %c0_3 = arith.constant 0 : index
    %93 = vector.load %arg3[%c0_2, %c0_3] : memref<10x6xf32, #tpu.memory_space<vmem>>, vector<10x6xf32>
    %cst = arith.constant dense<0.000000e+00> : vector<10x256xf32>
    %94 = tpu.matmul %93, %92, %cst {dimension_numbers = #tpu.dot_dimension_numbers<[1], [0], [0], [1], [0, 0, 1, 1], [], []>} : vector<10x6xf32>, vector<6x256xf32>, vector<10x256xf32> -> vector<10x256xf32>
    %c0_4 = arith.constant 0 : index
    %c0_5 = arith.constant 0 : index
    %95 = vector.load %arg4[%c0_4, %c0_5] : memref<10x1xf32, #tpu.memory_space<vmem>>, vector<10x1xf32>
    %96 = vector.broadcast %95 : vector<10x1xf32> to vector<10x256xf32>
    %97 = arith.addf %94, %96 : vector<10x256xf32>
    %cst_6 = arith.constant 0.000000e+00 : f32
    %98 = vector.broadcast %cst_6 : f32 to vector<10x256xf32>
    %99 = arith.cmpf ogt, %97, %98 : vector<10x256xf32>
    %cst_7 = arith.constant 2.000000e-01 : f32
    %100 = vector.broadcast %cst_7 : f32 to vector<10x256xf32>
    %101 = arith.mulf %100, %97 : vector<10x256xf32>
    %102 = arith.select %99, %97, %101 : vector<10x256xi1>, vector<10x256xf32>
    %cst_8 = arith.constant 0.000000e+00 : f32
    %103 = vector.broadcast %cst_8 : f32 to vector<4x256xf32>
    %104 = tpu.concatenate %92, %102, %1, %103 in 0 : vector<6x256xf32>, vector<10x256xf32>, vector<12x256xf32>, vector<4x256xf32> -> vector<32x256xf32>
    %105 = arith.truncf %104 : vector<32x256xf32> to vector<32x256xbf16>
    %c0_9 = arith.constant 0 : index
    %c0_10 = arith.constant 0 : index
    %c0_11 = arith.constant 0 : index
    %106 = vector.load %arg5[%c0_9, %c0_10, %c0_11] : memref<1x32x256xbf16, #tpu.memory_space<vmem>>, vector<1x32x256xbf16>
    %107 = vector.shape_cast %106 : vector<1x32x256xbf16> to vector<32x256xbf16>
    %108 = vector.shape_cast %105 : vector<32x256xbf16> to vector<1x32x256xbf16>
    tpu.vector_store %arg5[%c0_9, %c0_10, %c0_11], %108 {strides = array<i32>} : memref<1x32x256xbf16, #tpu.memory_space<vmem>>, vector<1x32x256xbf16>,
    return
  }
  func.func @transform_0(%arg0: i32, %arg1: i32) -> (i32, i32, i32) {
    %c0_i32 = arith.constant 0 : i32
    %c0_i32_0 = arith.constant 0 : i32
    return %arg0, %c0_i32, %arg1 : i32, i32, i32
  }
  func.func @transform_1(%arg0: i32, %arg1: i32) -> (i32, i32) {
    %c0_i32 = arith.constant 0 : i32
    %c0_i32_0 = arith.constant 0 : i32
    %c0_i32_1 = arith.constant 0 : i32
    return %c0_i32, %c0_i32_0 : i32, i32
  }
  func.func @transform_2(%arg0: i32, %arg1: i32) -> (i32, i32) {
    %c0_i32 = arith.constant 0 : i32
    %c0_i32_0 = arith.constant 0 : i32
    %c0_i32_1 = arith.constant 0 : i32
    return %c0_i32, %c0_i32_0 : i32, i32
  }
  func.func @transform_3(%arg0: i32, %arg1: i32) -> (i32, i32, i32) {
    %c0_i32 = arith.constant 0 : i32
    %c0_i32_0 = arith.constant 0 : i32
    return %arg0, %c0_i32, %arg1 : i32, i32, i32
  }
}

module attributes {stable_mosaic.version = 11 : i64} {
  func.func @_relative_kernel(%arg0: i32, %arg1: i32, %arg2: memref<1x1x1024xi32, #tpu.memory_space<vmem>>, %arg3: memref<1x32x256xbf16, #tpu.memory_space<vmem>>, %arg4: memref<1x32x128xbf16, #tpu.memory_space<vmem>>, %arg5: memref<16x48xbf16, #tpu.memory_space<vmem>>, %arg6: memref<16x1xf32, #tpu.memory_space<vmem>>, %arg7: memref<1x64x1024xf32, #tpu.memory_space<vmem>>) attributes {dimension_semantics = [#tpu.dimension_semantics<parallel>, #tpu.dimension_semantics<parallel>], iteration_bounds = array<i64: 2, 2>, scalar_prefetch = 0 : i64, scratch_operands = 0 : i64, tpu.core_type = #tpu.core_type<tc>, window_params = [{transform_indices = @transform_0, window_bounds = array<i64: 1, 1, 1024>}, {transform_indices = @transform_1, window_bounds = array<i64: 1, 32, 256>}, {transform_indices = @transform_2, window_bounds = array<i64: 1, 32, 128>}, {pipeline_mode = #tpu.pipeline_mode<synchronous>, transform_indices = @transform_3, window_bounds = array<i64: 16, 48>}, {pipeline_mode = #tpu.pipeline_mode<synchronous>, transform_indices = @transform_4, window_bounds = array<i64: 16, 1>}, {transform_indices = @transform_5, window_bounds = array<i64: 1, 64, 1024>}]} {
    %c0 = arith.constant 0 : index
    %c0_0 = arith.constant 0 : index
    %c0_1 = arith.constant 0 : index
    %0 = vector.load %arg2[%c0, %c0_0, %c0_1] : memref<1x1x1024xi32, #tpu.memory_space<vmem>>, vector<1x1x1024xi32>
    %1 = vector.shape_cast %0 : vector<1x1x1024xi32> to vector<1x1024xi32>
    %2 = tpu.iota {dimensions = array<i32: 0>} : vector<256x1024xi32>
    %c0_i32 = arith.constant 0 : i32
    %3 = vector.broadcast %c0_i32 : i32 to vector<256x1024xi32>
    %4 = arith.addi %2, %3 : vector<256x1024xi32>
    %5 = vector.broadcast %1 : vector<1x1024xi32> to vector<256x1024xi32>
    %6 = arith.cmpi eq, %4, %5 : vector<256x1024xi32>
    %7 = arith.extui %6 : vector<256x1024xi1> to vector<256x1024xi32>
    %8 = arith.sitofp %7 : vector<256x1024xi32> to vector<256x1024xf32>
    %9 = arith.truncf %8 : vector<256x1024xf32> to vector<256x1024xbf16>
    %c0_2 = arith.constant 0 : index
    %c0_3 = arith.constant 0 : index
    %c0_4 = arith.constant 0 : index
    %10 = vector.load %arg3[%c0_2, %c0_3, %c0_4] : memref<1x32x256xbf16, #tpu.memory_space<vmem>>, vector<1x32x256xbf16>
    %11 = vector.shape_cast %10 : vector<1x32x256xbf16> to vector<32x256xbf16>
    %cst = arith.constant dense<0.000000e+00> : vector<32x1024xf32>
    %12 = tpu.matmul %11, %9, %cst {dimension_numbers = #tpu.dot_dimension_numbers<[1], [0], [0], [1], [0, 0, 1, 1], [], []>} : vector<32x256xbf16>, vector<256x1024xbf16>, vector<32x1024xf32> -> vector<32x1024xf32>
    %13 = tpu.iota {dimensions = array<i32: 1>} : vector<128x1024xi32>
    %14 = tpu.iota {dimensions = array<i32: 0>} : vector<128x1024xi32>
    %c8_i32 = arith.constant 8 : i32
    %15 = vector.broadcast %c8_i32 : i32 to vector<128x1024xi32>
    %16 = arith.muli %14, %15 : vector<128x1024xi32>
    %17 = arith.cmpi sge, %13, %16 : vector<128x1024xi32>
    %c8_i32_5 = arith.constant 8 : i32
    %18 = vector.broadcast %c8_i32_5 : i32 to vector<128x1024xi32>
    %19 = arith.addi %16, %18 : vector<128x1024xi32>
    %20 = arith.cmpi slt, %13, %19 : vector<128x1024xi32>
    %21 = arith.andi %17, %20 : vector<128x1024xi1>
    %22 = arith.extui %21 : vector<128x1024xi1> to vector<128x1024xi32>
    %23 = arith.sitofp %22 : vector<128x1024xi32> to vector<128x1024xf32>
    %24 = arith.truncf %23 : vector<128x1024xf32> to vector<128x1024xbf16>
    %c0_6 = arith.constant 0 : index
    %c0_7 = arith.constant 0 : index
    %c0_8 = arith.constant 0 : index
    %25 = vector.load %arg4[%c0_6, %c0_7, %c0_8] : memref<1x32x128xbf16, #tpu.memory_space<vmem>>, vector<1x32x128xbf16>
    %26 = vector.shape_cast %25 : vector<1x32x128xbf16> to vector<32x128xbf16>
    %cst_9 = arith.constant dense<0.000000e+00> : vector<32x1024xf32>
    %27 = tpu.matmul %26, %24, %cst_9 {dimension_numbers = #tpu.dot_dimension_numbers<[1], [0], [0], [1], [0, 0, 1, 1], [], []>} : vector<32x128xbf16>, vector<128x1024xbf16>, vector<32x1024xf32> -> vector<32x1024xf32>
    %28 = vector.extract_strided_slice %12 {offsets = [16, 0], sizes = [4, 1024], strides = [1, 1]} : vector<32x1024xf32> to vector<4x1024xf32>
    %29 = vector.extract_strided_slice %12 {offsets = [20, 0], sizes = [4, 1024], strides = [1, 1]} : vector<32x1024xf32> to vector<4x1024xf32>
    %30 = vector.extract_strided_slice %12 {offsets = [24, 0], sizes = [4, 1024], strides = [1, 1]} : vector<32x1024xf32> to vector<4x1024xf32>
    %31 = vector.extract_strided_slice %27 {offsets = [16, 0], sizes = [4, 1024], strides = [1, 1]} : vector<32x1024xf32> to vector<4x1024xf32>
    %32 = vector.extract_strided_slice %27 {offsets = [20, 0], sizes = [4, 1024], strides = [1, 1]} : vector<32x1024xf32> to vector<4x1024xf32>
    %33 = vector.extract_strided_slice %27 {offsets = [24, 0], sizes = [4, 1024], strides = [1, 1]} : vector<32x1024xf32> to vector<4x1024xf32>
    %34 = vector.extract_strided_slice %31 {offsets = [0, 0], sizes = [1, 1024], strides = [1, 1]} : vector<4x1024xf32> to vector<1x1024xf32>
    %35 = vector.broadcast %34 : vector<1x1024xf32> to vector<4x1024xf32>
    %36 = arith.subf %35, %28 : vector<4x1024xf32>
    %37 = vector.extract_strided_slice %32 {offsets = [0, 0], sizes = [1, 1024], strides = [1, 1]} : vector<4x1024xf32> to vector<1x1024xf32>
    %38 = vector.broadcast %37 : vector<1x1024xf32> to vector<4x1024xf32>
    %39 = arith.subf %38, %29 : vector<4x1024xf32>
    %40 = vector.extract_strided_slice %33 {offsets = [0, 0], sizes = [1, 1024], strides = [1, 1]} : vector<4x1024xf32> to vector<1x1024xf32>
    %41 = vector.broadcast %40 : vector<1x1024xf32> to vector<4x1024xf32>
    %42 = arith.subf %41, %30 : vector<4x1024xf32>
    %43 = arith.mulf %36, %36 : vector<4x1024xf32>
    %44 = arith.mulf %39, %39 : vector<4x1024xf32>
    %45 = arith.addf %43, %44 : vector<4x1024xf32>
    %46 = arith.mulf %42, %42 : vector<4x1024xf32>
    %47 = arith.addf %45, %46 : vector<4x1024xf32>
    %48 = math.sqrt %47 : vector<4x1024xf32>
    %49 = vector.extract_strided_slice %31 {offsets = [1, 0], sizes = [1, 1024], strides = [1, 1]} : vector<4x1024xf32> to vector<1x1024xf32>
    %50 = vector.broadcast %49 : vector<1x1024xf32> to vector<4x1024xf32>
    %51 = arith.subf %50, %28 : vector<4x1024xf32>
    %52 = vector.extract_strided_slice %32 {offsets = [1, 0], sizes = [1, 1024], strides = [1, 1]} : vector<4x1024xf32> to vector<1x1024xf32>
    %53 = vector.broadcast %52 : vector<1x1024xf32> to vector<4x1024xf32>
    %54 = arith.subf %53, %29 : vector<4x1024xf32>
    %55 = vector.extract_strided_slice %33 {offsets = [1, 0], sizes = [1, 1024], strides = [1, 1]} : vector<4x1024xf32> to vector<1x1024xf32>
    %56 = vector.broadcast %55 : vector<1x1024xf32> to vector<4x1024xf32>
    %57 = arith.subf %56, %30 : vector<4x1024xf32>
    %58 = arith.mulf %51, %51 : vector<4x1024xf32>
    %59 = arith.mulf %54, %54 : vector<4x1024xf32>
    %60 = arith.addf %58, %59 : vector<4x1024xf32>
    %61 = arith.mulf %57, %57 : vector<4x1024xf32>
    %62 = arith.addf %60, %61 : vector<4x1024xf32>
    %63 = math.sqrt %62 : vector<4x1024xf32>
    %64 = vector.extract_strided_slice %31 {offsets = [2, 0], sizes = [1, 1024], strides = [1, 1]} : vector<4x1024xf32> to vector<1x1024xf32>
    %65 = vector.broadcast %64 : vector<1x1024xf32> to vector<4x1024xf32>
    %66 = arith.subf %65, %28 : vector<4x1024xf32>
    %67 = vector.extract_strided_slice %32 {offsets = [2, 0], sizes = [1, 1024], strides = [1, 1]} : vector<4x1024xf32> to vector<1x1024xf32>
    %68 = vector.broadcast %67 : vector<1x1024xf32> to vector<4x1024xf32>
    %69 = arith.subf %68, %29 : vector<4x1024xf32>
    %70 = vector.extract_strided_slice %33 {offsets = [2, 0], sizes = [1, 1024], strides = [1, 1]} : vector<4x1024xf32> to vector<1x1024xf32>
    %71 = vector.broadcast %70 : vector<1x1024xf32> to vector<4x1024xf32>
    %72 = arith.subf %71, %30 : vector<4x1024xf32>
    %73 = arith.mulf %66, %66 : vector<4x1024xf32>
    %74 = arith.mulf %69, %69 : vector<4x1024xf32>
    %75 = arith.addf %73, %74 : vector<4x1024xf32>
    %76 = arith.mulf %72, %72 : vector<4x1024xf32>
    %77 = arith.addf %75, %76 : vector<4x1024xf32>
    %78 = math.sqrt %77 : vector<4x1024xf32>
    %79 = vector.extract_strided_slice %31 {offsets = [3, 0], sizes = [1, 1024], strides = [1, 1]} : vector<4x1024xf32> to vector<1x1024xf32>
    %80 = vector.broadcast %79 : vector<1x1024xf32> to vector<4x1024xf32>
    %81 = arith.subf %80, %28 : vector<4x1024xf32>
    %82 = vector.extract_strided_slice %32 {offsets = [3, 0], sizes = [1, 1024], strides = [1, 1]} : vector<4x1024xf32> to vector<1x1024xf32>
    %83 = vector.broadcast %82 : vector<1x1024xf32> to vector<4x1024xf32>
    %84 = arith.subf %83, %29 : vector<4x1024xf32>
    %85 = vector.extract_strided_slice %33 {offsets = [3, 0], sizes = [1, 1024], strides = [1, 1]} : vector<4x1024xf32> to vector<1x1024xf32>
    %86 = vector.broadcast %85 : vector<1x1024xf32> to vector<4x1024xf32>
    %87 = arith.subf %86, %30 : vector<4x1024xf32>
    %88 = arith.mulf %81, %81 : vector<4x1024xf32>
    %89 = arith.mulf %84, %84 : vector<4x1024xf32>
    %90 = arith.addf %88, %89 : vector<4x1024xf32>
    %91 = arith.mulf %87, %87 : vector<4x1024xf32>
    %92 = arith.addf %90, %91 : vector<4x1024xf32>
    %93 = math.sqrt %92 : vector<4x1024xf32>
    %94 = tpu.concatenate %48, %63, %78, %93 in 0 : vector<4x1024xf32>, vector<4x1024xf32>, vector<4x1024xf32>, vector<4x1024xf32> -> vector<16x1024xf32>
    %95 = vector.extract_strided_slice %27 {offsets = [0, 0], sizes = [16, 1024], strides = [1, 1]} : vector<32x1024xf32> to vector<16x1024xf32>
    %96 = vector.extract_strided_slice %12 {offsets = [0, 0], sizes = [16, 1024], strides = [1, 1]} : vector<32x1024xf32> to vector<16x1024xf32>
    %97 = tpu.concatenate %95, %96, %94 in 0 : vector<16x1024xf32>, vector<16x1024xf32>, vector<16x1024xf32> -> vector<48x1024xf32>
    %c0_10 = arith.constant 0 : index
    %c0_11 = arith.constant 0 : index
    %98 = vector.load %arg5[%c0_10, %c0_11] : memref<16x48xbf16, #tpu.memory_space<vmem>>, vector<16x48xbf16>
    %99 = arith.truncf %97 : vector<48x1024xf32> to vector<48x1024xbf16>
    %cst_12 = arith.constant dense<0.000000e+00> : vector<16x1024xf32>
    %100 = tpu.matmul %98, %99, %cst_12 {dimension_numbers = #tpu.dot_dimension_numbers<[1], [0], [0], [1], [0, 0, 1, 1], [], []>} : vector<16x48xbf16>, vector<48x1024xbf16>, vector<16x1024xf32> -> vector<16x1024xf32>
    %c0_13 = arith.constant 0 : index
    %c0_14 = arith.constant 0 : index
    %101 = vector.load %arg6[%c0_13, %c0_14] : memref<16x1xf32, #tpu.memory_space<vmem>>, vector<16x1xf32>
    %102 = vector.broadcast %101 : vector<16x1xf32> to vector<16x1024xf32>
    %103 = arith.addf %100, %102 : vector<16x1024xf32>
    %cst_15 = arith.constant 0.000000e+00 : f32
    %104 = vector.broadcast %cst_15 : f32 to vector<16x1024xf32>
    %105 = arith.cmpf ogt, %103, %104 : vector<16x1024xf32>
    %cst_16 = arith.constant 2.000000e-01 : f32
    %106 = vector.broadcast %cst_16 : f32 to vector<16x1024xf32>
    %107 = arith.mulf %106, %103 : vector<16x1024xf32>
    %108 = arith.select %105, %103, %107 : vector<16x1024xi1>, vector<16x1024xf32>
    %109 = tpu.concatenate %97, %108 in 0 : vector<48x1024xf32>, vector<16x1024xf32> -> vector<64x1024xf32>
    %c0_17 = arith.constant 0 : index
    %c0_18 = arith.constant 0 : index
    %c0_19 = arith.constant 0 : index
    %110 = vector.load %arg7[%c0_17, %c0_18, %c0_19] : memref<1x64x1024xf32, #tpu.memory_space<vmem>>, vector<1x64x1024xf32>
    %111 = vector.shape_cast %110 : vector<1x64x1024xf32> to vector<64x1024xf32>
    %112 = vector.shape_cast %109 : vector<64x1024xf32> to vector<1x64x1024xf32>
    tpu.vector_store %arg7[%c0_17, %c0_18, %c0_19], %112 {strides = array<i32>} : memref<1x64x1024xf32, #tpu.memory_space<vmem>>, vector<1x64x1024xf32>,
    return
  }
  func.func @transform_0(%arg0: i32, %arg1: i32) -> (i32, i32, i32) {
    %c0_i32 = arith.constant 0 : i32
    %c0_i32_0 = arith.constant 0 : i32
    return %arg0, %c0_i32, %arg1 : i32, i32, i32
  }
  func.func @transform_1(%arg0: i32, %arg1: i32) -> (i32, i32, i32) {
    %c0_i32 = arith.constant 0 : i32
    %c0_i32_0 = arith.constant 0 : i32
    %c0_i32_1 = arith.constant 0 : i32
    return %arg0, %c0_i32, %c0_i32_0 : i32, i32, i32
  }
  func.func @transform_2(%arg0: i32, %arg1: i32) -> (i32, i32, i32) {
    %c0_i32 = arith.constant 0 : i32
    %c0_i32_0 = arith.constant 0 : i32
    return %arg0, %c0_i32, %arg1 : i32, i32, i32
  }
  func.func @transform_3(%arg0: i32, %arg1: i32) -> (i32, i32) {
    %c0_i32 = arith.constant 0 : i32
    %c0_i32_0 = arith.constant 0 : i32
    %c0_i32_1 = arith.constant 0 : i32
    return %c0_i32, %c0_i32_0 : i32, i32
  }
  func.func @transform_4(%arg0: i32, %arg1: i32) -> (i32, i32) {
    %c0_i32 = arith.constant 0 : i32
    %c0_i32_0 = arith.constant 0 : i32
    %c0_i32_1 = arith.constant 0 : i32
    return %c0_i32, %c0_i32_0 : i32, i32
  }
  func.func @transform_5(%arg0: i32, %arg1: i32) -> (i32, i32, i32) {
    %c0_i32 = arith.constant 0 : i32
    %c0_i32_0 = arith.constant 0 : i32
    return %arg0, %c0_i32, %arg1 : i32, i32, i32
  }
}

</mosaic_0001>

<bundles_post_ra>
// kernel: neg.1
= control target key start
LH: loop header
LB: loop body
LE: loop exit
PB: predicated region body
PF: predicated region fallthrough
CT: control target
= control target key end

     0   :  { %s2056_s0 = inlined_call_operand.vmem [shape: f32[2,256,256], index: 0, kind: input, shape index: {}]   ;;  %s2057_s1 = inlined_call_operand.vmem [shape: f32[2,256,256], index: 1, kind: output, shape index: {}]  }
   0x1   :  { %v2_v0 = vld [vmem:[%s2056_s0] sm:$0xff]  ;;  %v1026_v2 = vld [vmem:[%s2056_s0 + $0x10] sm:$0xff] }
   0x2   :  { %v1024_v1 = vld [vmem:[%s2056_s0 + $0x200] sm:$0xff]  ;;  %v5_v3 = vxor.u32 2147483648, %v2_v0  ;;  %v20_v5 = vxor.u32 2147483648, %v1026_v2  ;;  %v1028_v6 = vld [vmem:[%s2056_s0 + $0x210] sm:$0xff] }
   0x3   :  { %v12_v4 = vxor.u32 2147483648, %v1024_v1  ;;  %v1030_v7 = vld [vmem:[%s2056_s0 + $0x20] sm:$0xff]  ;;  %v28_v9 = vxor.u32 2147483648, %v1028_v6  ;;  %v1034_v12 = vld [vmem:[%s2056_s0 + $0x30] sm:$0xff] }
   0x4   :  { %v1032_v8 = vld [vmem:[%s2056_s0 + $0x220] sm:$0xff]  ;;  %v36_v10 = vxor.u32 2147483648, %v1030_v7  ;;  %v1036_v13 = vld [vmem:[%s2056_s0 + $0x230] sm:$0xff]  ;;  %7 = vst [vmem:[%s2057_s1] sm:$0xff] %v5_v3  ;;  %1027 = vst [vmem:[%s2057_s1 + $0x10] sm:$0xff] %v20_v5  ;;  %v52_v15 = vxor.u32 2147483648, %v1034_v12 }
   0x5   :  { %v44_v11 = vxor.u32 2147483648, %v1032_v8  ;;  %v1038_v14 = vld [vmem:[%s2056_s0 + $0x40] sm:$0xff]  ;;  %1025 = vst [vmem:[%s2057_s1 + $0x200] sm:$0xff] %v12_v4  ;;  %v60_v16 = vxor.u32 2147483648, %v1036_v13  ;;  %v1042_v19 = vld [vmem:[%s2056_s0 + $0x50] sm:$0xff]  ;;  %1029 = vst [vmem:[%s2057_s1 + $0x210] sm:$0xff] %v28_v9 }
   0x6   :  { %v68_v17 = vxor.u32 2147483648, %v1038_v14  ;;  %v1040_v18 = vld [vmem:[%s2056_s0 + $0x240] sm:$0xff]  ;;  %v1044_v20 = vld [vmem:[%s2056_s0 + $0x250] sm:$0xff]  ;;  %1031 = vst [vmem:[%s2057_s1 + $0x20] sm:$0xff] %v36_v10  ;;  %v84_v22 = vxor.u32 2147483648, %v1042_v19  ;;  %1035 = vst [vmem:[%s2057_s1 + $0x30] sm:$0xff] %v52_v15 }
   0x7   :  { %1033 = vst [vmem:[%s2057_s1 + $0x220] sm:$0xff] %v44_v11  ;;  %v76_v21 = vxor.u32 2147483648, %v1040_v18  ;;  %v92_v23 = vxor.u32 2147483648, %v1044_v20  ;;  %v1046_v24 = vld [vmem:[%s2056_s0 + $0x60] sm:$0xff]  ;;  %v1050_v26 = vld [vmem:[%s2056_s0 + $0x70] sm:$0xff]  ;;  %1037 = vst [vmem:[%s2057_s1 + $0x230] sm:$0xff] %v60_v16 }
   0x8   :  { %v1048_v25 = vld [vmem:[%s2056_s0 + $0x260] sm:$0xff]  ;;  %1039 = vst [vmem:[%s2057_s1 + $0x40] sm:$0xff] %v68_v17  ;;  %v100_v27 = vxor.u32 2147483648, %v1046_v24  ;;  %v116_v29 = vxor.u32 2147483648, %v1050_v26  ;;  %v1052_v30 = vld [vmem:[%s2056_s0 + $0x270] sm:$0xff]  ;;  %1043 = vst [vmem:[%s2057_s1 + $0x50] sm:$0xff] %v84_v22 }
   0x9   :  { %v108_v28 = vxor.u32 2147483648, %v1048_v25  ;;  %v1054_v31 = vld [vmem:[%s2056_s0 + $0x80] sm:$0xff]  ;;  %1041 = vst [vmem:[%s2057_s1 + $0x240] sm:$0xff] %v76_v21  ;;  %1045 = vst [vmem:[%s2057_s1 + $0x250] sm:$0xff] %v92_v23  ;;  %v124_v33 = vxor.u32 2147483648, %v1052_v30  ;;  %v1058_v36 = vld [vmem:[%s2056_s0 + $0x90] sm:$0xff] }
   0xa   :  { %v1056_v32 = vld [vmem:[%s2056_s0 + $0x280] sm:$0xff]  ;;  %v132_v34 = vxor.u32 2147483648, %v1054_v31  ;;  %v1060_v37 = vld [vmem:[%s2056_s0 + $0x290] sm:$0xff]  ;;  %1047 = vst [vmem:[%s2057_s1 + $0x60] sm:$0xff] %v100_v27  ;;  %1051 = vst [vmem:[%s2057_s1 + $0x70] sm:$0xff] %v116_v29  ;;  %v148_v39 = vxor.u32 2147483648, %v1058_v36 }
   0xb   :  { %v140_v35 = vxor.u32 2147483648, %v1056_v32  ;;  %v1062_v38 = vld [vmem:[%s2056_s0 + $0xa0] sm:$0xff]  ;;  %1049 = vst [vmem:[%s2057_s1 + $0x260] sm:$0xff] %v108_v28  ;;  %v156_v40 = vxor.u32 2147483648, %v1060_v37  ;;  %v1066_v43 = vld [vmem:[%s2056_s0 + $0xb0] sm:$0xff]  ;;  %1053 = vst [vmem:[%s2057_s1 + $0x270] sm:$0xff] %v124_v33 }
   0xc   :  { %v164_v41 = vxor.u32 2147483648, %v1062_v38  ;;  %v1064_v42 = vld [vmem:[%s2056_s0 + $0x2a0] sm:$0xff]  ;;  %v1068_v44 = vld [vmem:[%s2056_s0 + $0x2b0] sm:$0xff]  ;;  %1055 = vst [vmem:[%s2057_s1 + $0x80] sm:$0xff] %v132_v34  ;;  %v180_v46 = vxor.u32 2147483648, %v1066_v43  ;;  %1059 = vst [vmem:[%s2057_s1 + $0x90] sm:$0xff] %v148_v39 }
   0xd   :  { %1057 = vst [vmem:[%s2057_s1 + $0x280] sm:$0xff] %v140_v35  ;;  %v172_v45 = vxor.u32 2147483648, %v1064_v42  ;;  %v188_v47 = vxor.u32 2147483648, %v1068_v44  ;;  %v1070_v48 = vld [vmem:[%s2056_s0 + $0xc0] sm:$0xff]  ;;  %v1074_v50 = vld [vmem:[%s2056_s0 + $0xd0] sm:$0xff]  ;;  %1061 = vst [vmem:[%s2057_s1 + $0x290] sm:$0xff] %v156_v40 }
   0xe   :  { %v1072_v49 = vld [vmem:[%s2056_s0 + $0x2c0] sm:$0xff]  ;;  %1063 = vst [vmem:[%s2057_s1 + $0xa0] sm:$0xff] %v164_v41  ;;  %v196_v51 = vxor.u32 2147483648, %v1070_v48  ;;  %v212_v53 = vxor.u32 2147483648, %v1074_v50  ;;  %v1076_v54 = vld [vmem:[%s2056_s0 + $0x2d0] sm:$0xff]  ;;  %1067 = vst [vmem:[%s2057_s1 + $0xb0] sm:$0xff] %v180_v46 }
   0xf   :  { %v204_v52 = vxor.u32 2147483648, %v1072_v49  ;;  %v1078_v55 = vld [vmem:[%s2056_s0 + $0xe0] sm:$0xff]  ;;  %1065 = vst [vmem:[%s2057_s1 + $0x2a0] sm:$0xff] %v172_v45  ;;  %1069 = vst [vmem:[%s2057_s1 + $0x2b0] sm:$0xff] %v188_v47  ;;  %v220_v57 = vxor.u32 2147483648, %v1076_v54  ;;  %v1082_v60 = vld [vmem:[%s2056_s0 + $0xf0] sm:$0xff] }
  0x10   :  { %v1080_v56 = vld [vmem:[%s2056_s0 + $0x2e0] sm:$0xff]  ;;  %v228_v58 = vxor.u32 2147483648, %v1078_v55  ;;  %v1084_v61 = vld [vmem:[%s2056_s0 + $0x2f0] sm:$0xff]  ;;  %1071 = vst [vmem:[%s2057_s1 + $0xc0] sm:$0xff] %v196_v51  ;;  %1075 = vst [vmem:[%s2057_s1 + $0xd0] sm:$0xff] %v212_v53  ;;  %v244_v63 = vxor.u32 2147483648, %v1082_v60 }
  0x11   :  { %v236_v59 = vxor.u32 2147483648, %v1080_v56  ;;  %v1086_v62 = vld [vmem:[%s2056_s0 + $0x100] sm:$0xff]  ;;  %1073 = vst [vmem:[%s2057_s1 + $0x2c0] sm:$0xff] %v204_v52  ;;  %v252_v0 = vxor.u32 2147483648, %v1084_v61  ;;  %v1090_v3 = vld [vmem:[%s2056_s0 + $0x110] sm:$0xff]  ;;  %1077 = vst [vmem:[%s2057_s1 + $0x2d0] sm:$0xff] %v220_v57 }
  0x12   :  { %v260_v1 = vxor.u32 2147483648, %v1086_v62  ;;  %v1088_v2 = vld [vmem:[%s2056_s0 + $0x300] sm:$0xff]  ;;  %v1092_v4 = vld [vmem:[%s2056_s0 + $0x310] sm:$0xff]  ;;  %1079 = vst [vmem:[%s2057_s1 + $0xe0] sm:$0xff] %v228_v58  ;;  %v276_v6 = vxor.u32 2147483648, %v1090_v3  ;;  %1083 = vst [vmem:[%s2057_s1 + $0xf0] sm:$0xff] %v244_v63 }
  0x13   :  { %1081 = vst [vmem:[%s2057_s1 + $0x2e0] sm:$0xff] %v236_v59  ;;  %v268_v5 = vxor.u32 2147483648, %v1088_v2  ;;  %v284_v7 = vxor.u32 2147483648, %v1092_v4  ;;  %v1094_v8 = vld [vmem:[%s2056_s0 + $0x120] sm:$0xff]  ;;  %v1098_v10 = vld [vmem:[%s2056_s0 + $0x130] sm:$0xff]  ;;  %1085 = vst [vmem:[%s2057_s1 + $0x2f0] sm:$0xff] %v252_v0 }
  0x14   :  { %v1096_v9 = vld [vmem:[%s2056_s0 + $0x320] sm:$0xff]  ;;  %1087 = vst [vmem:[%s2057_s1 + $0x100] sm:$0xff] %v260_v1  ;;  %v292_v11 = vxor.u32 2147483648, %v1094_v8  ;;  %v308_v13 = vxor.u32 2147483648, %v1098_v10  ;;  %v1100_v14 = vld [vmem:[%s2056_s0 + $0x330] sm:$0xff]  ;;  %1091 = vst [vmem:[%s2057_s1 + $0x110] sm:$0xff] %v276_v6 }
  0x15   :  { %v300_v12 = vxor.u32 2147483648, %v1096_v9  ;;  %v1102_v15 = vld [vmem:[%s2056_s0 + $0x140] sm:$0xff]  ;;  %1089 = vst [vmem:[%s2057_s1 + $0x300] sm:$0xff] %v268_v5  ;;  %1093 = vst [vmem:[%s2057_s1 + $0x310] sm:$0xff] %v284_v7  ;;  %v316_v17 = vxor.u32 2147483648, %v1100_v14  ;;  %v1106_v20 = vld [vmem:[%s2056_s0 + $0x150] sm:$0xff] }
  0x16   :  { %v1104_v16 = vld [vmem:[%s2056_s0 + $0x340] sm:$0xff]  ;;  %v324_v18 = vxor.u32 2147483648, %v1102_v15  ;;  %v1108_v21 = vld [vmem:[%s2056_s0 + $0x350] sm:$0xff]  ;;  %1095 = vst [vmem:[%s2057_s1 + $0x120] sm:$0xff] %v292_v11  ;;  %1099 = vst [vmem:[%s2057_s1 + $0x130] sm:$0xff] %v308_v13  ;;  %v340_v23 = vxor.u32 2147483648, %v1106_v20 }
  0x17   :  { %v332_v19 = vxor.u32 2147483648, %v1104_v16  ;;  %v1110_v22 = vld [vmem:[%s2056_s0 + $0x160] sm:$0xff]  ;;  %1097 = vst [vmem:[%s2057_s1 + $0x320] sm:$0xff] %v300_v12  ;;  %v348_v24 = vxor.u32 2147483648, %v1108_v21  ;;  %v1114_v27 = vld [vmem:[%s2056_s0 + $0x170] sm:$0xff]  ;;  %1101 = vst [vmem:[%s2057_s1 + $0x330] sm:$0xff] %v316_v17 }
  0x18   :  { %v356_v25 = vxor.u32 2147483648, %v1110_v22  ;;  %v1112_v26 = vld [vmem:[%s2056_s0 + $0x360] sm:$0xff]  ;;  %v1116_v28 = vld [vmem:[%s2056_s0 + $0x370] sm:$0xff]  ;;  %1103 = vst [vmem:[%s2057_s1 + $0x140] sm:$0xff] %v324_v18  ;;  %v372_v30 = vxor.u32 2147483648, %v1114_v27  ;;  %1107 = vst [vmem:[%s2057_s1 + $0x150] sm:$0xff] %v340_v23 }
  0x19   :  { %1105 = vst [vmem:[%s2057_s1 + $0x340] sm:$0xff] %v332_v19  ;;  %v364_v29 = vxor.u32 2147483648, %v1112_v26  ;;  %v380_v31 = vxor.u32 2147483648, %v1116_v28  ;;  %v1118_v32 = vld [vmem:[%s2056_s0 + $0x180] sm:$0xff]  ;;  %v1122_v34 = vld [vmem:[%s2056_s0 + $0x190] sm:$0xff]  ;;  %1109 = vst [vmem:[%s2057_s1 + $0x350] sm:$0xff] %v348_v24 }
  0x1a   :  { %v1120_v33 = vld [vmem:[%s2056_s0 + $0x380] sm:$0xff]  ;;  %1111 = vst [vmem:[%s2057_s1 + $0x160] sm:$0xff] %v356_v25  ;;  %v388_v35 = vxor.u32 2147483648, %v1118_v32  ;;  %v404_v37 = vxor.u32 2147483648, %v1122_v34  ;;  %v1124_v38 = vld [vmem:[%s2056_s0 + $0x390] sm:$0xff]  ;;  %1115 = vst [vmem:[%s2057_s1 + $0x170] sm:$0xff] %v372_v30 }
  0x1b   :  { %v396_v36 = vxor.u32 2147483648, %v1120_v33  ;;  %v1126_v39 = vld [vmem:[%s2056_s0 + $0x1a0] sm:$0xff]  ;;  %1113 = vst [vmem:[%s2057_s1 + $0x360] sm:$0xff] %v364_v29  ;;  %1117 = vst [vmem:[%s2057_s1 + $0x370] sm:$0xff] %v380_v31  ;;  %v412_v41 = vxor.u32 2147483648, %v1124_v38  ;;  %v1130_v44 = vld [vmem:[%s2056_s0 + $0x1b0] sm:$0xff] }
  0x1c   :  { %v1128_v40 = vld [vmem:[%s2056_s0 + $0x3a0] sm:$0xff]  ;;  %v420_v42 = vxor.u32 2147483648, %v1126_v39  ;;  %v1132_v45 = vld [vmem:[%s2056_s0 + $0x3b0] sm:$0xff]  ;;  %1119 = vst [vmem:[%s2057_s1 + $0x180] sm:$0xff] %v388_v35  ;;  %1123 = vst [vmem:[%s2057_s1 + $0x190] sm:$0xff] %v404_v37  ;;  %v436_v47 = vxor.u32 2147483648, %v1130_v44 }
  0x1d   :  { %v428_v43 = vxor.u32 2147483648, %v1128_v40  ;;  %v1134_v46 = vld [vmem:[%s2056_s0 + $0x1c0] sm:$0xff]  ;;  %1121 = vst [vmem:[%s2057_s1 + $0x380] sm:$0xff] %v396_v36  ;;  %v444_v48 = vxor.u32 2147483648, %v1132_v45  ;;  %v1138_v51 = vld [vmem:[%s2056_s0 + $0x1d0] sm:$0xff]  ;;  %1125 = vst [vmem:[%s2057_s1 + $0x390] sm:$0xff] %v412_v41 }
  0x1e   :  { %v452_v49 = vxor.u32 2147483648, %v1134_v46  ;;  %v1136_v50 = vld [vmem:[%s2056_s0 + $0x3c0] sm:$0xff]  ;;  %v1140_v52 = vld [vmem:[%s2056_s0 + $0x3d0] sm:$0xff]  ;;  %1127 = vst [vmem:[%s2057_s1 + $0x1a0] sm:$0xff] %v420_v42  ;;  %v468_v54 = vxor.u32 2147483648, %v1138_v51  ;;  %1131 = vst [vmem:[%s2057_s1 + $0x1b0] sm:$0xff] %v436_v47 }
  0x1f   :  { %1129 = vst [vmem:[%s2057_s1 + $0x3a0] sm:$0xff] %v428_v43  ;;  %v460_v53 = vxor.u32 2147483648, %v1136_v50  ;;  %v476_v55 = vxor.u32 2147483648, %v1140_v52  ;;  %v1142_v56 = vld [vmem:[%s2056_s0 + $0x1e0] sm:$0xff]  ;;  %v1146_v58 = vld [vmem:[%s2056_s0 + $0x1f0] sm:$0xff]  ;;  %1133 = vst [vmem:[%s2057_s1 + $0x3b0] sm:$0xff] %v444_v48 }
  0x20   :  { %v1144_v57 = vld [vmem:[%s2056_s0 + $0x3e0] sm:$0xff]  ;;  %1135 = vst [vmem:[%s2057_s1 + $0x1c0] sm:$0xff] %v452_v49  ;;  %v484_v59 = vxor.u32 2147483648, %v1142_v56  ;;  %v500_v61 = vxor.u32 2147483648, %v1146_v58  ;;  %v1148_v62 = vld [vmem:[%s2056_s0 + $0x3f0] sm:$0xff]  ;;  %v1150_v63 = vld [vmem:[%s2056_s0 + $0x8] sm:$0xff] }
  0x21   :  { %v492_v60 = vxor.u32 2147483648, %v1144_v57  ;;  %v1152_v0 = vld [vmem:[%s2056_s0 + $0x208] sm:$0xff]  ;;  %1137 = vst [vmem:[%s2057_s1 + $0x3c0] sm:$0xff] %v460_v53  ;;  %1139 = vst [vmem:[%s2057_s1 + $0x1d0] sm:$0xff] %v468_v54  ;;  %v508_v1 = vxor.u32 2147483648, %v1148_v62  ;;  %v516_v2 = vxor.u32 2147483648, %v1150_v63 }
  0x22   :  { %1141 = vst [vmem:[%s2057_s1 + $0x3d0] sm:$0xff] %v476_v55  ;;  %v524_v3 = vxor.u32 2147483648, %v1152_v0  ;;  %v1154_v4 = vld [vmem:[%s2056_s0 + $0x18] sm:$0xff]  ;;  %v1158_v6 = vld [vmem:[%s2056_s0 + $0x28] sm:$0xff]  ;;  %1143 = vst [vmem:[%s2057_s1 + $0x1e0] sm:$0xff] %v484_v59 }
  0x23   :  { %v1156_v5 = vld [vmem:[%s2056_s0 + $0x218] sm:$0xff]  ;;  %1145 = vst [vmem:[%s2057_s1 + $0x3e0] sm:$0xff] %v492_v60  ;;  %1147 = vst [vmem:[%s2057_s1 + $0x1f0] sm:$0xff] %v500_v61  ;;  %v532_v7 = vxor.u32 2147483648, %v1154_v4  ;;  %v548_v9 = vxor.u32 2147483648, %v1158_v6  ;;  %v1160_v10 = vld [vmem:[%s2056_s0 + $0x228] sm:$0xff] }
  0x24   :  { %v540_v8 = vxor.u32 2147483648, %v1156_v5  ;;  %v1162_v11 = vld [vmem:[%s2056_s0 + $0x38] sm:$0xff]  ;;  %1149 = vst [vmem:[%s2057_s1 + $0x3f0] sm:$0xff] %v508_v1  ;;  %1151 = vst [vmem:[%s2057_s1 + $0x8] sm:$0xff] %v516_v2  ;;  %v556_v13 = vxor.u32 2147483648, %v1160_v10  ;;  %v1166_v16 = vld [vmem:[%s2056_s0 + $0x48] sm:$0xff] }
  0x25   :  { %v1164_v12 = vld [vmem:[%s2056_s0 + $0x238] sm:$0xff]  ;;  %1153 = vst [vmem:[%s2057_s1 + $0x208] sm:$0xff] %v524_v3  ;;  %v564_v14 = vxor.u32 2147483648, %v1162_v11  ;;  %v1168_v17 = vld [vmem:[%s2056_s0 + $0x248] sm:$0xff]  ;;  %1155 = vst [vmem:[%s2057_s1 + $0x18] sm:$0xff] %v532_v7  ;;  %v580_v19 = vxor.u32 2147483648, %v1166_v16 }
  0x26   :  { %v572_v15 = vxor.u32 2147483648, %v1164_v12  ;;  %v1170_v18 = vld [vmem:[%s2056_s0 + $0x58] sm:$0xff]  ;;  %1157 = vst [vmem:[%s2057_s1 + $0x218] sm:$0xff] %v540_v8  ;;  %1159 = vst [vmem:[%s2057_s1 + $0x28] sm:$0xff] %v548_v9  ;;  %v588_v20 = vxor.u32 2147483648, %v1168_v17  ;;  %v1174_v23 = vld [vmem:[%s2056_s0 + $0x68] sm:$0xff] }
  0x27   :  { %v596_v21 = vxor.u32 2147483648, %v1170_v18  ;;  %v1172_v22 = vld [vmem:[%s2056_s0 + $0x258] sm:$0xff]  ;;  %v1176_v24 = vld [vmem:[%s2056_s0 + $0x268] sm:$0xff]  ;;  %1161 = vst [vmem:[%s2057_s1 + $0x228] sm:$0xff] %v556_v13  ;;  %1163 = vst [vmem:[%s2057_s1 + $0x38] sm:$0xff] %v564_v14  ;;  %v612_v26 = vxor.u32 2147483648, %v1174_v23 }
  0x28   :  { %1165 = vst [vmem:[%s2057_s1 + $0x238] sm:$0xff] %v572_v15  ;;  %v604_v25 = vxor.u32 2147483648, %v1172_v22  ;;  %v620_v27 = vxor.u32 2147483648, %v1176_v24  ;;  %v1178_v28 = vld [vmem:[%s2056_s0 + $0x78] sm:$0xff]  ;;  %v1182_v30 = vld [vmem:[%s2056_s0 + $0x88] sm:$0xff]  ;;  %1167 = vst [vmem:[%s2057_s1 + $0x48] sm:$0xff] %v580_v19 }
  0x29   :  { %v1180_v29 = vld [vmem:[%s2056_s0 + $0x278] sm:$0xff]  ;;  %1169 = vst [vmem:[%s2057_s1 + $0x248] sm:$0xff] %v588_v20  ;;  %1171 = vst [vmem:[%s2057_s1 + $0x58] sm:$0xff] %v596_v21  ;;  %v628_v31 = vxor.u32 2147483648, %v1178_v28  ;;  %v644_v33 = vxor.u32 2147483648, %v1182_v30  ;;  %v1184_v34 = vld [vmem:[%s2056_s0 + $0x288] sm:$0xff] }
  0x2a   :  { %v636_v32 = vxor.u32 2147483648, %v1180_v29  ;;  %v1186_v35 = vld [vmem:[%s2056_s0 + $0x98] sm:$0xff]  ;;  %1173 = vst [vmem:[%s2057_s1 + $0x258] sm:$0xff] %v604_v25  ;;  %1175 = vst [vmem:[%s2057_s1 + $0x68] sm:$0xff] %v612_v26  ;;  %v652_v37 = vxor.u32 2147483648, %v1184_v34  ;;  %v1190_v40 = vld [vmem:[%s2056_s0 + $0xa8] sm:$0xff] }
  0x2b   :  { %v1188_v36 = vld [vmem:[%s2056_s0 + $0x298] sm:$0xff]  ;;  %1177 = vst [vmem:[%s2057_s1 + $0x268] sm:$0xff] %v620_v27  ;;  %v660_v38 = vxor.u32 2147483648, %v1186_v35  ;;  %v1192_v41 = vld [vmem:[%s2056_s0 + $0x2a8] sm:$0xff]  ;;  %1179 = vst [vmem:[%s2057_s1 + $0x78] sm:$0xff] %v628_v31  ;;  %v676_v43 = vxor.u32 2147483648, %v1190_v40 }
  0x2c   :  { %v668_v39 = vxor.u32 2147483648, %v1188_v36  ;;  %v1194_v42 = vld [vmem:[%s2056_s0 + $0xb8] sm:$0xff]  ;;  %1181 = vst [vmem:[%s2057_s1 + $0x278] sm:$0xff] %v636_v32  ;;  %1183 = vst [vmem:[%s2057_s1 + $0x88] sm:$0xff] %v644_v33  ;;  %v684_v44 = vxor.u32 2147483648, %v1192_v41  ;;  %v1198_v47 = vld [vmem:[%s2056_s0 + $0xc8] sm:$0xff] }
  0x2d   :  { %v692_v45 = vxor.u32 2147483648, %v1194_v42  ;;  %v1196_v46 = vld [vmem:[%s2056_s0 + $0x2b8] sm:$0xff]  ;;  %v1200_v48 = vld [vmem:[%s2056_s0 + $0x2c8] sm:$0xff]  ;;  %1185 = vst [vmem:[%s2057_s1 + $0x288] sm:$0xff] %v652_v37  ;;  %1187 = vst [vmem:[%s2057_s1 + $0x98] sm:$0xff] %v660_v38  ;;  %v708_v50 = vxor.u32 2147483648, %v1198_v47 }
  0x2e   :  { %1189 = vst [vmem:[%s2057_s1 + $0x298] sm:$0xff] %v668_v39  ;;  %v700_v49 = vxor.u32 2147483648, %v1196_v46  ;;  %v716_v51 = vxor.u32 2147483648, %v1200_v48  ;;  %v1202_v52 = vld [vmem:[%s2056_s0 + $0xd8] sm:$0xff]  ;;  %v1206_v54 = vld [vmem:[%s2056_s0 + $0xe8] sm:$0xff]  ;;  %1191 = vst [vmem:[%s2057_s1 + $0xa8] sm:$0xff] %v676_v43 }
  0x2f   :  { %v1204_v53 = vld [vmem:[%s2056_s0 + $0x2d8] sm:$0xff]  ;;  %1193 = vst [vmem:[%s2057_s1 + $0x2a8] sm:$0xff] %v684_v44  ;;  %1195 = vst [vmem:[%s2057_s1 + $0xb8] sm:$0xff] %v692_v45  ;;  %v724_v55 = vxor.u32 2147483648, %v1202_v52  ;;  %v740_v57 = vxor.u32 2147483648, %v1206_v54  ;;  %v1208_v58 = vld [vmem:[%s2056_s0 + $0x2e8] sm:$0xff] }
  0x30   :  { %v732_v56 = vxor.u32 2147483648, %v1204_v53  ;;  %v1210_v59 = vld [vmem:[%s2056_s0 + $0xf8] sm:$0xff]  ;;  %1197 = vst [vmem:[%s2057_s1 + $0x2b8] sm:$0xff] %v700_v49  ;;  %1199 = vst [vmem:[%s2057_s1 + $0xc8] sm:$0xff] %v708_v50  ;;  %v748_v61 = vxor.u32 2147483648, %v1208_v58  ;;  %v1214_v0 = vld [vmem:[%s2056_s0 + $0x108] sm:$0xff] }
  0x31   :  { %v1212_v60 = vld [vmem:[%s2056_s0 + $0x2f8] sm:$0xff]  ;;  %1201 = vst [vmem:[%s2057_s1 + $0x2c8] sm:$0xff] %v716_v51  ;;  %v756_v62 = vxor.u32 2147483648, %v1210_v59  ;;  %v1216_v1 = vld [vmem:[%s2056_s0 + $0x308] sm:$0xff]  ;;  %1203 = vst [vmem:[%s2057_s1 + $0xd8] sm:$0xff] %v724_v55  ;;  %v772_v3 = vxor.u32 2147483648, %v1214_v0 }
  0x32   :  { %v764_v63 = vxor.u32 2147483648, %v1212_v60  ;;  %v1218_v2 = vld [vmem:[%s2056_s0 + $0x118] sm:$0xff]  ;;  %1205 = vst [vmem:[%s2057_s1 + $0x2d8] sm:$0xff] %v732_v56  ;;  %1207 = vst [vmem:[%s2057_s1 + $0xe8] sm:$0xff] %v740_v57  ;;  %v780_v4 = vxor.u32 2147483648, %v1216_v1  ;;  %v1222_v7 = vld [vmem:[%s2056_s0 + $0x128] sm:$0xff] }
  0x33   :  { %v788_v5 = vxor.u32 2147483648, %v1218_v2  ;;  %v1220_v6 = vld [vmem:[%s2056_s0 + $0x318] sm:$0xff]  ;;  %v1224_v8 = vld [vmem:[%s2056_s0 + $0x328] sm:$0xff]  ;;  %1209 = vst [vmem:[%s2057_s1 + $0x2e8] sm:$0xff] %v748_v61  ;;  %1211 = vst [vmem:[%s2057_s1 + $0xf8] sm:$0xff] %v756_v62  ;;  %v804_v10 = vxor.u32 2147483648, %v1222_v7 }
  0x34   :  { %1213 = vst [vmem:[%s2057_s1 + $0x2f8] sm:$0xff] %v764_v63  ;;  %v796_v9 = vxor.u32 2147483648, %v1220_v6  ;;  %v812_v11 = vxor.u32 2147483648, %v1224_v8  ;;  %v1226_v12 = vld [vmem:[%s2056_s0 + $0x138] sm:$0xff]  ;;  %v1230_v14 = vld [vmem:[%s2056_s0 + $0x148] sm:$0xff]  ;;  %1215 = vst [vmem:[%s2057_s1 + $0x108] sm:$0xff] %v772_v3 }
  0x35   :  { %v1228_v13 = vld [vmem:[%s2056_s0 + $0x338] sm:$0xff]  ;;  %1217 = vst [vmem:[%s2057_s1 + $0x308] sm:$0xff] %v780_v4  ;;  %1219 = vst [vmem:[%s2057_s1 + $0x118] sm:$0xff] %v788_v5  ;;  %v820_v15 = vxor.u32 2147483648, %v1226_v12  ;;  %v836_v17 = vxor.u32 2147483648, %v1230_v14  ;;  %v1232_v18 = vld [vmem:[%s2056_s0 + $0x348] sm:$0xff] }
  0x36   :  { %v828_v16 = vxor.u32 2147483648, %v1228_v13  ;;  %v1234_v19 = vld [vmem:[%s2056_s0 + $0x158] sm:$0xff]  ;;  %1221 = vst [vmem:[%s2057_s1 + $0x318] sm:$0xff] %v796_v9  ;;  %1223 = vst [vmem:[%s2057_s1 + $0x128] sm:$0xff] %v804_v10  ;;  %v844_v21 = vxor.u32 2147483648, %v1232_v18  ;;  %v1238_v24 = vld [vmem:[%s2056_s0 + $0x168] sm:$0xff] }
  0x37   :  { %v1236_v20 = vld [vmem:[%s2056_s0 + $0x358] sm:$0xff]  ;;  %1225 = vst [vmem:[%s2057_s1 + $0x328] sm:$0xff] %v812_v11  ;;  %v852_v22 = vxor.u32 2147483648, %v1234_v19  ;;  %v1240_v25 = vld [vmem:[%s2056_s0 + $0x368] sm:$0xff]  ;;  %1227 = vst [vmem:[%s2057_s1 + $0x138] sm:$0xff] %v820_v15  ;;  %v868_v27 = vxor.u32 2147483648, %v1238_v24 }
  0x38   :  { %v860_v23 = vxor.u32 2147483648, %v1236_v20  ;;  %v1242_v26 = vld [vmem:[%s2056_s0 + $0x178] sm:$0xff]  ;;  %1229 = vst [vmem:[%s2057_s1 + $0x338] sm:$0xff] %v828_v16  ;;  %1231 = vst [vmem:[%s2057_s1 + $0x148] sm:$0xff] %v836_v17  ;;  %v876_v28 = vxor.u32 2147483648, %v1240_v25  ;;  %v1246_v31 = vld [vmem:[%s2056_s0 + $0x188] sm:$0xff] }
  0x39   :  { %v884_v29 = vxor.u32 2147483648, %v1242_v26  ;;  %v1244_v30 = vld [vmem:[%s2056_s0 + $0x378] sm:$0xff]  ;;  %v1248_v32 = vld [vmem:[%s2056_s0 + $0x388] sm:$0xff]  ;;  %1233 = vst [vmem:[%s2057_s1 + $0x348] sm:$0xff] %v844_v21  ;;  %1235 = vst [vmem:[%s2057_s1 + $0x158] sm:$0xff] %v852_v22  ;;  %v900_v34 = vxor.u32 2147483648, %v1246_v31 }
  0x3a   :  { %1237 = vst [vmem:[%s2057_s1 + $0x358] sm:$0xff] %v860_v23  ;;  %v892_v33 = vxor.u32 2147483648, %v1244_v30  ;;  %v908_v35 = vxor.u32 2147483648, %v1248_v32  ;;  %v1250_v36 = vld [vmem:[%s2056_s0 + $0x198] sm:$0xff]  ;;  %v1254_v38 = vld [vmem:[%s2056_s0 + $0x1a8] sm:$0xff]  ;;  %1239 = vst [vmem:[%s2057_s1 + $0x168] sm:$0xff] %v868_v27 }
  0x3b   :  { %v1252_v37 = vld [vmem:[%s2056_s0 + $0x398] sm:$0xff]  ;;  %1241 = vst [vmem:[%s2057_s1 + $0x368] sm:$0xff] %v876_v28  ;;  %1243 = vst [vmem:[%s2057_s1 + $0x178] sm:$0xff] %v884_v29  ;;  %v916_v39 = vxor.u32 2147483648, %v1250_v36  ;;  %v932_v41 = vxor.u32 2147483648, %v1254_v38  ;;  %v1256_v42 = vld [vmem:[%s2056_s0 + $0x3a8] sm:$0xff] }
  0x3c   :  { %v924_v40 = vxor.u32 2147483648, %v1252_v37  ;;  %v1258_v43 = vld [vmem:[%s2056_s0 + $0x1b8] sm:$0xff]  ;;  %1245 = vst [vmem:[%s2057_s1 + $0x378] sm:$0xff] %v892_v33  ;;  %1247 = vst [vmem:[%s2057_s1 + $0x188] sm:$0xff] %v900_v34  ;;  %v940_v45 = vxor.u32 2147483648, %v1256_v42  ;;  %v1262_v48 = vld [vmem:[%s2056_s0 + $0x1c8] sm:$0xff] }
  0x3d   :  { %v1260_v44 = vld [vmem:[%s2056_s0 + $0x3b8] sm:$0xff]  ;;  %1249 = vst [vmem:[%s2057_s1 + $0x388] sm:$0xff] %v908_v35  ;;  %v948_v46 = vxor.u32 2147483648, %v1258_v43  ;;  %v1264_v49 = vld [vmem:[%s2056_s0 + $0x3c8] sm:$0xff]  ;;  %1251 = vst [vmem:[%s2057_s1 + $0x198] sm:$0xff] %v916_v39  ;;  %v964_v51 = vxor.u32 2147483648, %v1262_v48 }
  0x3e   :  { %v956_v47 = vxor.u32 2147483648, %v1260_v44  ;;  %v1266_v50 = vld [vmem:[%s2056_s0 + $0x1d8] sm:$0xff]  ;;  %1253 = vst [vmem:[%s2057_s1 + $0x398] sm:$0xff] %v924_v40  ;;  %1255 = vst [vmem:[%s2057_s1 + $0x1a8] sm:$0xff] %v932_v41  ;;  %v972_v52 = vxor.u32 2147483648, %v1264_v49  ;;  %v1270_v55 = vld [vmem:[%s2056_s0 + $0x1e8] sm:$0xff] }
  0x3f   :  { %v980_v53 = vxor.u32 2147483648, %v1266_v50  ;;  %v1268_v54 = vld [vmem:[%s2056_s0 + $0x3d8] sm:$0xff]  ;;  %v1272_v56 = vld [vmem:[%s2056_s0 + $0x3e8] sm:$0xff]  ;;  %1257 = vst [vmem:[%s2057_s1 + $0x3a8] sm:$0xff] %v940_v45  ;;  %1259 = vst [vmem:[%s2057_s1 + $0x1b8] sm:$0xff] %v948_v46  ;;  %v996_v58 = vxor.u32 2147483648, %v1270_v55 }
  0x40   :  { %1261 = vst [vmem:[%s2057_s1 + $0x3b8] sm:$0xff] %v956_v47  ;;  %v988_v57 = vxor.u32 2147483648, %v1268_v54  ;;  %v1004_v59 = vxor.u32 2147483648, %v1272_v56  ;;  %v1274_v60 = vld [vmem:[%s2056_s0 + $0x1f8] sm:$0xff]  ;;  %1263 = vst [vmem:[%s2057_s1 + $0x1c8] sm:$0xff] %v964_v51 }
  0x41   :  { %v1276_v61 = vld [vmem:[%s2056_s0 + $0x3f8] sm:$0xff]  ;;  %1265 = vst [vmem:[%s2057_s1 + $0x3c8] sm:$0xff] %v972_v52  ;;  %1267 = vst [vmem:[%s2057_s1 + $0x1d8] sm:$0xff] %v980_v53  ;;  %v1012_v62 = vxor.u32 2147483648, %v1274_v60 }
  0x42   :  { %v1020_v63 = vxor.u32 2147483648, %v1276_v61  ;;  %1269 = vst [vmem:[%s2057_s1 + $0x3d8] sm:$0xff] %v988_v57  ;;  %1271 = vst [vmem:[%s2057_s1 + $0x1e8] sm:$0xff] %v996_v58 }
  0x43   :  { %1273 = vst [vmem:[%s2057_s1 + $0x3e8] sm:$0xff] %v1004_v59  ;;  %1275 = vst [vmem:[%s2057_s1 + $0x1f8] sm:$0xff] %v1012_v62 }
  0x44   :  { %1277 = vst [vmem:[%s2057_s1 + $0x3f8] sm:$0xff] %v1020_v63 }

// kernel: deep_rot_inv_dist_fea_forward.2
= control target key start
LH: loop header
LB: loop body
LE: loop exit
PB: predicated region body
PF: predicated region fallthrough
CT: control target
= control target key end

     0   :  { %s741_s12 = smov 0   ;;  %s743_s13 = smov 0   ;;  %s836_s0 = inlined_call_operand.vmem [shape: f32[2,12,256], index: 0, kind: input, shape index: {}]   ;;  %s837_s1 = inlined_call_operand.vmem [shape: f32[10,6], index: 1, kind: input, shape index: {}]   ;;  %s838_s2 = inlined_call_operand.vmem [shape: f32[10,1], index: 2, kind: input, shape index: {}]   ;;  %s839_s3 = inlined_call_operand.vmem [shape: bf16[2,32,256], index: 3, kind: output, shape index: {}]  }
   0x1   :  { %s745_s14 = smov 0  }
   0x2 LB: > { %s25_s15 = sadd.s32 1, %s713_s13  ;;  %p633_p0 = scmp.ge.s32.totalorder %s717_s14, 1  ;;  %s717_s14 = sphi %s745_s14, %s13_s14   ;;  %s713_s13 = sphi %s743_s13, %s841_s13   ;;  %s709_s12 = sphi %s741_s12, %s840_s12  }
   0x3   : > { %p27_p1 = scmp.ge.s32.totalorder %s25_s15, 2  ;;  %p158_p2 = scmp.lt.s32.totalorder %s717_s14, 3 }
   0x5   : > { %s843_s15 = smov (%p27_p1, %s25_s15), 0  ;;  %p159_p3 = pnand %p633_p0, %p158_p2 }
   0x6   : > { %p191_p4 = scmp.lt.s32.totalorder (!%p159_p3), %s709_s12, 1  ;;  %v719_v0 = vmov (!%p159_p3), 0.0   ;;  %v381_v1 = vld [vmem:[%s838_s2] sm:$0xff] (!%p159_p3)  ;;  %v720_v2 = vmov (!%p159_p3), 0   ;;  %v382_v3 = vld [vmem:[%s838_s2 + $0x8] sm:$0x3] (!%p159_p3) }
   0x7   : > { %162 = sbr.rel (%p159_p3) target bundleno = 285 (0x11d), region = 32  ;;  %471 = vmatprep.mubr.f32.mxu0 (!%p159_p3), %v719_v0  ;;  %477 = vmatprep.mubr.f32.mxu1 (!%p159_p3), %v719_v0  ;;  %vm373_vm0 = vcmask (!%p159_p3), 1043456   ;;  %vm364_vm7 = vcmask (!%p159_p3), 1040384   ;;  %vm367_vm8 = vcmask (!%p159_p3), 1041408   ;;  %vm370_vm9 = vcmask (!%p159_p3), 1042432  }
   0x8   : > { %682 = vset.pattern.permute.xlu0 (!%p159_p3), %v720_v2  ;;  %vm376_vm10 = vcmask (!%p159_p3), 1044480   ;;  %vm400_vm11 = vcmask (!%p159_p3), 1045504  }
   0x9   : > { %385 = vperm.xlu0 (!%p159_p3), %682, %v381_v1  }
   0xd   : > { %390 = vperm.xlu0 (!%p159_p3), %682, %v382_v3  }
   0xe   : > { %s845_s12 = smov (!%p191_p4, %s709_s12), 1 }
   0xf   : > { %s648_s18 = sshll.u32 %s845_s12, 5 }
  0x10   : > { %s198_s21 = scalar_lea.vmem %s836_s0, %s648_s18  ;;  %s775_s26 = scalar_lea.vmem %s839_s3, %s648_s18 }
  0x11   : > { %v210_v4 = vld [vmem:[%s198_s21] sm:$0xff]  ;;  %v211_v5 = vld [vmem:[%s198_s21 + $0x8] sm:$0xff]  ;;  %v212_v6 = vld [vmem:[%s198_s21 + $0x10] sm:$0xf] }
  0x12   : > { %v213_v7 = vld [vmem:[%s198_s21 + $0x18] sm:$0xf]  ;;  %v217_v8 = vrot.slane %v211_v5, 1  ;;  %v259_v9 = vrot.slane %v211_v5, 2  ;;  %v298_v10 = vrot.slane %v210_v4, 3  ;;  %v299_v11 = vrot.slane %v211_v5, 3 }
  0x13   : > { %v225_v12 = vrot.slane %v213_v7, 1  ;;  %v265_v13 = vrot.slane %v213_v7, 2  ;;  %v304_v14 = vrot.slane %v212_v6, 3  ;;  %v305_v15 = vrot.slane %v213_v7, 3 }
  0x14   : > { %v221_v16 = vsub.f32 %v211_v5, %v217_v8  ;;  %v263_v17 = vsub.f32 %v211_v5, %v259_v9  ;;  %v302_v18 = vsub.f32 %v210_v4, %v298_v10  ;;  %v303_v19 = vsub.f32 %v211_v5, %v299_v11 }
  0x15   : > { %v229_v20 = vsub.f32 %v213_v7, %v225_v12  ;;  %v269_v21 = vsub.f32 %v213_v7, %v265_v13  ;;  %v309_v22 = vsub.f32 %v213_v7, %v305_v15  ;;  %v512_v23 = vsel %vm373_vm0, %v212_v6, 0.0 }
  0x16   : > { %v231_v24 = vmul.f32 %v221_v16, %v221_v16  ;;  %v271_v25 = vmul.f32 %v263_v17, %v263_v17  ;;  %v311_v26 = vmul.f32 %v303_v19, %v303_v19  ;;  %v513_v27 = vsel %vm373_vm0, %v213_v7, 0.0 }
  0x17   : > { %v241_v28 = vmul.f32 %v229_v20, %v229_v20  ;;  %v281_v29 = vmul.f32 %v269_v21, %v269_v21  ;;  %v321_v30 = vmul.f32 %v309_v22, %v309_v22  ;;  %v652_v31 = vpack.c.bf16 %v211_v5, %v210_v4 }
  0x18   : > { %v235_v32 = vrot.slane %v231_v24, 4  ;;  %v275_v33 = vrot.slane %v271_v25, 4  ;;  %v315_v34 = vrot.slane %v311_v26, 4  ;;  %v653_v35 = vpack.c.bf16 %v513_v27, %v512_v23 }
  0x19   : > { %540 = vst [vmem:[%s775_s26 + $0x10] sm:$0xff] %v652_v31  ;;  %v216_v36 = vrot.slane %v210_v4, 1  ;;  %v224_v37 = vrot.slane %v212_v6, 1  ;;  %v258_v38 = vrot.slane %v210_v4, 2  ;;  %v264_v39 = vrot.slane %v212_v6, 2 }
  0x1a   : > { %v239_v40 = vadd.f32 %v235_v32, %v231_v24  ;;  %v279_v41 = vadd.f32 %v275_v33, %v271_v25  ;;  %v319_v42 = vadd.f32 %v315_v34, %v311_v26  ;;  %541 = vst [vmem:[%s775_s26 + $0x18] sm:$0xff] %v653_v35  ;;  %v308_v52 = vsub.f32 %v212_v6, %v304_v14 }
  0x1b   : > { %v220_v43 = vsub.f32 %v210_v4, %v216_v36  ;;  %v228_v44 = vsub.f32 %v212_v6, %v224_v37  ;;  %v262_v45 = vsub.f32 %v210_v4, %v258_v38  ;;  %v268_v49 = vsub.f32 %v212_v6, %v264_v39 }
  0x1c   : > { %v243_v46 = vadd.f32 %v241_v28, %v239_v40  ;;  %v283_v47 = vadd.f32 %v281_v29, %v279_v41  ;;  %v323_v48 = vadd.f32 %v321_v30, %v319_v42  ;;  %v310_v53 = vmul.f32 %v302_v18, %v302_v18 }
  0x1d   : > { %v230_v50 = vmul.f32 %v220_v43, %v220_v43  ;;  %v270_v51 = vmul.f32 %v262_v45, %v262_v45  ;;  %v240_v54 = vmul.f32 %v228_v44, %v228_v44  ;;  %v280_v55 = vmul.f32 %v268_v49, %v268_v49 }
  0x1e   : > { %683 = vrsqrt.f32 %v243_v46  ;;  %v314_v58 = vrot.slane %v310_v53, 4  ;;  %v320_v59 = vmul.f32 %v308_v52, %v308_v52  ;;  %vm253_vm1 = vcmp.eq.f32.partialorder %v243_v46, inf  ;;  %v380_v52 = vld [vmem:[%s837_s1 + $0x8] sm:$0x3] }
  0x1f   : > { %685 = vrsqrt.f32 %v283_v47  ;;  %v234_v56 = vrot.slane %v230_v50, 4  ;;  %v274_v57 = vrot.slane %v270_v51, 4  ;;  %vm255_vm2 = vcmp.eq.f32.partialorder %v243_v46, 0.0 }
  0x20   : > { %687 = vrsqrt.f32 %v323_v48  ;;  %v318_v62 = vadd.f32 %v314_v58, %v310_v53  ;;  %v256_v3 = vand.u32 2147483648, %v243_v46  ;;  %vm293_vm3 = vcmp.eq.f32.partialorder %v283_v47, inf }
  0x21   : > { %v238_v60 = vadd.f32 %v234_v56, %v230_v50  ;;  %v278_v61 = vadd.f32 %v274_v57, %v270_v51  ;;  %v296_v6 = vand.u32 2147483648, %v283_v47  ;;  %vm295_vm4 = vcmp.eq.f32.partialorder %v283_v47, 0.0  ;;  %v379_v51 = vld [vmem:[%s837_s1] sm:$0xff] }
  0x22   : > { %v782_v1 = vadd.f32 %v320_v59, %v318_v62  ;;  %vm333_vm5 = vcmp.eq.f32.partialorder %v323_v48, inf  ;;  %v336_v9 = vand.u32 2147483648, %v323_v48  ;;  %vm335_vm6 = vcmp.eq.f32.partialorder %v323_v48, 0.0 }
  0x23   : > { %v242_v63 = vadd.f32 %v240_v54, %v238_v60  ;;  %v780_v0 = vadd.f32 %v280_v55, %v278_v61 }
  0x24   : > { %v329_v33 = vand.u32 2147483648, %v782_v1 }
  0x25   : > { %689 = vrsqrt.f32 %v242_v63  ;;  %vm246_vm12 = vcmp.eq.f32.partialorder %v242_v63, inf  ;;  %vm248_vm13 = vcmp.eq.f32.partialorder %v242_v63, 0.0  ;;  %v249_v25 = vand.u32 2147483648, %v242_v63 }
  0x26   : > { %691 = vrsqrt.f32 %v780_v0  ;;  %vm286_vm14 = vcmp.eq.f32.partialorder %v780_v0, inf  ;;  %vm288_vm15 = vcmp.eq.f32.partialorder %v780_v0, 0.0  ;;  %v289_v29 = vand.u32 2147483648, %v780_v0 }
  0x27   : > { %693 = vrsqrt.f32 %v782_v1 }
  0x28   : > { %v684_v2 = vpop.eup %683 }
  0x29   : > { %v686_v4 = vpop.eup %685  ;;  %v252_v5 = vmul.f32 %v684_v2, %v243_v46 }
  0x2a   : > { %v688_v7 = vpop.eup %687  ;;  %v292_v8 = vmul.f32 %v686_v4, %v283_v47 }
  0x2b   : > { %v254_v10 = vsel %vm253_vm1, %v243_v46, %v252_v5  ;;  %v332_v11 = vmul.f32 %v688_v7, %v323_v48  ;;  %vm326_vm1 = vcmp.eq.f32.partialorder %v782_v1, inf }
  0x2c   : > { %v257_v12 = vsel %vm255_vm2, %v256_v3, %v254_v10  ;;  %v294_v13 = vsel %vm293_vm3, %v283_v47, %v292_v8  ;;  %vm328_vm2 = vcmp.eq.f32.partialorder %v782_v1, 0.0  ;;  %vm393_vm3 = vcmask 48128  }
  0x2d   : > { %v297_v14 = vsel %vm295_vm4, %v296_v6, %v294_v13  ;;  %v334_v15 = vsel %vm333_vm5, %v323_v48, %v332_v11  ;;  %v353_v18 = vrot.slane %v257_v12, 6  ;;  %v361_v21 = vrot.slane %v257_v12, 5 }
  0x2e   : > { %v337_v16 = vsel %vm335_vm6, %v336_v9, %v334_v15  ;;  %v341_v17 = vrot.slane %v297_v14, 7  ;;  %v357_v20 = vrot.slane %v297_v14, 5 }
  0x2f   : > { %v347_v19 = vrot.slane %v337_v16, 6  ;;  %v690_v23 = vpop.eup %689 }
  0x30   : > { %v366_v22 = vsel %vm364_vm7, %v257_v12, %v341_v17  ;;  %v692_v26 = vpop.eup %691  ;;  %v245_v28 = vmul.f32 %v690_v23, %v242_v63 }
  0x31   : > { %v369_v24 = vsel %vm367_vm8, %v366_v22, %v347_v19  ;;  %v694_v30 = vpop.eup %693  ;;  %v285_v32 = vmul.f32 %v692_v26, %v780_v0 }
  0x32   : > { %v372_v27 = vsel %vm370_vm9, %v369_v24, %v353_v18  ;;  %v247_v35 = vsel %vm246_vm12, %v242_v63, %v245_v28  ;;  %v325_v36 = vmul.f32 %v694_v30, %v782_v1 }
  0x33   : > { %v375_v31 = vsel %vm373_vm0, %v372_v27, %v357_v20  ;;  %v250_v37 = vsel %vm248_vm13, %v249_v25, %v247_v35  ;;  %v287_v38 = vsel %vm286_vm14, %v780_v0, %v285_v32 }
  0x34   : > { %v378_v34 = vsel %vm376_vm10, %v375_v31, %v361_v21  ;;  %v290_v39 = vsel %vm288_vm15, %v289_v29, %v287_v38  ;;  %v327_v40 = vsel %vm326_vm1, %v782_v1, %v325_v36  ;;  %v352_v43 = vrot.slane %v250_v37, 6 }
  0x35   : > { %638 = vmatprep.subr.msk.mxu0 %vm400_vm11, %v378_v34  ;;  %654 = vmatprep.subr.msk.mxu1 %vm400_vm11, %v378_v34  ;;  %v330_v41 = vsel %vm328_vm2, %v329_v33, %v327_v40  ;;  %v340_v42 = vrot.slane %v290_v39, 7  ;;  %v356_v45 = vrot.slane %v290_v39, 5  ;;  %v360_v46 = vrot.slane %v250_v37, 5 }
  0x36   : > { %v346_v44 = vrot.slane %v330_v41, 6 }
  0x37   : > { %v365_v47 = vsel %vm364_vm7, %v250_v37, %v340_v42 }
  0x38   : > { %v368_v48 = vsel %vm367_vm8, %v365_v47, %v346_v44 }
  0x39   : > { %v371_v49 = vsel %vm370_vm9, %v368_v48, %v352_v43 }
  0x3a   : > { %v374_v50 = vsel %vm373_vm0, %v371_v49, %v356_v45 }
  0x3b   : > { %v377_v53 = vsel %vm376_vm10, %v374_v50, %v360_v46 }
  0x3c   : > { %639 = vmatpush1.msk.msra.mxu0 %vm400_vm11, %v377_v53  ;;  %655 = vmatpush1.msk.msra.mxu1 %vm400_vm11, %v377_v53 }
  0x3d   : > { %640 = vmatmul.mubr.msk.f32.vlgmr.msra.gmra.mrb[0].mxu0 %vm393_vm3, %v379_v51  ;;  %641 = vmatmul.mubr.msk.f32.vlgmr.msra.gmra.mrb[0].mxu1 %vm393_vm3, %v380_v52 }
  0x88   : > { %v386_v54 = vpop.permute.xlu0 %385 }
  0x8c   : > { %v391_v55 = vpop.permute.xlu0 %390 }
 0x110   : > { %v473_v56 = vpop.f32.mrb[0].mxu0  ;;  %v479_v57 = vpop.f32.mrb[0].mxu1 }
 0x111   : > { %v474_v58 = vadd.f32 %v473_v56, %v386_v54  ;;  %v480_v59 = vadd.f32 %v479_v57, %v391_v55  ;;  %v475_v60 = vpop.f32.mrb[1].mxu0  ;;  %v481_v61 = vpop.f32.mrb[1].mxu1 }
 0x112   : > { %v476_v62 = vadd.f32 %v475_v60, %v386_v54  ;;  %v482_v63 = vadd.f32 %v481_v61, %v391_v55 }
 0x113   : > { %vm484_vm0 = vcmp.gt.f32.partialorder %v474_v58, 0.0  ;;  %v488_v0 = vmul.f32 0.2, %v474_v58  ;;  %vm486_vm4 = vcmp.gt.f32.partialorder %v480_v59, 0.0  ;;  %v490_v1 = vmul.f32 0.2, %v480_v59 }
 0x114   : > { %vm485_vm5 = vcmp.gt.f32.partialorder %v476_v62, 0.0  ;;  %v489_v2 = vmul.f32 0.2, %v476_v62  ;;  %vm487_vm6 = vcmp.gt.f32.partialorder %v482_v63, 0.0  ;;  %v491_v3 = vmul.f32 0.2, %v482_v63 }
 0x115   : > { %v492_v4 = vsel %vm484_vm0, %v474_v58, %v488_v0  ;;  %v494_v5 = vsel %vm486_vm4, %v480_v59, %v490_v1 }
 0x116   : > { %v500_v6 = vrot.slane %v492_v4, 2  ;;  %v502_v7 = vrot.slane %v494_v5, 2  ;;  %v493_v8 = vsel %vm485_vm5, %v476_v62, %v489_v2  ;;  %v495_v9 = vsel %vm487_vm6, %v482_v63, %v491_v3 }
 0x117   : > { %v501_v10 = vrot.slane %v493_v8, 2  ;;  %v504_v11 = vrot.slane %v495_v9, 2 }
 0x118   : > { %v510_v12 = vsel %vm400_vm11, %v377_v53, %v500_v6  ;;  %v503_v13 = vsel %vm400_vm11, %v500_v6, %v502_v7 }
 0x119   : > { %v511_v14 = vsel %vm400_vm11, %v378_v34, %v501_v10  ;;  %v505_v15 = vsel %vm400_vm11, %v501_v10, %v504_v11 }
 0x11a   : > { %v650_v16 = vpack.c.bf16 %v511_v14, %v510_v12  ;;  %v651_v17 = vpack.c.bf16 %v505_v15, %v503_v13 }
 0x11c   : > { %538 = vst [vmem:[%s775_s26] sm:$0xff] %v650_v16  ;;  %539 = vst [vmem:[%s775_s26 + $0x8] sm:$0xff] %v651_v17 }
 0x11d PF: > { %s13_s14 = sadd.s32 1, %s717_s14   ;;  %s840_s12 = smov %s713_s13 }
 0x11e   : > { %p10_p5 = scmp.ge.s32.totalorder %s13_s14, 4   ;;  %s841_s13 = smov %s843_s15 }
 0x120   :  { %12 = sbr.rel (!%p10_p5) target bundleno = 2 (0x2), region = 62 }

// kernel: deep_rot_inv_dist_fea_forward.3
= control target key start
LH: loop header
LB: loop body
LE: loop exit
PB: predicated region body
PF: predicated region fallthrough
CT: control target
= control target key end

     0   :  { %s5147_s18 = smov 0   ;;  %s5149_s19 = smov 0   ;;  %s8298_s0 = inlined_call_operand.vmem [shape: s32[2,1,2048], index: 0, kind: input, shape index: {}]   ;;  %s8299_s1 = inlined_call_operand.vmem [shape: bf16[2,32,256], index: 1, kind: input, shape index: {}, may-alias: {1,2}]   ;;  %s8300_s2 = inlined_call_operand.vmem [shape: bf16[2,32,256], index: 2, kind: input, shape index: {}, may-alias: {1,2}]   ;;  %s8301_s3 = inlined_call_operand.vmem [shape: bf16[16,48], index: 3, kind: input, shape index: {}]   ;;  %s8302_s4 = inlined_call_operand.vmem [shape: f32[16,1], index: 4, kind: input, shape index: {}]   ;;  %s8303_s5 = inlined_call_operand.vmem [shape: f32[2,64,2048], index: 5, kind: output, shape index: {}]  }
   0x1   :  { %s5151_s20 = smov 0   ;;  %s5153_s21 = smov 0  }
   0x2   :  { %s5155_s22 = smov 0   ;;  %s5157_s23 = smov 0  }
   0x3   :  { %s5159_s24 = smov 0  }
   0x4 LB: > { %s24_s25 = sadd.s32 1, %s5105_s22  ;;  %s27_s26 = sadd.s32 1, %s5109_s23  ;;  %s5113_s24 = sphi %s5159_s24, %s15_s24   ;;  %s5109_s23 = sphi %s5157_s23, %s8419_s23   ;;  %s5105_s22 = sphi %s5155_s22, %s8418_s22   ;;  %s5101_s21 = sphi %s5153_s21, %s8417_s21   ;;  %s5097_s20 = sphi %s5151_s20, %s8416_s20   ;;  %s5093_s19 = sphi %s5149_s19, %s8415_s19   ;;  %s5089_s18 = sphi %s5147_s18, %s8414_s18  }
   0x5   : > { %p25_p0 = scmp.ge.s32.totalorder %s24_s25, 2  ;;  %s4127_s27 = sadd.s32 4294967295, %s5113_s24  }
   0x6   : > { %p97_p1 = scmp.ne.s32.totalorder %s5093_s19, %s5089_s18  ;;  %p98_p2 = scmp.eq.s32.totalorder %s5113_s24, 0 }
   0x7   : > { %s8421_s25 = smov (%p25_p0, %s24_s25), 0  ;;  %s8423_s26 = smov (!%p25_p0, %s27_s26), %s5109_s23 }
   0x8   : > { %p29_p3 = scmp.ge.s32.totalorder %s8423_s26, 2  ;;  %p171_p4 = scmp.eq.s32.totalorder %s4127_s27, 3 }
   0x9   : > { %s86_s28 = ssub.s32 %s5105_s22, %s8421_s25  ;;  %p99_p5 = por %p98_p2, %p97_p1 }
   0xa   : > { %s8425_s26 = smov (%p29_p3, %s8423_s26), 0  ;;  %p5195_p6 = por %p171_p4, %p97_p1 }
   0xb   : > { %s85_s30 = ssub.s32 %s5109_s23, %s8425_s26  ;;  %s90_s7 = sadd.s32 1, %s5093_s19 }
   0xc   : > { %s87_s6 = sor.u32 %s86_s28, %s85_s30  ;;  %p4130_p8 = scmp.ge.s32.totalorder %s5113_s24, 4 }
   0xd   : > { %p88_p7 = scmp.eq.s32.totalorder %s87_s6, 0 }
   0xe   : > { %199 = sbr.rel (%p4130_p8) target bundleno = 29 (0x1d), region = 24 }
   0xf   : > { %s5203_s8 = scalar_select %p88_p7, %s5093_s19, %s90_s7  }
  0x15   : > { %222 = sbr.rel (!%p99_p5) target bundleno = 29 (0x1d), region = 36  ;;  %s224_s9 = sand.u32 (%p99_p5), 1, %s5093_s19  }
  0x16   : > { %s4132_s10 = sshll.u32 (%p99_p5), %s5109_s23, 3  ;;  %s4131_s11 = sshll.u32 (%p99_p5), %s224_s9, 4 }
  0x17   : > { %s228_s12 = sadd.s32 (%p99_p5), %s5105_s22, %s4132_s10  ;;  %s226_s17 = scalar_lea.vmem (%p99_p5), [#allocation2], %s4131_s11 }
  0x18   : > { %s4133_s13 = sshll.u32 (%p99_p5), %s228_s12, 2 }
  0x19   : > { %s230_s16 = scalar_lea.vmem (%p99_p5), %s8300_s2, %s4133_s13 }
  0x1a   : > { %v246_v0 = vld [vmem:[%s230_s16] sm:$0xf] (%p99_p5)  ;;  %v248_v1 = vld [vmem:[%s230_s16 + $0x8] sm:$0xf] (%p99_p5)  ;;  %v250_v2 = vld [vmem:[%s230_s16 + $0x10] sm:$0xf] (%p99_p5) }
  0x1b   : > { %247 = vst [vmem:[%s226_s17] sm:$0xf] (%p99_p5), %v246_v0  ;;  %249 = vst [vmem:[%s226_s17 + $0x4] sm:$0xf] (%p99_p5), %v248_v1  ;;  %v252_v3 = vld [vmem:[%s230_s16 + $0x18] sm:$0xf] (%p99_p5) }
  0x1c   : > { %251 = vst [vmem:[%s226_s17 + $0x8] sm:$0xf] %v250_v2  ;;  %253 = vst [vmem:[%s226_s17 + $0xc] sm:$0xf] %v252_v3 }
  0x1d PF: > { %p4134_p9 = scmp.ge.s32.totalorder %s5113_s24, 1  ;;  %p283_p10 = scmp.lt.s32.totalorder %s5113_s24, 5 }
  0x1f   : > { %p284_p11 = pnand %p4134_p9, %p283_p10 }
  0x21   : > { %287 = sbr.rel (%p284_p11) target bundleno = 909 (0x38d), region = 77 }
  0x28   : > { %s5215_s27 = sshll.u32 %s5097_s20, 3  ;;  %p330_p12 = scmp.lt.s32.totalorder %s5101_s21, 1  ;;  %v346_v4 = vlaneseq  ;;  %v5115_v19 = vmov 1.0|1.0   ;;  %v8304_v59 = vmov 0  }
  0x29   : > { %p332_p13 = scmp.lt.s32.totalorder %s5215_s27, 15  ;;  %s290_s15 = sand.u32 1, %s5089_s18   ;;  %4985 = vset.pattern.permute.xlu0 %v8304_v59 }
  0x2a   : > { %s331_s28 = scalar_select %p330_p12, %s5101_s21, 1  ;;  %v5221_v5 = vshrl.u32 %v346_v4, 7  ;;  %v6398_v60 = vand.u32 127, %v346_v4 }
  0x2b   : > { %s333_s30 = scalar_select %p332_p13, %s5215_s27, 15 }
  0x2c   : > { %s4138_s6 = sshll.u32 %s331_s28, 4  ;;  %v5225_v6 = vsub.s32 1, %v5221_v5  ;;  %v5228_v7 = vsub.s32 3, %v5221_v5  ;;  %v5231_v8 = vsub.s32 0, %v5221_v5  ;;  %s4926_s20 = sshll.u32 %s331_s28, 5  ;;  %v5234_v9 = vsub.s32 2, %v5221_v5 }
  0x2d   : > { %s335_s7 = sadd.s32 %s4138_s6, %s333_s30  ;;  %s5239_s11 = scalar_lea.vmem %s8299_s1, %s4926_s20  ;;  %v5245_v10 = vadd.s32 8, %v5221_v5  ;;  %v5250_v12 = vadd.s32 16, %v5221_v5  ;;  %v5253_v13 = vadd.s32 24, %v5221_v5  ;;  %v5298_v20 = vadd.s32 32, %v5221_v5 }
  0x2e   : > { %s336_s14 = scalar_lea.vmem %s8298_s0, %s335_s7  ;;  %v5272_v18 = vld [vmem:[%s5239_s11 + $0x4] ss:$8 sps:$4 sm:$0xff]   ;;  %v5301_v21 = vadd.s32 40, %v5221_v5  ;;  %v5327_v22 = vadd.s32 48, %v5221_v5  ;;  %v5330_v23 = vadd.s32 56, %v5221_v5  ;;  %v5353_v24 = vadd.s32 64, %v5221_v5 }
  0x2f   : > { %v5247_v11 = vld [vmem:[%s336_s14] sm:$0xff]  ;;  %1363 = vmatprep.mubr.bf16.mxu0 %v5272_v18  ;;  %1416 = vmatprep.mubr.bf16.mxu1 %v5272_v18  ;;  %v5356_v25 = vadd.s32 72, %v5221_v5  ;;  %v5379_v26 = vadd.s32 80, %v5221_v5  ;;  %v5382_v27 = vadd.s32 88, %v5221_v5  ;;  %v5405_v28 = vadd.s32 96, %v5221_v5  ;;  %s6246_s16 = sshll.u32 %s290_s15, 4 }
  0x30   : > { %v5257_v14 = vrot.slane %v5247_v11, %v5225_v6  ;;  %v5261_v15 = vrot.slane %v5247_v11, %v5228_v7  ;;  %v5265_v16 = vrot.slane %v5247_v11, %v5231_v8  ;;  %v5269_v17 = vrot.slane %v5247_v11, %v5234_v9  ;;  %v5977_v56 = vld [vmem:[%s5239_s11] ss:$8 sps:$4 sm:$0xff]   ;;  %v6018_v57 = vld [vmem:[%s5239_s11 + $0x14] ss:$8 sps:$4 sm:$0xff]   ;;  %v6103_v58 = vld [vmem:[%s5239_s11 + $0x10] ss:$8 sps:$4 sm:$0xff]  }
  0x31   : > { %v5408_v29 = vadd.s32 104, %v5221_v5  ;;  %v5431_v30 = vadd.s32 112, %v5221_v5  ;;  %v5434_v31 = vadd.s32 120, %v5221_v5  ;;  %v5457_v32 = vadd.s32 128, %v5221_v5  ;;  %s292_s17 = scalar_lea.vmem [#allocation2], %s6246_s16  ;;  %s4136_s28 = sshll.u32 %s290_s15, 9 }
  0x32   : > { %vm412_vm0 = vcmp.eq.s32.totalorder %v5221_v5, %v5257_v14  ;;  %vm420_vm1 = vcmp.eq.s32.totalorder %v5245_v10, %v5257_v14  ;;  %vm414_vm2 = vcmp.eq.s32.totalorder %v5221_v5, %v5261_v15  ;;  %vm422_vm3 = vcmp.eq.s32.totalorder %v5245_v10, %v5261_v15  ;;  %s7089_s18 = scalar_lea.vmem [#allocation3], %s4136_s28  ;;  %s4922_s11 = sshll.u32 (%p5195_p6), %s5101_s21, 7 }
  0x33   : > { %vm4401_vm4 = vmpackc.low %vm420_vm1, %vm412_vm0  ;;  %vm411_vm5 = vcmp.eq.s32.totalorder %v5221_v5, %v5265_v16  ;;  %vm419_vm6 = vcmp.eq.s32.totalorder %v5245_v10, %v5265_v16  ;;  %vm413_vm7 = vcmp.eq.s32.totalorder %v5221_v5, %v5269_v17  ;;  %vm421_vm8 = vcmp.eq.s32.totalorder %v5245_v10, %v5269_v17  ;;  %s3881_s29 = sadd.s32 (%p5195_p6), %s4922_s11, %s5215_s27 }
  0x34   : > { %4402 = vmatprep.subr.msk.bf16.mxu0 %vm4401_vm4, %v5115_v19  ;;  %vm4465_vm9 = vmpackc.low %vm422_vm3, %vm414_vm2  ;;  %vm428_vm10 = vcmp.eq.s32.totalorder %v5250_v12, %v5257_v14  ;;  %vm436_vm11 = vcmp.eq.s32.totalorder %v5253_v13, %v5257_v14  ;;  %vm430_vm13 = vcmp.eq.s32.totalorder %v5250_v12, %v5261_v15  ;;  %vm438_vm14 = vcmp.eq.s32.totalorder %v5253_v13, %v5261_v15  ;;  %s4923_s12 = sshll.u32 (%p5195_p6), %s3881_s29, 3 }
  0x35   : > { %4466 = vmatprep.subr.msk.bf16.mxu1 %vm4465_vm9, %v5115_v19  ;;  %vm4403_vm12 = vmpackc.low %vm419_vm6, %vm411_vm5  ;;  %vm427_vm0 = vcmp.eq.s32.totalorder %v5250_v12, %v5265_v16  ;;  %vm435_vm1 = vcmp.eq.s32.totalorder %v5253_v13, %v5265_v16  ;;  %vm429_vm3 = vcmp.eq.s32.totalorder %v5250_v12, %v5269_v17  ;;  %vm437_vm4 = vcmp.eq.s32.totalorder %v5253_v13, %v5269_v17  ;;  %s8156_s15 = scalar_lea.vmem (%p5195_p6), %s8303_s5, %s4923_s12 }
  0x36   : > { %4404 = vmatpush1.bf16.msk.msra.mxu0 %vm4403_vm12, %v5115_v19  ;;  %vm4467_vm15 = vmpackc.low %vm421_vm8, %vm413_vm7  ;;  %vm444_vm6 = vcmp.eq.s32.totalorder %v5298_v20, %v5257_v14  ;;  %vm452_vm7 = vcmp.eq.s32.totalorder %v5301_v21, %v5257_v14  ;;  %vm446_vm9 = vcmp.eq.s32.totalorder %v5298_v20, %v5261_v15  ;;  %vm443_vm12 = vcmp.eq.s32.totalorder %v5298_v20, %v5265_v16 }
  0x37   : > { %4468 = vmatpush1.bf16.msk.msra.mxu1 %vm4467_vm15, %v5115_v19  ;;  %vm4405_vm2 = vmpackc.low %vm436_vm11, %vm428_vm10  ;;  %vm454_vm10 = vcmp.eq.s32.totalorder %v5301_v21, %v5261_v15  ;;  %vm445_vm15 = vcmp.eq.s32.totalorder %v5298_v20, %v5269_v17  ;;  %v5460_v33 = vadd.s32 136, %v5221_v5  ;;  %v5478_v34 = vadd.s32 144, %v5221_v5 }
  0x38   : > { %4406 = vmatprep.subr.msk.bf16.mxu0 %vm4405_vm2, %v5115_v19  ;;  %vm4469_vm5 = vmpackc.low %vm438_vm14, %vm430_vm13  ;;  %vm451_vm13 = vcmp.eq.s32.totalorder %v5301_v21, %v5265_v16  ;;  %vm460_vm2 = vcmp.eq.s32.totalorder %v5327_v22, %v5257_v14  ;;  %v5481_v35 = vadd.s32 152, %v5221_v5  ;;  %v5494_v36 = vadd.s32 160, %v5221_v5 }
  0x39   : > { %4470 = vmatprep.subr.msk.bf16.mxu1 %vm4469_vm5, %v5115_v19  ;;  %vm4407_vm8 = vmpackc.low %vm435_vm1, %vm427_vm0  ;;  %vm453_vm0 = vcmp.eq.s32.totalorder %v5301_v21, %v5269_v17  ;;  %vm462_vm5 = vcmp.eq.s32.totalorder %v5327_v22, %v5261_v15  ;;  %v5504_v37 = vsub.s32 5, %v5221_v5  ;;  %v5514_v38 = vadd.s32 168, %v5221_v5 }
  0x3a   : > { %4408 = vmatpush1.bf16.msk.msra.mxu0 %vm4407_vm8, %v5115_v19  ;;  %vm4471_vm11 = vmpackc.low %vm437_vm4, %vm429_vm3  ;;  %vm468_vm3 = vcmp.eq.s32.totalorder %v5330_v23, %v5257_v14  ;;  %vm459_vm8 = vcmp.eq.s32.totalorder %v5327_v22, %v5265_v16  ;;  %v5558_v40 = vsub.s32 7, %v5221_v5  ;;  %v5561_v41 = vsub.s32 4, %v5221_v5 }
  0x3b   : > { %4472 = vmatpush1.bf16.msk.msra.mxu1 %vm4471_vm11, %v5115_v19  ;;  %vm4409_vm14 = vmpackc.low %vm452_vm7, %vm444_vm6  ;;  %vm470_vm6 = vcmp.eq.s32.totalorder %v5330_v23, %v5261_v15  ;;  %vm461_vm11 = vcmp.eq.s32.totalorder %v5327_v22, %v5269_v17  ;;  %v5555_v39 = vrot.slane %v5247_v11, %v5504_v37  ;;  %v5564_v42 = vsub.s32 6, %v5221_v5 }
  0x3c   : > { %4410 = vmatprep.subr.msk.bf16.mxu0 %vm4409_vm14, %v5115_v19  ;;  %vm4473_vm1 = vmpackc.low %vm454_vm10, %vm446_vm9  ;;  %vm467_vm9 = vcmp.eq.s32.totalorder %v5330_v23, %v5265_v16  ;;  %vm476_vm14 = vcmp.eq.s32.totalorder %v5353_v24, %v5257_v14  ;;  %v5578_v43 = vadd.s32 176, %v5221_v5  ;;  %v5581_v44 = vadd.s32 184, %v5221_v5 }
  0x3d   : > { %4474 = vmatprep.subr.msk.bf16.mxu1 %vm4473_vm1, %v5115_v19  ;;  %vm4411_vm4 = vmpackc.low %vm451_vm13, %vm443_vm12  ;;  %vm469_vm12 = vcmp.eq.s32.totalorder %v5330_v23, %v5269_v17  ;;  %vm478_vm1 = vcmp.eq.s32.totalorder %v5353_v24, %v5261_v15  ;;  %v5596_v45 = vrot.slane %v5247_v11, %v5558_v40  ;;  %v5600_v46 = vrot.slane %v5247_v11, %v5561_v41 }
  0x3e   : > { %4412 = vmatpush1.bf16.msk.msra.mxu0 %vm4411_vm4, %v5115_v19  ;;  %vm4475_vm7 = vmpackc.low %vm453_vm0, %vm445_vm15  ;;  %vm484_vm15 = vcmp.eq.s32.totalorder %v5356_v25, %v5257_v14  ;;  %vm475_vm4 = vcmp.eq.s32.totalorder %v5353_v24, %v5265_v16  ;;  %v5617_v47 = vrot.slane %v5247_v11, %v5564_v42  ;;  %v5644_v48 = vadd.s32 192, %v5221_v5 }
  0x3f   : > { %4476 = vmatpush1.bf16.msk.msra.mxu1 %vm4475_vm7, %v5115_v19  ;;  %vm4413_vm10 = vmpackc.low %vm468_vm3, %vm460_vm2  ;;  %vm486_vm2 = vcmp.eq.s32.totalorder %v5356_v25, %v5261_v15  ;;  %vm477_vm7 = vcmp.eq.s32.totalorder %v5353_v24, %v5269_v17  ;;  %v5662_v49 = vadd.s32 200, %v5221_v5  ;;  %v5684_v50 = vadd.s32 208, %v5221_v5 }
  0x40   : > { %4414 = vmatprep.subr.msk.bf16.mxu0 %vm4413_vm10, %v5115_v19  ;;  %vm4477_vm13 = vmpackc.low %vm470_vm6, %vm462_vm5  ;;  %vm483_vm5 = vcmp.eq.s32.totalorder %v5356_v25, %v5265_v16  ;;  %vm492_vm10 = vcmp.eq.s32.totalorder %v5379_v26, %v5257_v14  ;;  %v5687_v51 = vadd.s32 216, %v5221_v5  ;;  %v5704_v52 = vadd.s32 224, %v5221_v5 }
  0x41   : > { %4478 = vmatprep.subr.msk.bf16.mxu1 %vm4477_vm13, %v5115_v19  ;;  %vm4415_vm0 = vmpackc.low %vm467_vm9, %vm459_vm8  ;;  %vm485_vm8 = vcmp.eq.s32.totalorder %v5356_v25, %v5269_v17  ;;  %vm494_vm13 = vcmp.eq.s32.totalorder %v5379_v26, %v5261_v15  ;;  %v5720_v53 = vadd.s32 232, %v5221_v5  ;;  %v5736_v54 = vadd.s32 240, %v5221_v5 }
  0x42   : > { %4416 = vmatpush1.bf16.msk.msra.mxu0 %vm4415_vm0, %v5115_v19  ;;  %vm4479_vm3 = vmpackc.low %vm469_vm12, %vm461_vm11  ;;  %vm500_vm11 = vcmp.eq.s32.totalorder %v5382_v27, %v5257_v14  ;;  %vm491_vm0 = vcmp.eq.s32.totalorder %v5379_v26, %v5265_v16  ;;  %v5752_v55 = vadd.s32 248, %v5221_v5  ;;  %v6408_v61 = vmul.u32 8, %v5221_v5 }
  0x43   : > { %4480 = vmatpush1.bf16.msk.msra.mxu1 %vm4479_vm3, %v5115_v19  ;;  %vm4417_vm6 = vmpackc.low %vm484_vm15, %vm476_vm14  ;;  %vm502_vm14 = vcmp.eq.s32.totalorder %v5382_v27, %v5261_v15  ;;  %vm493_vm3 = vcmp.eq.s32.totalorder %v5379_v26, %v5269_v17  ;;  %v6418_v62 = vmul.u32 8, %v5245_v10  ;;  %v6442_v63 = vadd.s32 128, %v6398_v60 }
  0x44   : > { %4418 = vmatprep.subr.msk.bf16.mxu0 %vm4417_vm6, %v5115_v19  ;;  %vm4481_vm9 = vmpackc.low %vm486_vm2, %vm478_vm1  ;;  %vm499_vm1 = vcmp.eq.s32.totalorder %v5382_v27, %v5265_v16  ;;  %vm508_vm6 = vcmp.eq.s32.totalorder %v5405_v28, %v5257_v14  ;;  %v6445_v0 = vadd.s32 8, %v6408_v61  ;;  %v6472_v2 = vadd.s32 384, %v6398_v60 }
  0x45   : > { %4482 = vmatprep.subr.msk.bf16.mxu1 %vm4481_vm9, %v5115_v19  ;;  %vm4419_vm12 = vmpackc.low %vm483_vm5, %vm475_vm4  ;;  %vm501_vm4 = vcmp.eq.s32.totalorder %v5382_v27, %v5269_v17  ;;  %vm510_vm9 = vcmp.eq.s32.totalorder %v5405_v28, %v5261_v15  ;;  %v6455_v1 = vadd.s32 8, %v6418_v62  ;;  %v6513_v3 = vmul.u32 8, %v5250_v12 }
  0x46   : > { %4420 = vmatpush1.bf16.msk.msra.mxu0 %vm4419_vm12, %v5115_v19  ;;  %vm4483_vm15 = vmpackc.low %vm485_vm8, %vm477_vm7  ;;  %vm516_vm7 = vcmp.eq.s32.totalorder %v5408_v29, %v5257_v14  ;;  %vm507_vm12 = vcmp.eq.s32.totalorder %v5405_v28, %v5265_v16  ;;  %v6517_v4 = vadd.s32 256, %v6398_v60 }
  0x47   : > { %4484 = vmatpush1.bf16.msk.msra.mxu1 %vm4483_vm15, %v5115_v19  ;;  %vm4421_vm2 = vmpackc.low %vm500_vm11, %vm492_vm10  ;;  %vm518_vm10 = vcmp.eq.s32.totalorder %v5408_v29, %v5261_v15  ;;  %vm509_vm15 = vcmp.eq.s32.totalorder %v5405_v28, %v5269_v17 }
  0x48   : > { %4422 = vmatprep.subr.msk.bf16.mxu0 %vm4421_vm2, %v5115_v19  ;;  %vm4485_vm5 = vmpackc.low %vm502_vm14, %vm494_vm13  ;;  %vm515_vm13 = vcmp.eq.s32.totalorder %v5408_v29, %v5265_v16  ;;  %vm524_vm2 = vcmp.eq.s32.totalorder %v5431_v30, %v5257_v14 }
  0x49   : > { %4486 = vmatprep.subr.msk.bf16.mxu1 %vm4485_vm5, %v5115_v19  ;;  %vm4423_vm8 = vmpackc.low %vm499_vm1, %vm491_vm0  ;;  %vm517_vm0 = vcmp.eq.s32.totalorder %v5408_v29, %v5269_v17  ;;  %vm526_vm5 = vcmp.eq.s32.totalorder %v5431_v30, %v5261_v15 }
  0x4a   : > { %4424 = vmatpush1.bf16.msk.msra.mxu0 %vm4423_vm8, %v5115_v19  ;;  %vm4487_vm11 = vmpackc.low %vm501_vm4, %vm493_vm3  ;;  %vm532_vm3 = vcmp.eq.s32.totalorder %v5434_v31, %v5257_v14  ;;  %vm523_vm8 = vcmp.eq.s32.totalorder %v5431_v30, %v5265_v16 }
  0x4b   : > { %4488 = vmatpush1.bf16.msk.msra.mxu1 %vm4487_vm11, %v5115_v19  ;;  %vm4425_vm14 = vmpackc.low %vm516_vm7, %vm508_vm6  ;;  %vm534_vm6 = vcmp.eq.s32.totalorder %v5434_v31, %v5261_v15  ;;  %vm525_vm11 = vcmp.eq.s32.totalorder %v5431_v30, %v5269_v17 }
  0x4c   : > { %4426 = vmatprep.subr.msk.bf16.mxu0 %vm4425_vm14, %v5115_v19  ;;  %vm4489_vm1 = vmpackc.low %vm518_vm10, %vm510_vm9  ;;  %vm531_vm9 = vcmp.eq.s32.totalorder %v5434_v31, %v5265_v16  ;;  %vm540_vm14 = vcmp.eq.s32.totalorder %v5457_v32, %v5257_v14 }
  0x4d   : > { %4490 = vmatprep.subr.msk.bf16.mxu1 %vm4489_vm1, %v5115_v19  ;;  %vm4427_vm4 = vmpackc.low %vm515_vm13, %vm507_vm12  ;;  %vm533_vm12 = vcmp.eq.s32.totalorder %v5434_v31, %v5269_v17  ;;  %vm542_vm1 = vcmp.eq.s32.totalorder %v5457_v32, %v5261_v15 }
  0x4e   : > { %4428 = vmatpush1.bf16.msk.msra.mxu0 %vm4427_vm4, %v5115_v19  ;;  %vm4491_vm7 = vmpackc.low %vm517_vm0, %vm509_vm15  ;;  %vm548_vm15 = vcmp.eq.s32.totalorder %v5460_v33, %v5257_v14  ;;  %vm539_vm4 = vcmp.eq.s32.totalorder %v5457_v32, %v5265_v16 }
  0x4f   : > { %4492 = vmatpush1.bf16.msk.msra.mxu1 %vm4491_vm7, %v5115_v19  ;;  %vm4429_vm10 = vmpackc.low %vm532_vm3, %vm524_vm2  ;;  %vm550_vm2 = vcmp.eq.s32.totalorder %v5460_v33, %v5261_v15 }
  0x50   : > { %4430 = vmatprep.subr.msk.bf16.mxu0 %vm4429_vm10, %v5115_v19  ;;  %vm4493_vm13 = vmpackc.low %vm534_vm6, %vm526_vm5  ;;  %vm547_vm5 = vcmp.eq.s32.totalorder %v5460_v33, %v5265_v16  ;;  %vm541_vm6 = vcmp.eq.s32.totalorder %v5457_v32, %v5269_v17  ;;  %vm564_vm10 = vcmp.eq.s32.totalorder %v5481_v35, %v5257_v14 }
  0x51   : > { %4494 = vmatprep.subr.msk.bf16.mxu1 %vm4493_vm13, %v5115_v19  ;;  %vm4431_vm0 = vmpackc.low %vm531_vm9, %vm523_vm8  ;;  %vm549_vm8 = vcmp.eq.s32.totalorder %v5460_v33, %v5269_v17  ;;  %vm556_vm9 = vcmp.eq.s32.totalorder %v5478_v34, %v5257_v14  ;;  %vm566_vm13 = vcmp.eq.s32.totalorder %v5481_v35, %v5261_v15 }
  0x52   : > { %4432 = vmatpush1.bf16.msk.msra.mxu0 %vm4431_vm0, %v5115_v19  ;;  %vm4495_vm3 = vmpackc.low %vm533_vm12, %vm525_vm11  ;;  %vm558_vm12 = vcmp.eq.s32.totalorder %v5478_v34, %v5261_v15 }
  0x53   : > { %4496 = vmatpush1.bf16.msk.msra.mxu1 %vm4495_vm3, %v5115_v19  ;;  %vm4433_vm7 = vmpackc.low %vm548_vm15, %vm540_vm14  ;;  %vm555_vm14 = vcmp.eq.s32.totalorder %v5478_v34, %v5265_v16  ;;  %vm563_vm15 = vcmp.eq.s32.totalorder %v5481_v35, %v5265_v16  ;;  %vm572_vm3 = vcmp.eq.s32.totalorder %v5494_v36, %v5257_v14 }
  0x54   : > { %4434 = vmatprep.subr.msk.bf16.mxu0 %vm4433_vm7, %v5115_v19  ;;  %vm4497_vm11 = vmpackc.low %vm550_vm2, %vm542_vm1  ;;  %vm557_vm1 = vcmp.eq.s32.totalorder %v5478_v34, %v5269_v17  ;;  %vm565_vm2 = vcmp.eq.s32.totalorder %v5481_v35, %v5269_v17  ;;  %vm574_vm7 = vcmp.eq.s32.totalorder %v5494_v36, %v5261_v15 }
  0x55   : > { %4498 = vmatprep.subr.msk.bf16.mxu1 %vm4497_vm11, %v5115_v19  ;;  %vm4435_vm0 = vmpackc.low %vm547_vm5, %vm539_vm4 }
  0x56   : > { %4436 = vmatpush1.bf16.msk.msra.mxu0 %vm4435_vm0, %v5115_v19  ;;  %vm4499_vm4 = vmpackc.low %vm549_vm8, %vm541_vm6  ;;  %vm580_vm6 = vcmp.eq.s32.totalorder %v5514_v38, %v5257_v14  ;;  %vm571_vm8 = vcmp.eq.s32.totalorder %v5494_v36, %v5265_v16  ;;  %vm579_vm0 = vcmp.eq.s32.totalorder %v5514_v38, %v5265_v16 }
  0x57   : > { %4500 = vmatpush1.bf16.msk.msra.mxu1 %vm4499_vm4, %v5115_v19  ;;  %vm4437_vm5 = vmpackc.low %vm564_vm10, %vm556_vm9  ;;  %vm573_vm4 = vcmp.eq.s32.totalorder %v5494_v36, %v5269_v17  ;;  %vm434_vm10 = vcmp.eq.s32.totalorder %v5250_v12, %v5596_v45 }
  0x58   : > { %4438 = vmatprep.subr.msk.bf16.mxu0 %vm4437_vm5, %v5115_v19  ;;  %vm4501_vm9 = vmpackc.low %vm566_vm13, %vm558_vm12  ;;  %vm582_vm13 = vcmp.eq.s32.totalorder %v5514_v38, %v5261_v15  ;;  %vm606_vm5 = vcmp.eq.s32.totalorder %v5644_v48, %v5261_v15 }
  0x59   : > { %4502 = vmatprep.subr.msk.bf16.mxu1 %vm4501_vm9, %v5115_v19  ;;  %vm4439_vm12 = vmpackc.low %vm563_vm15, %vm555_vm14  ;;  %vm612_vm9 = vcmp.eq.s32.totalorder %v5662_v49, %v5257_v14  ;;  %vm442_vm15 = vcmp.eq.s32.totalorder %v5253_v13, %v5596_v45 }
  0x5a   : > { %4440 = vmatpush1.bf16.msk.msra.mxu0 %vm4439_vm12, %v5115_v19  ;;  %vm4503_vm14 = vmpackc.low %vm565_vm2, %vm557_vm1  ;;  %vm581_vm2 = vcmp.eq.s32.totalorder %v5514_v38, %v5269_v17  ;;  %vm595_vm12 = vcmp.eq.s32.totalorder %v5581_v44, %v5265_v16 }
  0x5b   : > { %4504 = vmatpush1.bf16.msk.msra.mxu1 %vm4503_vm14, %v5115_v19  ;;  %vm4441_vm1 = vmpackc.low %vm580_vm6, %vm572_vm3  ;;  %vm588_vm6 = vcmp.eq.s32.totalorder %v5578_v43, %v5257_v14  ;;  %vm596_vm14 = vcmp.eq.s32.totalorder %v5581_v44, %v5257_v14 }
  0x5c   : > { %4442 = vmatprep.subr.msk.bf16.mxu0 %vm4441_vm1, %v5115_v19  ;;  %vm4505_vm3 = vmpackc.low %vm582_vm13, %vm574_vm7  ;;  %vm590_vm7 = vcmp.eq.s32.totalorder %v5578_v43, %v5261_v15  ;;  %vm598_vm13 = vcmp.eq.s32.totalorder %v5581_v44, %v5261_v15 }
  0x5d   : > { %4506 = vmatprep.subr.msk.bf16.mxu1 %vm4505_vm3, %v5115_v19  ;;  %vm4443_vm1 = vmpackc.low %vm579_vm0, %vm571_vm8  ;;  %vm587_vm3 = vcmp.eq.s32.totalorder %v5578_v43, %v5265_v16  ;;  %vm589_vm0 = vcmp.eq.s32.totalorder %v5578_v43, %v5269_v17 }
  0x5e   : > { %4444 = vmatpush1.bf16.msk.msra.mxu0 %vm4443_vm1, %v5115_v19  ;;  %vm4507_vm11 = vmpackc.low %vm581_vm2, %vm573_vm4  ;;  %vm597_vm4 = vcmp.eq.s32.totalorder %v5581_v44, %v5269_v17  ;;  %vm604_vm2 = vcmp.eq.s32.totalorder %v5644_v48, %v5257_v14 }
  0x5f   : > { %4508 = vmatpush1.bf16.msk.msra.mxu1 %vm4507_vm11, %v5115_v19  ;;  %vm4445_vm8 = vmpackc.low %vm596_vm14, %vm588_vm6  ;;  %vm603_vm11 = vcmp.eq.s32.totalorder %v5644_v48, %v5265_v16  ;;  %vm614_vm14 = vcmp.eq.s32.totalorder %v5662_v49, %v5261_v15 }
  0x60   : > { %4446 = vmatprep.subr.msk.bf16.mxu0 %vm4445_vm8, %v5115_v19  ;;  %vm4509_vm1 = vmpackc.low %vm598_vm13, %vm590_vm7  ;;  %vm611_vm7 = vcmp.eq.s32.totalorder %v5662_v49, %v5265_v16  ;;  %vm605_vm13 = vcmp.eq.s32.totalorder %v5644_v48, %v5269_v17  ;;  %vm620_vm8 = vcmp.eq.s32.totalorder %v5684_v50, %v5257_v14 }
  0x61   : > { %4510 = vmatprep.subr.msk.bf16.mxu1 %vm4509_vm1, %v5115_v19  ;;  %vm4447_vm6 = vmpackc.low %vm595_vm12, %vm587_vm3  ;;  %vm613_vm3 = vcmp.eq.s32.totalorder %v5662_v49, %v5269_v17  ;;  %vm628_vm1 = vcmp.eq.s32.totalorder %v5687_v51, %v5257_v14 }
  0x62   : > { %4448 = vmatpush1.bf16.msk.msra.mxu0 %vm4447_vm6, %v5115_v19  ;;  %vm4511_vm12 = vmpackc.low %vm597_vm4, %vm589_vm0  ;;  %vm622_vm4 = vcmp.eq.s32.totalorder %v5684_v50, %v5261_v15  ;;  %vm630_vm6 = vcmp.eq.s32.totalorder %v5687_v51, %v5261_v15 }
  0x63   : > { %4512 = vmatpush1.bf16.msk.msra.mxu1 %vm4511_vm12, %v5115_v19  ;;  %vm4449_vm0 = vmpackc.low %vm612_vm9, %vm604_vm2  ;;  %vm627_vm2 = vcmp.eq.s32.totalorder %v5687_v51, %v5265_v16  ;;  %vm621_vm12 = vcmp.eq.s32.totalorder %v5684_v50, %v5269_v17 }
  0x64   : > { %4450 = vmatprep.subr.msk.bf16.mxu0 %vm4449_vm0, %v5115_v19  ;;  %vm4513_vm9 = vmpackc.low %vm614_vm14, %vm606_vm5  ;;  %vm644_vm14 = vcmp.eq.s32.totalorder %v5720_v53, %v5257_v14  ;;  %vm638_vm0 = vcmp.eq.s32.totalorder %v5704_v52, %v5261_v15 }
  0x65   : > { %4514 = vmatprep.subr.msk.bf16.mxu1 %vm4513_vm9, %v5115_v19  ;;  %vm4451_vm5 = vmpackc.low %vm611_vm7, %vm603_vm11  ;;  %vm646_vm7 = vcmp.eq.s32.totalorder %v5720_v53, %v5261_v15  ;;  %vm643_vm9 = vcmp.eq.s32.totalorder %v5720_v53, %v5265_v16 }
  0x66   : > { %4452 = vmatpush1.bf16.msk.msra.mxu0 %vm4451_vm5, %v5115_v19  ;;  %vm4515_vm11 = vmpackc.low %vm613_vm3, %vm605_vm13  ;;  %vm660_vm3 = vcmp.eq.s32.totalorder %v5752_v55, %v5257_v14  ;;  %vm654_vm5 = vcmp.eq.s32.totalorder %v5736_v54, %v5261_v15 }
  0x67   : > { %4516 = vmatpush1.bf16.msk.msra.mxu1 %vm4515_vm11, %v5115_v19  ;;  %vm4453_vm13 = vmpackc.low %vm628_vm1, %vm620_vm8  ;;  %vm659_vm1 = vcmp.eq.s32.totalorder %v5752_v55, %v5265_v16 }
  0x68   : > { %4454 = vmatprep.subr.msk.bf16.mxu0 %vm4453_vm13, %v5115_v19  ;;  %vm4517_vm8 = vmpackc.low %vm630_vm6, %vm622_vm4  ;;  %vm8311_vm13 = vcmp.eq.s32.totalorder %v5684_v50, %v5265_v16  ;;  %vm8324_vm6 = vcmp.eq.s32.totalorder %v5221_v5, %v5596_v45 }
  0x69   : > { %4518 = vmatprep.subr.msk.bf16.mxu1 %vm4517_vm8, %v5115_v19  ;;  %vm4455_vm4 = vmpackc.low %vm627_vm2, %vm8311_vm13  ;;  %vm8312_vm2 = vcmp.eq.s32.totalorder %v5687_v51, %v5269_v17 }
  0x6a   : > { %4456 = vmatpush1.bf16.msk.msra.mxu0 %vm4455_vm4, %v5115_v19  ;;  %vm4519_vm8 = vmpackc.low %vm8312_vm2, %vm621_vm12  ;;  %vm8313_vm4 = vcmp.eq.s32.totalorder %v5704_v52, %v5257_v14  ;;  %vm8329_vm2 = vcmp.eq.s32.totalorder %v5245_v10, %v5617_v47 }
  0x6b   : > { %4520 = vmatpush1.bf16.msk.msra.mxu1 %vm4519_vm8, %v5115_v19  ;;  %vm4457_vm12 = vmpackc.low %vm644_vm14, %vm8313_vm4  ;;  %vm432_vm8 = vcmp.eq.s32.totalorder %v5250_v12, %v5555_v39  ;;  %vm440_vm4 = vcmp.eq.s32.totalorder %v5253_v13, %v5555_v39 }
  0x6c   : > { %4458 = vmatprep.subr.msk.bf16.mxu0 %vm4457_vm12, %v5115_v19  ;;  %vm4521_vm14 = vmpackc.low %vm646_vm7, %vm638_vm0  ;;  %vm8314_vm0 = vcmp.eq.s32.totalorder %v5704_v52, %v5265_v16  ;;  %vm431_vm12 = vcmp.eq.s32.totalorder %v5250_v12, %v5600_v46 }
  0x6d   : > { %4522 = vmatprep.subr.msk.bf16.mxu1 %vm4521_vm14, %v5115_v19  ;;  %vm4459_vm7 = vmpackc.low %vm643_vm9, %vm8314_vm0  ;;  %vm8315_vm9 = vcmp.eq.s32.totalorder %v5704_v52, %v5269_v17  ;;  %vm8316_vm0 = vcmp.eq.s32.totalorder %v5720_v53, %v5269_v17  ;;  %vm433_vm14 = vcmp.eq.s32.totalorder %v5250_v12, %v5617_v47  ;;  %v6572_v12 = vmul.u32 8, %v5298_v20 }
  0x6e   : > { %4460 = vmatpush1.bf16.msk.msra.mxu0 %vm4459_vm7, %v5115_v19  ;;  %vm4523_vm13 = vmpackc.low %vm8316_vm0, %vm8315_vm9  ;;  %vm8317_vm9 = vcmp.eq.s32.totalorder %v5736_v54, %v5257_v14  ;;  %vm448_vm7 = vcmp.eq.s32.totalorder %v5298_v20, %v5555_v39 }
  0x6f   : > { %4524 = vmatpush1.bf16.msk.msra.mxu1 %vm4523_vm13, %v5115_v19  ;;  %vm4461_vm0 = vmpackc.low %vm660_vm3, %vm8317_vm9  ;;  %vm8318_vm3 = vcmp.eq.s32.totalorder %v5752_v55, %v5261_v15  ;;  %vm456_vm13 = vcmp.eq.s32.totalorder %v5301_v21, %v5555_v39  ;;  %v6587_v14 = vadd.s32 8, %v6572_v12 }
  0x70   : > { %4462 = vmatprep.subr.msk.bf16.mxu0 %vm4461_vm0, %v5115_v19  ;;  %vm4525_vm9 = vmpackc.low %vm8318_vm3, %vm654_vm5  ;;  %vm8319_vm5 = vcmp.eq.s32.totalorder %v5736_v54, %v5265_v16  ;;  %v6620_v16 = vmul.u32 8, %v5327_v22 }
  0x71   : > { %4526 = vmatprep.subr.msk.bf16.mxu1 %vm4525_vm9, %v5115_v19  ;;  %vm4463_vm3 = vmpackc.low %vm659_vm1, %vm8319_vm5  ;;  %vm8320_vm1 = vcmp.eq.s32.totalorder %v5736_v54, %v5269_v17  ;;  %vm8321_vm5 = vcmp.eq.s32.totalorder %v5752_v55, %v5269_v17  ;;  %vm648_vm9 = vcmp.eq.s32.totalorder %v5720_v53, %v5555_v39  ;;  %v6623_v17 = vmul.u32 8, %v5330_v23 }
  0x72   : > { %4464 = vmatpush1.bf16.msk.msra.mxu0 %vm4463_vm3, %v5115_v19  ;;  %vm4527_vm11 = vmpackc.low %vm8321_vm5, %vm8320_vm1  ;;  %vm8322_vm3 = vcmp.eq.s32.totalorder %v5221_v5, %v5555_v39  ;;  %vm8323_vm1 = vcmp.eq.s32.totalorder %v5245_v10, %v5555_v39 }
  0x73   : > { %4528 = vmatpush1.bf16.msk.msra.mxu1 %vm4527_vm11, %v5115_v19  ;;  %vm4529_vm5 = vmpackc.low %vm8323_vm1, %vm8322_vm3  ;;  %vm8325_vm3 = vcmp.eq.s32.totalorder %v5245_v10, %v5596_v45 }
  0x74   : > { %4530 = vmatprep.subr.msk.bf16.mxu0 %vm4529_vm5, %v5115_v19  ;;  %vm4593_vm1 = vmpackc.low %vm8325_vm3, %vm8324_vm6  ;;  %vm8326_vm5 = vcmp.eq.s32.totalorder %v5221_v5, %v5600_v46  ;;  %vm8327_vm6 = vcmp.eq.s32.totalorder %v5245_v10, %v5600_v46  ;;  %v6535_v10 = vadd.s32 8, %v6513_v3 }
  0x75   : > { %1364 = vmatmul.mubr.bf16.vlgmr.msra.gmra.mrb[0].mxu0 %v5977_v56  ;;  %4594 = vmatprep.subr.msk.bf16.mxu1 %vm4593_vm1, %v5115_v19  ;;  %vm4531_vm3 = vmpackc.low %vm8327_vm6, %vm8326_vm5  ;;  %vm8328_vm1 = vcmp.eq.s32.totalorder %v5221_v5, %v5617_v47  ;;  %vm639_vm6 = vcmp.eq.s32.totalorder %v5704_v52, %v5600_v46  ;;  %v6520_v5 = vmul.u32 8, %v5253_v13 }
  0x76   : > { %1417 = vmatmul.mubr.bf16.vlgmr.msra.gmra.mrb[0].mxu1 %v5977_v56  ;;  %4532 = vmatpush1.bf16.msk.msra.mxu0 %vm4531_vm3, %v5115_v19  ;;  %vm4595_vm5 = vmpackc.low %vm8329_vm2, %vm8328_vm1  ;;  %vm472_vm1 = vcmp.eq.s32.totalorder %v5330_v23, %v5555_v39  ;;  %vm474_vm2 = vcmp.eq.s32.totalorder %v5330_v23, %v5596_v45 }
  0x77   : > { %4596 = vmatpush1.bf16.msk.msra.mxu1 %vm4595_vm5, %v5115_v19  ;;  %vm4533_vm3 = vmpackc.low %vm440_vm4, %vm432_vm8  ;;  %1373 = vmatprep.mubr.bf16.mxu0 %v6018_v57  ;;  %vm447_vm4 = vcmp.eq.s32.totalorder %v5298_v20, %v5600_v46  ;;  %vm455_vm5 = vcmp.eq.s32.totalorder %v5301_v21, %v5600_v46  ;;  %v6543_v11 = vadd.s32 8, %v6520_v5 }
  0x78   : > { %4534 = vmatprep.subr.msk.bf16.mxu0 %vm4533_vm3, %v5115_v19  ;;  %vm4597_vm8 = vmpackc.low %vm442_vm15, %vm434_vm10  ;;  %1426 = vmatprep.mubr.bf16.mxu1 %v6018_v57  ;;  %vm8330_vm3 = vcmp.eq.s32.totalorder %v5253_v13, %v5600_v46  ;;  %vm458_vm15 = vcmp.eq.s32.totalorder %v5301_v21, %v5596_v45 }
  0x79   : > { %4598 = vmatprep.subr.msk.bf16.mxu1 %vm4597_vm8, %v5115_v19  ;;  %vm4535_vm10 = vmpackc.low %vm8330_vm3, %vm431_vm12  ;;  %vm8331_vm12 = vcmp.eq.s32.totalorder %v5253_v13, %v5617_v47  ;;  %vm449_vm8 = vcmp.eq.s32.totalorder %v5298_v20, %v5617_v47  ;;  %v6575_v13 = vmul.u32 8, %v5301_v21 }
  0x7a   : > { %4536 = vmatpush1.bf16.msk.msra.mxu0 %vm4535_vm10, %v5115_v19  ;;  %vm4599_vm3 = vmpackc.low %vm8331_vm12, %vm433_vm14  ;;  %vm457_vm14 = vcmp.eq.s32.totalorder %v5301_v21, %v5617_v47  ;;  %vm8332_vm12 = vcmp.eq.s32.totalorder %v5298_v20, %v5596_v45  ;;  %v6643_v20 = vadd.s32 8, %v6623_v17  ;;  %v6668_v21 = vmul.u32 8, %v5353_v24 }
  0x7b   : > { %4600 = vmatpush1.bf16.msk.msra.mxu1 %vm4599_vm3, %v5115_v19  ;;  %vm4537_vm10 = vmpackc.low %vm456_vm13, %vm448_vm7  ;;  %vm464_vm3 = vcmp.eq.s32.totalorder %v5327_v22, %v5555_v39  ;;  %vm466_vm13 = vcmp.eq.s32.totalorder %v5327_v22, %v5596_v45  ;;  %v6595_v15 = vadd.s32 8, %v6575_v13 }
  0x7c   : > { %4538 = vmatprep.subr.msk.bf16.mxu0 %vm4537_vm10, %v5115_v19  ;;  %vm4601_vm11 = vmpackc.low %vm458_vm15, %vm8332_vm12  ;;  %vm463_vm10 = vcmp.eq.s32.totalorder %v5327_v22, %v5600_v46  ;;  %vm471_vm12 = vcmp.eq.s32.totalorder %v5330_v23, %v5600_v46 }
  0x7d   : > { %4602 = vmatprep.subr.msk.bf16.mxu1 %vm4601_vm11, %v5115_v19  ;;  %vm4539_vm7 = vmpackc.low %vm455_vm5, %vm447_vm4  ;;  %1374 = vmatmul.mubr.bf16.gmra.mrb[4].mxu0 %v6103_v58  ;;  %vm465_vm4 = vcmp.eq.s32.totalorder %v5327_v22, %v5617_v47  ;;  %vm473_vm5 = vcmp.eq.s32.totalorder %v5330_v23, %v5617_v47  ;;  %v6671_v22 = vmul.u32 8, %v5356_v25  ;;  %v6683_v23 = vadd.s32 8, %v6668_v21 }
  0x7e   : > { %4540 = vmatpush1.bf16.msk.msra.mxu0 %vm4539_vm7, %v5115_v19  ;;  %vm4603_vm15 = vmpackc.low %vm457_vm14, %vm449_vm8  ;;  %1427 = vmatmul.mubr.bf16.gmra.mrb[4].mxu1 %v6103_v58  ;;  %vm480_vm14 = vcmp.eq.s32.totalorder %v5353_v24, %v5555_v39  ;;  %vm488_vm7 = vcmp.eq.s32.totalorder %v5356_v25, %v5555_v39 }
  0x7f   : > { %4604 = vmatpush1.bf16.msk.msra.mxu1 %vm4603_vm15, %v5115_v19  ;;  %vm4541_vm11 = vmpackc.low %vm472_vm1, %vm464_vm3  ;;  %1469 = vmatprep.mubr.bf16.mxu0 %v5272_v18  ;;  %vm482_vm3 = vcmp.eq.s32.totalorder %v5353_v24, %v5596_v45  ;;  %vm490_vm15 = vcmp.eq.s32.totalorder %v5356_v25, %v5596_v45 }
  0x80   : > { %4542 = vmatprep.subr.msk.bf16.mxu0 %vm4541_vm11, %v5115_v19  ;;  %vm4605_vm8 = vmpackc.low %vm474_vm2, %vm466_vm13  ;;  %1522 = vmatprep.mubr.bf16.mxu1 %v5272_v18  ;;  %vm479_vm13 = vcmp.eq.s32.totalorder %v5353_v24, %v5600_v46  ;;  %vm487_vm11 = vcmp.eq.s32.totalorder %v5356_v25, %v5600_v46  ;;  %v6635_v18 = vadd.s32 8, %v6620_v16 }
  0x81   : > { %4606 = vmatprep.subr.msk.bf16.mxu1 %vm4605_vm8, %v5115_v19  ;;  %vm4543_vm1 = vmpackc.low %vm471_vm12, %vm463_vm10  ;;  %vm481_vm10 = vcmp.eq.s32.totalorder %v5353_v24, %v5617_v47  ;;  %vm489_vm12 = vcmp.eq.s32.totalorder %v5356_v25, %v5617_v47  ;;  %v6691_v24 = vadd.s32 8, %v6671_v22  ;;  %v6716_v25 = vmul.u32 8, %v5379_v26 }
  0x82   : > { %4544 = vmatpush1.bf16.msk.msra.mxu0 %vm4543_vm1, %v5115_v19  ;;  %vm4607_vm2 = vmpackc.low %vm473_vm5, %vm465_vm4  ;;  %vm496_vm4 = vcmp.eq.s32.totalorder %v5379_v26, %v5555_v39  ;;  %vm504_vm5 = vcmp.eq.s32.totalorder %v5382_v27, %v5555_v39 }
  0x83   : > { %4608 = vmatpush1.bf16.msk.msra.mxu1 %vm4607_vm2, %v5115_v19  ;;  %vm4545_vm0 = vmpackc.low %vm488_vm7, %vm480_vm14  ;;  %vm498_vm14 = vcmp.eq.s32.totalorder %v5379_v26, %v5596_v45  ;;  %vm506_vm7 = vcmp.eq.s32.totalorder %v5382_v27, %v5596_v45 }
  0x84   : > { %4546 = vmatprep.subr.msk.bf16.mxu0 %vm4545_vm0, %v5115_v19  ;;  %vm4609_vm8 = vmpackc.low %vm490_vm15, %vm482_vm3  ;;  %vm495_vm0 = vcmp.eq.s32.totalorder %v5379_v26, %v5600_v46  ;;  %vm503_vm3 = vcmp.eq.s32.totalorder %v5382_v27, %v5600_v46 }
  0x85   : > { %4610 = vmatprep.subr.msk.bf16.mxu1 %vm4609_vm8, %v5115_v19  ;;  %vm4547_vm1 = vmpackc.low %vm487_vm11, %vm479_vm13  ;;  %vm497_vm13 = vcmp.eq.s32.totalorder %v5379_v26, %v5617_v47  ;;  %vm505_vm11 = vcmp.eq.s32.totalorder %v5382_v27, %v5617_v47  ;;  %v6731_v26 = vadd.s32 8, %v6716_v25 }
  0x86   : > { %4548 = vmatpush1.bf16.msk.msra.mxu0 %vm4547_vm1, %v5115_v19  ;;  %vm4611_vm2 = vmpackc.low %vm489_vm12, %vm481_vm10  ;;  %vm512_vm10 = vcmp.eq.s32.totalorder %v5405_v28, %v5555_v39  ;;  %vm520_vm12 = vcmp.eq.s32.totalorder %v5408_v29, %v5555_v39 }
  0x87   : > { %4612 = vmatpush1.bf16.msk.msra.mxu1 %vm4611_vm2, %v5115_v19  ;;  %vm4549_vm15 = vmpackc.low %vm504_vm5, %vm496_vm4  ;;  %vm514_vm4 = vcmp.eq.s32.totalorder %v5405_v28, %v5596_v45  ;;  %vm522_vm5 = vcmp.eq.s32.totalorder %v5408_v29, %v5596_v45 }
  0x88   : > { %4550 = vmatprep.subr.msk.bf16.mxu0 %vm4549_vm15, %v5115_v19  ;;  %vm4613_vm8 = vmpackc.low %vm506_vm7, %vm498_vm14  ;;  %vm511_vm14 = vcmp.eq.s32.totalorder %v5405_v28, %v5600_v46  ;;  %vm519_vm7 = vcmp.eq.s32.totalorder %v5408_v29, %v5600_v46 }
  0x89   : > { %4614 = vmatprep.subr.msk.bf16.mxu1 %vm4613_vm8, %v5115_v19  ;;  %vm4551_vm1 = vmpackc.low %vm503_vm3, %vm495_vm0  ;;  %vm513_vm0 = vcmp.eq.s32.totalorder %v5405_v28, %v5617_v47  ;;  %vm521_vm3 = vcmp.eq.s32.totalorder %v5408_v29, %v5617_v47 }
  0x8a   : > { %4552 = vmatpush1.bf16.msk.msra.mxu0 %vm4551_vm1, %v5115_v19  ;;  %vm4615_vm2 = vmpackc.low %vm505_vm11, %vm497_vm13  ;;  %vm528_vm13 = vcmp.eq.s32.totalorder %v5431_v30, %v5555_v39  ;;  %vm536_vm11 = vcmp.eq.s32.totalorder %v5434_v31, %v5555_v39 }
  0x8b   : > { %4616 = vmatpush1.bf16.msk.msra.mxu1 %vm4615_vm2, %v5115_v19  ;;  %vm4553_vm15 = vmpackc.low %vm520_vm12, %vm512_vm10  ;;  %vm530_vm10 = vcmp.eq.s32.totalorder %v5431_v30, %v5596_v45  ;;  %vm538_vm12 = vcmp.eq.s32.totalorder %v5434_v31, %v5596_v45  ;;  %vm535_vm2 = vcmp.eq.s32.totalorder %v5434_v31, %v5600_v46 }
  0x8c   : > { %4554 = vmatprep.subr.msk.bf16.mxu0 %vm4553_vm15, %v5115_v19  ;;  %vm4617_vm8 = vmpackc.low %vm522_vm5, %vm514_vm4  ;;  %vm527_vm5 = vcmp.eq.s32.totalorder %v5431_v30, %v5600_v46 }
  0x8d   : > { %4618 = vmatprep.subr.msk.bf16.mxu1 %vm4617_vm8, %v5115_v19  ;;  %vm4555_vm1 = vmpackc.low %vm519_vm7, %vm511_vm14  ;;  %vm529_vm14 = vcmp.eq.s32.totalorder %v5431_v30, %v5617_v47  ;;  %vm537_vm7 = vcmp.eq.s32.totalorder %v5434_v31, %v5617_v47 }
  0x8e   : > { %4556 = vmatpush1.bf16.msk.msra.mxu0 %vm4555_vm1, %v5115_v19  ;;  %vm4619_vm4 = vmpackc.low %vm521_vm3, %vm513_vm0 }
  0x8f   : > { %4620 = vmatpush1.bf16.msk.msra.mxu1 %vm4619_vm4, %v5115_v19  ;;  %vm4557_vm15 = vmpackc.low %vm536_vm11, %vm528_vm13  ;;  %vm8333_vm13 = vcmp.eq.s32.totalorder %v5457_v32, %v5555_v39  ;;  %vm8334_vm11 = vcmp.eq.s32.totalorder %v5460_v33, %v5555_v39 }
  0x90   : > { %4558 = vmatprep.subr.msk.bf16.mxu0 %vm4557_vm15, %v5115_v19  ;;  %vm4621_vm8 = vmpackc.low %vm538_vm12, %vm530_vm10  ;;  %vm8335_vm10 = vcmp.eq.s32.totalorder %v5457_v32, %v5596_v45  ;;  %vm8336_vm12 = vcmp.eq.s32.totalorder %v5460_v33, %v5596_v45 }
  0x91   : > { %4622 = vmatprep.subr.msk.bf16.mxu1 %vm4621_vm8, %v5115_v19  ;;  %vm4559_vm0 = vmpackc.low %vm535_vm2, %vm527_vm5  ;;  %vm8337_vm5 = vcmp.eq.s32.totalorder %v5457_v32, %v5600_v46  ;;  %vm8338_vm2 = vcmp.eq.s32.totalorder %v5460_v33, %v5600_v46 }
  0x92   : > { %4560 = vmatpush1.bf16.msk.msra.mxu0 %vm4559_vm0, %v5115_v19  ;;  %vm4623_vm3 = vmpackc.low %vm537_vm7, %vm529_vm14  ;;  %vm8339_vm14 = vcmp.eq.s32.totalorder %v5457_v32, %v5617_v47  ;;  %vm8340_vm7 = vcmp.eq.s32.totalorder %v5460_v33, %v5617_v47  ;;  %vm8341_vm0 = vcmp.eq.s32.totalorder %v5478_v34, %v5555_v39  ;;  %v6719_v32 = vmul.u32 8, %v5382_v27 }
  0x93   : > { %4624 = vmatpush1.bf16.msk.msra.mxu1 %vm4623_vm3, %v5115_v19  ;;  %vm4561_vm1 = vmpackc.low %vm8334_vm11, %vm8333_vm13  ;;  %vm8342_vm3 = vcmp.eq.s32.totalorder %v5481_v35, %v5555_v39  ;;  %vm8343_vm11 = vcmp.eq.s32.totalorder %v5478_v34, %v5596_v45  ;;  %v6764_v33 = vmul.u32 8, %v5405_v28 }
  0x94   : > { %4562 = vmatprep.subr.msk.bf16.mxu0 %vm4561_vm1, %v5115_v19  ;;  %vm4625_vm4 = vmpackc.low %vm8336_vm12, %vm8335_vm10  ;;  %vm8344_vm1 = vcmp.eq.s32.totalorder %v5481_v35, %v5596_v45  ;;  %vm8345_vm12 = vcmp.eq.s32.totalorder %v5478_v34, %v5600_v46  ;;  %v6739_v27 = vadd.s32 8, %v6719_v32 }
  0x95   : > { %4626 = vmatprep.subr.msk.bf16.mxu1 %vm4625_vm4, %v5115_v19  ;;  %vm4563_vm15 = vmpackc.low %vm8338_vm2, %vm8337_vm5  ;;  %vm8346_vm4 = vcmp.eq.s32.totalorder %v5481_v35, %v5600_v46  ;;  %vm8347_vm2 = vcmp.eq.s32.totalorder %v5478_v34, %v5617_v47  ;;  %v6767_v34 = vmul.u32 8, %v5408_v29  ;;  %v6779_v28 = vadd.s32 8, %v6764_v33 }
  0x96   : > { %4564 = vmatpush1.bf16.msk.msra.mxu0 %vm4563_vm15, %v5115_v19  ;;  %vm4627_vm8 = vmpackc.low %vm8340_vm7, %vm8339_vm14  ;;  %vm8348_vm15 = vcmp.eq.s32.totalorder %v5481_v35, %v5617_v47  ;;  %vm8349_vm7 = vcmp.eq.s32.totalorder %v5494_v36, %v5555_v39  ;;  %v6812_v35 = vmul.u32 8, %v5431_v30 }
  0x97   : > { %4628 = vmatpush1.bf16.msk.msra.mxu1 %vm4627_vm8, %v5115_v19  ;;  %vm4565_vm13 = vmpackc.low %vm8342_vm3, %vm8341_vm0  ;;  %vm8350_vm8 = vcmp.eq.s32.totalorder %v5514_v38, %v5555_v39  ;;  %vm8351_vm3 = vcmp.eq.s32.totalorder %v5494_v36, %v5596_v45  ;;  %v6787_v29 = vadd.s32 8, %v6767_v34 }
  0x98   : > { %4566 = vmatprep.subr.msk.bf16.mxu0 %vm4565_vm13, %v5115_v19  ;;  %vm4629_vm10 = vmpackc.low %vm8344_vm1, %vm8343_vm11  ;;  %vm8352_vm13 = vcmp.eq.s32.totalorder %v5514_v38, %v5596_v45  ;;  %vm8353_vm1 = vcmp.eq.s32.totalorder %v5494_v36, %v5600_v46  ;;  %v6827_v30 = vadd.s32 8, %v6812_v35 }
  0x99   : > { %4630 = vmatprep.subr.msk.bf16.mxu1 %vm4629_vm10, %v5115_v19  ;;  %vm4567_vm5 = vmpackc.low %vm8346_vm4, %vm8345_vm12  ;;  %vm8354_vm10 = vcmp.eq.s32.totalorder %v5514_v38, %v5600_v46  ;;  %vm8355_vm4 = vcmp.eq.s32.totalorder %v5494_v36, %v5617_v47  ;;  %v6815_v36 = vmul.u32 8, %v5434_v31 }
  0x9a   : > { %4568 = vmatpush1.bf16.msk.msra.mxu0 %vm4567_vm5, %v5115_v19  ;;  %vm4631_vm14 = vmpackc.low %vm8348_vm15, %vm8347_vm2  ;;  %vm8356_vm5 = vcmp.eq.s32.totalorder %v5514_v38, %v5617_v47  ;;  %vm8357_vm15 = vcmp.eq.s32.totalorder %v5578_v43, %v5555_v39  ;;  %v6869_v38 = vadd.s32 640, %v6398_v60 }
  0x9b   : > { %4632 = vmatpush1.bf16.msk.msra.mxu1 %vm4631_vm14, %v5115_v19  ;;  %vm4569_vm0 = vmpackc.low %vm8350_vm8, %vm8349_vm7  ;;  %vm8358_vm14 = vcmp.eq.s32.totalorder %v5581_v44, %v5555_v39  ;;  %vm8359_vm8 = vcmp.eq.s32.totalorder %v5578_v43, %v5596_v45  ;;  %v6835_v31 = vadd.s32 8, %v6815_v36 }
  0x9c   : > { %4570 = vmatprep.subr.msk.bf16.mxu0 %vm4569_vm0, %v5115_v19  ;;  %vm4633_vm11 = vmpackc.low %vm8352_vm13, %vm8351_vm3  ;;  %vm8360_vm0 = vcmp.eq.s32.totalorder %v5581_v44, %v5596_v45  ;;  %vm8361_vm13 = vcmp.eq.s32.totalorder %v5578_v43, %v5600_v46 }
  0x9d   : > { %4634 = vmatprep.subr.msk.bf16.mxu1 %vm4633_vm11, %v5115_v19  ;;  %vm4571_vm12 = vmpackc.low %vm8354_vm10, %vm8353_vm1  ;;  %vm8362_vm11 = vcmp.eq.s32.totalorder %v5581_v44, %v5600_v46  ;;  %vm8363_vm10 = vcmp.eq.s32.totalorder %v5578_v43, %v5617_v47  ;;  %v6885_v43 = vadd.s32 896, %v6398_v60 }
  0x9e   : > { %4572 = vmatpush1.bf16.msk.msra.mxu0 %vm4571_vm12, %v5115_v19  ;;  %vm4635_vm2 = vmpackc.low %vm8356_vm5, %vm8355_vm4  ;;  %vm8364_vm12 = vcmp.eq.s32.totalorder %v5581_v44, %v5617_v47  ;;  %vm8365_vm5 = vcmp.eq.s32.totalorder %v5644_v48, %v5555_v39  ;;  %v6897_v44 = vadd.s32 512, %v6398_v60 }
  0x9f   : > { %4636 = vmatpush1.bf16.msk.msra.mxu1 %vm4635_vm2, %v5115_v19  ;;  %vm4573_vm7 = vmpackc.low %vm8358_vm14, %vm8357_vm15  ;;  %vm8366_vm2 = vcmp.eq.s32.totalorder %v5662_v49, %v5555_v39  ;;  %vm8367_vm14 = vcmp.eq.s32.totalorder %v5644_v48, %v5596_v45 }
  0xa0   : > { %4574 = vmatprep.subr.msk.bf16.mxu0 %vm4573_vm7, %v5115_v19  ;;  %vm4637_vm3 = vmpackc.low %vm8360_vm0, %vm8359_vm8  ;;  %vm8368_vm7 = vcmp.eq.s32.totalorder %v5662_v49, %v5596_v45  ;;  %vm8369_vm0 = vcmp.eq.s32.totalorder %v5644_v48, %v5600_v46 }
  0xa1   : > { %4638 = vmatprep.subr.msk.bf16.mxu1 %vm4637_vm3, %v5115_v19  ;;  %vm4575_vm1 = vmpackc.low %vm8362_vm11, %vm8361_vm13  ;;  %vm8370_vm3 = vcmp.eq.s32.totalorder %v5662_v49, %v5600_v46  ;;  %vm8371_vm11 = vcmp.eq.s32.totalorder %v5644_v48, %v5617_v47 }
  0xa2   : > { %4576 = vmatpush1.bf16.msk.msra.mxu0 %vm4575_vm1, %v5115_v19  ;;  %vm4639_vm4 = vmpackc.low %vm8364_vm12, %vm8363_vm10  ;;  %vm8372_vm1 = vcmp.eq.s32.totalorder %v5662_v49, %v5617_v47  ;;  %vm8373_vm12 = vcmp.eq.s32.totalorder %v5684_v50, %v5555_v39 }
  0xa3   : > { %4640 = vmatpush1.bf16.msk.msra.mxu1 %vm4639_vm4, %v5115_v19  ;;  %vm4577_vm15 = vmpackc.low %vm8366_vm2, %vm8365_vm5  ;;  %vm8374_vm4 = vcmp.eq.s32.totalorder %v5687_v51, %v5555_v39  ;;  %vm8375_vm2 = vcmp.eq.s32.totalorder %v5684_v50, %v5596_v45 }
  0xa4   : > { %4578 = vmatprep.subr.msk.bf16.mxu0 %vm4577_vm15, %v5115_v19  ;;  %vm4641_vm8 = vmpackc.low %vm8368_vm7, %vm8367_vm14  ;;  %vm8376_vm15 = vcmp.eq.s32.totalorder %v5687_v51, %v5596_v45  ;;  %vm8377_vm7 = vcmp.eq.s32.totalorder %v5684_v50, %v5600_v46 }
  0xa5   : > { %4642 = vmatprep.subr.msk.bf16.mxu1 %vm4641_vm8, %v5115_v19  ;;  %vm4579_vm13 = vmpackc.low %vm8370_vm3, %vm8369_vm0  ;;  %vm8378_vm8 = vcmp.eq.s32.totalorder %v5687_v51, %v5600_v46  ;;  %vm8379_vm3 = vcmp.eq.s32.totalorder %v5684_v50, %v5617_v47 }
  0xa6   : > { %4580 = vmatpush1.bf16.msk.msra.mxu0 %vm4579_vm13, %v5115_v19  ;;  %vm4643_vm10 = vmpackc.low %vm8372_vm1, %vm8371_vm11  ;;  %vm8380_vm13 = vcmp.eq.s32.totalorder %v5687_v51, %v5617_v47  ;;  %vm8381_vm1 = vcmp.eq.s32.totalorder %v5704_v52, %v5555_v39 }
  0xa7   : > { %4644 = vmatpush1.bf16.msk.msra.mxu1 %vm4643_vm10, %v5115_v19  ;;  %vm4581_vm5 = vmpackc.low %vm8374_vm4, %vm8373_vm12  ;;  %vm8382_vm12 = vcmp.eq.s32.totalorder %v5704_v52, %v5596_v45  ;;  %vm8383_vm4 = vcmp.eq.s32.totalorder %v5720_v53, %v5596_v45 }
  0xa8   : > { %4582 = vmatprep.subr.msk.bf16.mxu0 %vm4581_vm5, %v5115_v19  ;;  %vm4645_vm14 = vmpackc.low %vm8376_vm15, %vm8375_vm2  ;;  %vm8385_vm15 = vcmp.eq.s32.totalorder %v5704_v52, %v5617_v47 }
  0xa9   : > { %4646 = vmatprep.subr.msk.bf16.mxu1 %vm4645_vm14, %v5115_v19  ;;  %vm4583_vm0 = vmpackc.low %vm8378_vm8, %vm8377_vm7  ;;  %vm8386_vm14 = vcmp.eq.s32.totalorder %v5720_v53, %v5617_v47  ;;  %vm8387_vm8 = vcmp.eq.s32.totalorder %v5736_v54, %v5555_v39 }
  0xaa   : > { %4584 = vmatpush1.bf16.msk.msra.mxu0 %vm4583_vm0, %v5115_v19  ;;  %vm4647_vm11 = vmpackc.low %vm8380_vm13, %vm8379_vm3  ;;  %vm8389_vm3 = vcmp.eq.s32.totalorder %v5736_v54, %v5596_v45  ;;  %vm8390_vm13 = vcmp.eq.s32.totalorder %v5752_v55, %v5596_v45  ;;  %v6911_v45 = vadd.s32 768, %v6398_v60 }
  0xab   : > { %4648 = vmatpush1.bf16.msk.msra.mxu1 %vm4647_vm11, %v5115_v19  ;;  %vm4585_vm10 = vmpackc.low %vm648_vm9, %vm8381_vm1  ;;  %vm8384_vm9 = vcmp.eq.s32.totalorder %v5720_v53, %v5600_v46  ;;  %vm1569_vm1 = vcmp.ge.s32.totalorder %v6442_v63, %v6408_v61 }
  0xac   : > { %4586 = vmatprep.subr.msk.bf16.mxu0 %vm4585_vm10, %v5115_v19  ;;  %vm4649_vm5 = vmpackc.low %vm8383_vm4, %vm8382_vm12  ;;  %vm1713_vm10 = vcmp.lt.s32.totalorder %v6442_v63, %v6445_v0  ;;  %vm8391_vm12 = vcmp.eq.s32.totalorder %v5736_v54, %v5600_v46  ;;  %vm8392_vm4 = vcmp.eq.s32.totalorder %v5752_v55, %v5600_v46  ;;  %v6926_v46 = vld [vmem:[%s292_s17 + $0x8] sm:$0xff]  }
  0xad   : > { %4650 = vmatprep.subr.msk.bf16.mxu1 %vm4649_vm5, %v5115_v19  ;;  %vm4587_vm2 = vmpackc.low %vm8384_vm9, %vm639_vm6  ;;  %vm8388_vm6 = vcmp.eq.s32.totalorder %v5752_v55, %v5555_v39  ;;  %vm1577_vm9 = vcmp.ge.s32.totalorder %v6442_v63, %v6418_v62  ;;  %v6882_v39 = vld [vmem:[%s292_s17] sm:$0xff]  }
  0xae   : > { %4588 = vmatpush1.bf16.msk.msra.mxu0 %vm4587_vm2, %v5115_v19  ;;  %vm4651_vm7 = vmpackc.low %vm8386_vm14, %vm8385_vm15  ;;  %vm1721_vm2 = vcmp.lt.s32.totalorder %v6442_v63, %v6455_v1  ;;  %vm8393_vm15 = vcmp.eq.s32.totalorder %v5736_v54, %v5617_v47  ;;  %vm8394_vm14 = vcmp.eq.s32.totalorder %v5752_v55, %v5617_v47 }
  0xaf   : > { %4652 = vmatpush1.bf16.msk.msra.mxu1 %vm4651_vm7, %v5115_v19  ;;  %vm4589_vm0 = vmpackc.low %vm8388_vm6, %vm8387_vm8  ;;  %vm1571_vm6 = vcmp.ge.s32.totalorder %v6472_v2, %v6408_v61 }
  0xb0   : > { %4590 = vmatprep.subr.msk.bf16.mxu0 %vm4589_vm0, %v5115_v19  ;;  %vm4653_vm11 = vmpackc.low %vm8390_vm13, %vm8389_vm3  ;;  %vm1715_vm0 = vcmp.lt.s32.totalorder %v6472_v2, %v6445_v0  ;;  %vm1579_vm13 = vcmp.ge.s32.totalorder %v6472_v2, %v6418_v62 }
  0xb1   : > { %4654 = vmatprep.subr.msk.bf16.mxu1 %vm4653_vm11, %v5115_v19  ;;  %vm4591_vm5 = vmpackc.low %vm8392_vm4, %vm8391_vm12  ;;  %vm1723_vm11 = vcmp.lt.s32.totalorder %v6472_v2, %v6455_v1  ;;  %vm1712_vm4 = vcmp.lt.s32.totalorder %v6398_v60, %v6445_v0 }
  0xb2   : > { %4592 = vmatpush1.bf16.msk.msra.mxu0 %vm4591_vm5, %v5115_v19  ;;  %vm4655_vm7 = vmpackc.low %vm8394_vm14, %vm8393_vm15 }
  0xb3   : > { %4656 = vmatpush1.bf16.msk.msra.mxu1 %vm4655_vm7, %v5115_v19  ;;  %vm1841_vm8 = vmand %vm1569_vm1, %vm1713_vm10  ;;  %vm1568_vm10 = vcmp.ge.s32.totalorder %v6398_v60, %v6408_v61  ;;  %vm1570_vm7 = vcmp.ge.s32.totalorder %v6517_v4, %v6408_v61 }
  0xb4   : > { %vm1849_vm3 = vmand %vm1577_vm9, %vm1721_vm2  ;;  %vm1576_vm9 = vcmp.ge.s32.totalorder %v6398_v60, %v6418_v62  ;;  %vm1720_vm2 = vcmp.lt.s32.totalorder %v6398_v60, %v6455_v1 }
  0xb5   : > { %1470 = vmatmul.mubr.bf16.vlgmr.msra.gmra.mrb[8].mxu0 %v5977_v56  ;;  %vm4787_vm12 = vmpackc.low %vm1849_vm3, %vm1841_vm8  ;;  %vm1714_vm8 = vcmp.lt.s32.totalorder %v6517_v4, %v6445_v0  ;;  %vm1722_vm3 = vcmp.lt.s32.totalorder %v6517_v4, %v6455_v1 }
  0xb6   : > { %1523 = vmatmul.mubr.bf16.vlgmr.msra.gmra.mrb[8].mxu1 %v5977_v56  ;;  %4788 = vmatprep.subr.msk.bf16.mxu0 %vm4787_vm12, %v5115_v19  ;;  %vm1843_vm1 = vmand %vm1571_vm6, %vm1715_vm0  ;;  %vm1578_vm0 = vcmp.ge.s32.totalorder %v6517_v4, %v6418_v62  ;;  %vm1585_vm12 = vcmp.ge.s32.totalorder %v6442_v63, %v6513_v3 }
  0xb7   : > { %vm1851_vm5 = vmand %vm1579_vm13, %vm1723_vm11  ;;  %1479 = vmatprep.mubr.bf16.mxu0 %v6018_v57  ;;  %1532 = vmatprep.mubr.bf16.mxu1 %v6018_v57 }
  0xb8   : > { %vm4819_vm15 = vmpackc.low %vm1851_vm5, %vm1843_vm1  ;;  %vm1729_vm1 = vcmp.lt.s32.totalorder %v6442_v63, %v6535_v10  ;;  %vm1737_vm5 = vcmp.lt.s32.totalorder %v6442_v63, %v6543_v11 }
  0xb9   : > { %4820 = vmatprep.subr.msk.bf16.mxu1 %vm4819_vm15, %v5115_v19  ;;  %vm1840_vm14 = vmand %vm1568_vm10, %vm1712_vm4  ;;  %vm1593_vm4 = vcmp.ge.s32.totalorder %v6442_v63, %v6520_v5  ;;  %vm1587_vm15 = vcmp.ge.s32.totalorder %v6472_v2, %v6513_v3 }
  0xba   : > { %vm1848_vm6 = vmand %vm1576_vm9, %vm1720_vm2 }
  0xbb   : > { %vm4789_vm13 = vmpackc.low %vm1848_vm6, %vm1840_vm14  ;;  %vm1731_vm14 = vcmp.lt.s32.totalorder %v6472_v2, %v6535_v10  ;;  %vm1739_vm6 = vcmp.lt.s32.totalorder %v6472_v2, %v6543_v11 }
  0xbc   : > { %4790 = vmatpush1.bf16.msk.msra.mxu0 %vm4789_vm13, %v5115_v19  ;;  %vm1842_vm11 = vmand %vm1570_vm7, %vm1714_vm8  ;;  %vm1595_vm8 = vcmp.ge.s32.totalorder %v6472_v2, %v6520_v5  ;;  %vm1584_vm13 = vcmp.ge.s32.totalorder %v6398_v60, %v6513_v3 }
  0xbd   : > { %vm1850_vm10 = vmand %vm1578_vm0, %vm1722_vm3  ;;  %1480 = vmatmul.mubr.bf16.gmra.mrb[12].mxu0 %v6103_v58 }
  0xbe   : > { %vm4821_vm9 = vmpackc.low %vm1850_vm10, %vm1842_vm11  ;;  %1533 = vmatmul.mubr.bf16.gmra.mrb[12].mxu1 %v6103_v58  ;;  %2336 = vmatprep.mubr.bf16.mxu0 %v8304_v59  ;;  %vm1728_vm11 = vcmp.lt.s32.totalorder %v6398_v60, %v6535_v10  ;;  %vm1736_vm10 = vcmp.lt.s32.totalorder %v6398_v60, %v6543_v11 }
  0xbf   : > { %4822 = vmatpush1.bf16.msk.msra.mxu1 %vm4821_vm9, %v5115_v19  ;;  %vm1857_vm2 = vmand %vm1585_vm12, %vm1729_vm1  ;;  %2389 = vmatprep.mubr.bf16.mxu1 %v8304_v59  ;;  %vm1592_vm1 = vcmp.ge.s32.totalorder %v6398_v60, %v6520_v5  ;;  %vm1586_vm9 = vcmp.ge.s32.totalorder %v6517_v4, %v6513_v3 }
  0xc0   : > { %vm1865_vm7 = vmand %vm1593_vm4, %vm1737_vm5 }
  0xc1   : > { %vm4791_vm0 = vmpackc.low %vm1865_vm7, %vm1857_vm2  ;;  %vm1730_vm2 = vcmp.lt.s32.totalorder %v6517_v4, %v6535_v10  ;;  %vm1738_vm7 = vcmp.lt.s32.totalorder %v6517_v4, %v6543_v11 }
  0xc2   : > { %4792 = vmatprep.subr.msk.bf16.mxu0 %vm4791_vm0, %v5115_v19  ;;  %vm1859_vm3 = vmand %vm1587_vm15, %vm1731_vm14  ;;  %vm1594_vm14 = vcmp.ge.s32.totalorder %v6517_v4, %v6520_v5  ;;  %vm1601_vm0 = vcmp.ge.s32.totalorder %v6442_v63, %v6572_v12 }
  0xc3   : > { %vm1867_vm12 = vmand %vm1595_vm8, %vm1739_vm6 }
  0xc4   : > { %vm4823_vm4 = vmpackc.low %vm1867_vm12, %vm1859_vm3  ;;  %vm1745_vm3 = vcmp.lt.s32.totalorder %v6442_v63, %v6587_v14  ;;  %vm1753_vm12 = vcmp.lt.s32.totalorder %v6442_v63, %v6595_v15 }
  0xc5   : > { %4824 = vmatprep.subr.msk.bf16.mxu1 %vm4823_vm4, %v5115_v19  ;;  %vm1856_vm5 = vmand %vm1584_vm13, %vm1728_vm11  ;;  %vm1609_vm11 = vcmp.ge.s32.totalorder %v6442_v63, %v6575_v13  ;;  %vm1603_vm4 = vcmp.ge.s32.totalorder %v6472_v2, %v6572_v12 }
  0xc6   : > { %vm1864_vm15 = vmand %vm1592_vm1, %vm1736_vm10 }
  0xc7   : > { %vm4793_vm8 = vmpackc.low %vm1864_vm15, %vm1856_vm5  ;;  %vm1747_vm5 = vcmp.lt.s32.totalorder %v6472_v2, %v6587_v14  ;;  %vm1755_vm15 = vcmp.lt.s32.totalorder %v6472_v2, %v6595_v15 }
  0xc8   : > { %4794 = vmatpush1.bf16.msk.msra.mxu0 %vm4793_vm8, %v5115_v19  ;;  %vm1858_vm6 = vmand %vm1586_vm9, %vm1730_vm2  ;;  %vm1611_vm2 = vcmp.ge.s32.totalorder %v6472_v2, %v6575_v13  ;;  %vm1600_vm8 = vcmp.ge.s32.totalorder %v6398_v60, %v6572_v12 }
  0xc9   : > { %vm1866_vm13 = vmand %vm1594_vm14, %vm1738_vm7 }
  0xca   : > { %vm4825_vm1 = vmpackc.low %vm1866_vm13, %vm1858_vm6  ;;  %vm1744_vm6 = vcmp.lt.s32.totalorder %v6398_v60, %v6587_v14  ;;  %vm1752_vm13 = vcmp.lt.s32.totalorder %v6398_v60, %v6595_v15 }
  0xcb   : > { %4826 = vmatpush1.bf16.msk.msra.mxu1 %vm4825_vm1, %v5115_v19  ;;  %vm1873_vm10 = vmand %vm1601_vm0, %vm1745_vm3  ;;  %vm1608_vm3 = vcmp.ge.s32.totalorder %v6398_v60, %v6575_v13  ;;  %vm1602_vm1 = vcmp.ge.s32.totalorder %v6517_v4, %v6572_v12 }
  0xcc   : > { %vm1881_vm9 = vmand %vm1609_vm11, %vm1753_vm12 }
  0xcd   : > { %vm4795_vm14 = vmpackc.low %vm1881_vm9, %vm1873_vm10  ;;  %vm1746_vm10 = vcmp.lt.s32.totalorder %v6517_v4, %v6587_v14  ;;  %vm1754_vm9 = vcmp.lt.s32.totalorder %v6517_v4, %v6595_v15 }
  0xce   : > { %4796 = vmatprep.subr.msk.bf16.mxu0 %vm4795_vm14, %v5115_v19  ;;  %vm1875_vm7 = vmand %vm1603_vm4, %vm1747_vm5  ;;  %vm1610_vm5 = vcmp.ge.s32.totalorder %v6517_v4, %v6575_v13  ;;  %vm1617_vm14 = vcmp.ge.s32.totalorder %v6442_v63, %v6620_v16 }
  0xcf   : > { %vm1883_vm0 = vmand %vm1611_vm2, %vm1755_vm15 }
  0xd0   : > { %vm4827_vm11 = vmpackc.low %vm1883_vm0, %vm1875_vm7  ;;  %vm1761_vm7 = vcmp.lt.s32.totalorder %v6442_v63, %v6635_v18  ;;  %vm1769_vm0 = vcmp.lt.s32.totalorder %v6442_v63, %v6643_v20 }
  0xd1   : > { %4828 = vmatprep.subr.msk.bf16.mxu1 %vm4827_vm11, %v5115_v19  ;;  %vm1872_vm12 = vmand %vm1600_vm8, %vm1744_vm6  ;;  %vm1625_vm6 = vcmp.ge.s32.totalorder %v6442_v63, %v6623_v17  ;;  %vm1619_vm11 = vcmp.ge.s32.totalorder %v6472_v2, %v6620_v16 }
  0xd2   : > { %vm1880_vm4 = vmand %vm1608_vm3, %vm1752_vm13 }
  0xd3   : > { %vm4797_vm2 = vmpackc.low %vm1880_vm4, %vm1872_vm12  ;;  %vm1763_vm12 = vcmp.lt.s32.totalorder %v6472_v2, %v6635_v18  ;;  %vm1771_vm4 = vcmp.lt.s32.totalorder %v6472_v2, %v6643_v20 }
  0xd4   : > { %4798 = vmatpush1.bf16.msk.msra.mxu0 %vm4797_vm2, %v5115_v19  ;;  %vm1874_vm15 = vmand %vm1602_vm1, %vm1746_vm10  ;;  %vm1627_vm10 = vcmp.ge.s32.totalorder %v6472_v2, %v6623_v17  ;;  %vm1616_vm2 = vcmp.ge.s32.totalorder %v6398_v60, %v6620_v16 }
  0xd5   : > { %vm1882_vm8 = vmand %vm1610_vm5, %vm1754_vm9 }
  0xd6   : > { %vm4829_vm3 = vmpackc.low %vm1882_vm8, %vm1874_vm15  ;;  %vm1760_vm15 = vcmp.lt.s32.totalorder %v6398_v60, %v6635_v18  ;;  %vm1768_vm8 = vcmp.lt.s32.totalorder %v6398_v60, %v6643_v20 }
  0xd7   : > { %4830 = vmatpush1.bf16.msk.msra.mxu1 %vm4829_vm3, %v5115_v19  ;;  %vm1889_vm13 = vmand %vm1617_vm14, %vm1761_vm7  ;;  %vm1624_vm7 = vcmp.ge.s32.totalorder %v6398_v60, %v6623_v17  ;;  %vm1618_vm3 = vcmp.ge.s32.totalorder %v6517_v4, %v6620_v16 }
  0xd8   : > { %vm1897_vm1 = vmand %vm1625_vm6, %vm1769_vm0 }
  0xd9   : > { %vm4799_vm5 = vmpackc.low %vm1897_vm1, %vm1889_vm13  ;;  %vm1762_vm13 = vcmp.lt.s32.totalorder %v6517_v4, %v6635_v18  ;;  %vm1770_vm1 = vcmp.lt.s32.totalorder %v6517_v4, %v6643_v20 }
  0xda   : > { %4800 = vmatprep.subr.msk.bf16.mxu0 %vm4799_vm5, %v5115_v19  ;;  %vm1891_vm9 = vmand %vm1619_vm11, %vm1763_vm12  ;;  %vm1626_vm12 = vcmp.ge.s32.totalorder %v6517_v4, %v6623_v17  ;;  %vm1633_vm5 = vcmp.ge.s32.totalorder %v6442_v63, %v6668_v21 }
  0xdb   : > { %vm1899_vm14 = vmand %vm1627_vm10, %vm1771_vm4 }
  0xdc   : > { %vm4831_vm6 = vmpackc.low %vm1899_vm14, %vm1891_vm9  ;;  %vm1777_vm9 = vcmp.lt.s32.totalorder %v6442_v63, %v6683_v23  ;;  %vm1785_vm14 = vcmp.lt.s32.totalorder %v6442_v63, %v6691_v24 }
  0xdd   : > { %4832 = vmatprep.subr.msk.bf16.mxu1 %vm4831_vm6, %v5115_v19  ;;  %vm1888_vm0 = vmand %vm1616_vm2, %vm1760_vm15  ;;  %vm1641_vm15 = vcmp.ge.s32.totalorder %v6442_v63, %v6671_v22  ;;  %vm1635_vm6 = vcmp.ge.s32.totalorder %v6472_v2, %v6668_v21 }
  0xde   : > { %vm1896_vm11 = vmand %vm1624_vm7, %vm1768_vm8 }
  0xdf   : > { %vm4801_vm10 = vmpackc.low %vm1896_vm11, %vm1888_vm0  ;;  %vm1779_vm0 = vcmp.lt.s32.totalorder %v6472_v2, %v6683_v23  ;;  %vm1787_vm11 = vcmp.lt.s32.totalorder %v6472_v2, %v6691_v24 }
  0xe0   : > { %4802 = vmatpush1.bf16.msk.msra.mxu0 %vm4801_vm10, %v5115_v19  ;;  %vm1890_vm4 = vmand %vm1618_vm3, %vm1762_vm13  ;;  %vm1643_vm13 = vcmp.ge.s32.totalorder %v6472_v2, %v6671_v22  ;;  %vm1632_vm10 = vcmp.ge.s32.totalorder %v6398_v60, %v6668_v21 }
  0xe1   : > { %vm1898_vm2 = vmand %vm1626_vm12, %vm1770_vm1 }
  0xe2   : > { %vm4833_vm7 = vmpackc.low %vm1898_vm2, %vm1890_vm4  ;;  %vm1776_vm4 = vcmp.lt.s32.totalorder %v6398_v60, %v6683_v23  ;;  %vm1784_vm2 = vcmp.lt.s32.totalorder %v6398_v60, %v6691_v24 }
  0xe3   : > { %4834 = vmatpush1.bf16.msk.msra.mxu1 %vm4833_vm7, %v5115_v19  ;;  %vm1905_vm8 = vmand %vm1633_vm5, %vm1777_vm9  ;;  %vm1640_vm9 = vcmp.ge.s32.totalorder %v6398_v60, %v6671_v22  ;;  %vm1634_vm7 = vcmp.ge.s32.totalorder %v6517_v4, %v6668_v21 }
  0xe4   : > { %vm1913_vm3 = vmand %vm1641_vm15, %vm1785_vm14 }
  0xe5   : > { %vm4803_vm12 = vmpackc.low %vm1913_vm3, %vm1905_vm8  ;;  %vm1778_vm8 = vcmp.lt.s32.totalorder %v6517_v4, %v6683_v23  ;;  %vm1786_vm3 = vcmp.lt.s32.totalorder %v6517_v4, %v6691_v24 }
  0xe6   : > { %4804 = vmatprep.subr.msk.bf16.mxu0 %vm4803_vm12, %v5115_v19  ;;  %vm1907_vm1 = vmand %vm1635_vm6, %vm1779_vm0  ;;  %vm1642_vm0 = vcmp.ge.s32.totalorder %v6517_v4, %v6671_v22  ;;  %vm1649_vm12 = vcmp.ge.s32.totalorder %v6442_v63, %v6716_v25 }
  0xe7   : > { %vm1915_vm5 = vmand %vm1643_vm13, %vm1787_vm11 }
  0xe8   : > { %vm4835_vm15 = vmpackc.low %vm1915_vm5, %vm1907_vm1  ;;  %vm1793_vm1 = vcmp.lt.s32.totalorder %v6442_v63, %v6731_v26  ;;  %vm1801_vm5 = vcmp.lt.s32.totalorder %v6442_v63, %v6739_v27 }
  0xe9   : > { %4836 = vmatprep.subr.msk.bf16.mxu1 %vm4835_vm15, %v5115_v19  ;;  %vm1904_vm14 = vmand %vm1632_vm10, %vm1776_vm4  ;;  %vm1657_vm4 = vcmp.ge.s32.totalorder %v6442_v63, %v6719_v32  ;;  %vm1651_vm15 = vcmp.ge.s32.totalorder %v6472_v2, %v6716_v25 }
  0xea   : > { %vm1912_vm6 = vmand %vm1640_vm9, %vm1784_vm2 }
  0xeb   : > { %vm4805_vm13 = vmpackc.low %vm1912_vm6, %vm1904_vm14  ;;  %vm1795_vm14 = vcmp.lt.s32.totalorder %v6472_v2, %v6731_v26  ;;  %vm1803_vm6 = vcmp.lt.s32.totalorder %v6472_v2, %v6739_v27 }
  0xec   : > { %4806 = vmatpush1.bf16.msk.msra.mxu0 %vm4805_vm13, %v5115_v19  ;;  %vm1906_vm11 = vmand %vm1634_vm7, %vm1778_vm8  ;;  %vm1659_vm8 = vcmp.ge.s32.totalorder %v6472_v2, %v6719_v32  ;;  %vm1648_vm13 = vcmp.ge.s32.totalorder %v6398_v60, %v6716_v25 }
  0xed   : > { %vm1914_vm10 = vmand %vm1642_vm0, %vm1786_vm3 }
  0xee   : > { %vm4837_vm9 = vmpackc.low %vm1914_vm10, %vm1906_vm11  ;;  %vm1792_vm11 = vcmp.lt.s32.totalorder %v6398_v60, %v6731_v26  ;;  %vm1800_vm10 = vcmp.lt.s32.totalorder %v6398_v60, %v6739_v27 }
  0xef   : > { %4838 = vmatpush1.bf16.msk.msra.mxu1 %vm4837_vm9, %v5115_v19  ;;  %vm1921_vm2 = vmand %vm1649_vm12, %vm1793_vm1  ;;  %vm1656_vm1 = vcmp.ge.s32.totalorder %v6398_v60, %v6719_v32  ;;  %vm1650_vm9 = vcmp.ge.s32.totalorder %v6517_v4, %v6716_v25 }
  0xf0   : > { %vm1929_vm7 = vmand %vm1657_vm4, %vm1801_vm5 }
  0xf1   : > { %vm4807_vm0 = vmpackc.low %vm1929_vm7, %vm1921_vm2  ;;  %vm1794_vm2 = vcmp.lt.s32.totalorder %v6517_v4, %v6731_v26  ;;  %vm1802_vm7 = vcmp.lt.s32.totalorder %v6517_v4, %v6739_v27 }
  0xf2   : > { %4808 = vmatprep.subr.msk.bf16.mxu0 %vm4807_vm0, %v5115_v19  ;;  %vm1923_vm3 = vmand %vm1651_vm15, %vm1795_vm14  ;;  %vm1658_vm14 = vcmp.ge.s32.totalorder %v6517_v4, %v6719_v32  ;;  %vm1665_vm0 = vcmp.ge.s32.totalorder %v6442_v63, %v6764_v33 }
  0xf3   : > { %vm1931_vm12 = vmand %vm1659_vm8, %vm1803_vm6 }
  0xf4   : > { %vm4839_vm4 = vmpackc.low %vm1931_vm12, %vm1923_vm3  ;;  %vm1809_vm3 = vcmp.lt.s32.totalorder %v6442_v63, %v6779_v28  ;;  %vm1817_vm12 = vcmp.lt.s32.totalorder %v6442_v63, %v6787_v29 }
  0xf5   : > { %4840 = vmatprep.subr.msk.bf16.mxu1 %vm4839_vm4, %v5115_v19  ;;  %vm1920_vm5 = vmand %vm1648_vm13, %vm1792_vm11  ;;  %vm1673_vm11 = vcmp.ge.s32.totalorder %v6442_v63, %v6767_v34  ;;  %vm1667_vm4 = vcmp.ge.s32.totalorder %v6472_v2, %v6764_v33 }
  0xf6   : > { %vm1928_vm15 = vmand %vm1656_vm1, %vm1800_vm10 }
  0xf7   : > { %vm4809_vm8 = vmpackc.low %vm1928_vm15, %vm1920_vm5  ;;  %vm1811_vm5 = vcmp.lt.s32.totalorder %v6472_v2, %v6779_v28  ;;  %vm1819_vm15 = vcmp.lt.s32.totalorder %v6472_v2, %v6787_v29 }
  0xf8   : > { %4810 = vmatpush1.bf16.msk.msra.mxu0 %vm4809_vm8, %v5115_v19  ;;  %vm1922_vm6 = vmand %vm1650_vm9, %vm1794_vm2  ;;  %vm1675_vm2 = vcmp.ge.s32.totalorder %v6472_v2, %v6767_v34  ;;  %vm1664_vm8 = vcmp.ge.s32.totalorder %v6398_v60, %v6764_v33 }
  0xf9   : > { %vm1930_vm13 = vmand %vm1658_vm14, %vm1802_vm7 }
  0xfa   : > { %vm4841_vm1 = vmpackc.low %vm1930_vm13, %vm1922_vm6  ;;  %vm1808_vm6 = vcmp.lt.s32.totalorder %v6398_v60, %v6779_v28  ;;  %vm1816_vm13 = vcmp.lt.s32.totalorder %v6398_v60, %v6787_v29 }
  0xfb   : > { %4842 = vmatpush1.bf16.msk.msra.mxu1 %vm4841_vm1, %v5115_v19  ;;  %vm1937_vm10 = vmand %vm1665_vm0, %vm1809_vm3  ;;  %vm1672_vm3 = vcmp.ge.s32.totalorder %v6398_v60, %v6767_v34  ;;  %vm1666_vm1 = vcmp.ge.s32.totalorder %v6517_v4, %v6764_v33 }
  0xfc   : > { %vm1945_vm9 = vmand %vm1673_vm11, %vm1817_vm12 }
  0xfd   : > { %vm4811_vm14 = vmpackc.low %vm1945_vm9, %vm1937_vm10  ;;  %vm1810_vm10 = vcmp.lt.s32.totalorder %v6517_v4, %v6779_v28  ;;  %vm1818_vm9 = vcmp.lt.s32.totalorder %v6517_v4, %v6787_v29 }
  0xfe   : > { %4812 = vmatprep.subr.msk.bf16.mxu0 %vm4811_vm14, %v5115_v19  ;;  %vm1939_vm7 = vmand %vm1667_vm4, %vm1811_vm5  ;;  %vm1674_vm5 = vcmp.ge.s32.totalorder %v6517_v4, %v6767_v34  ;;  %vm1681_vm14 = vcmp.ge.s32.totalorder %v6442_v63, %v6812_v35 }
  0xff   : > { %vm1947_vm0 = vmand %vm1675_vm2, %vm1819_vm15 }
 0x100   : > { %vm4843_vm11 = vmpackc.low %vm1947_vm0, %vm1939_vm7  ;;  %vm1825_vm7 = vcmp.lt.s32.totalorder %v6442_v63, %v6827_v30  ;;  %vm1833_vm0 = vcmp.lt.s32.totalorder %v6442_v63, %v6835_v31 }
 0x101   : > { %4844 = vmatprep.subr.msk.bf16.mxu1 %vm4843_vm11, %v5115_v19  ;;  %vm1936_vm12 = vmand %vm1664_vm8, %vm1808_vm6  ;;  %vm1689_vm6 = vcmp.ge.s32.totalorder %v6442_v63, %v6815_v36  ;;  %vm1683_vm11 = vcmp.ge.s32.totalorder %v6472_v2, %v6812_v35 }
 0x102   : > { %vm1944_vm4 = vmand %vm1672_vm3, %vm1816_vm13 }
 0x103   : > { %vm4813_vm2 = vmpackc.low %vm1944_vm4, %vm1936_vm12  ;;  %vm1827_vm12 = vcmp.lt.s32.totalorder %v6472_v2, %v6827_v30  ;;  %vm1835_vm4 = vcmp.lt.s32.totalorder %v6472_v2, %v6835_v31 }
 0x104   : > { %4814 = vmatpush1.bf16.msk.msra.mxu0 %vm4813_vm2, %v5115_v19  ;;  %vm1938_vm15 = vmand %vm1666_vm1, %vm1810_vm10  ;;  %vm1691_vm10 = vcmp.ge.s32.totalorder %v6472_v2, %v6815_v36  ;;  %vm1680_vm2 = vcmp.ge.s32.totalorder %v6398_v60, %v6812_v35 }
 0x105   : > { %vm1946_vm8 = vmand %vm1674_vm5, %vm1818_vm9 }
 0x106   : > { %vm4845_vm3 = vmpackc.low %vm1946_vm8, %vm1938_vm15  ;;  %vm1824_vm15 = vcmp.lt.s32.totalorder %v6398_v60, %v6827_v30  ;;  %vm1832_vm8 = vcmp.lt.s32.totalorder %v6398_v60, %v6835_v31 }
 0x107   : > { %4846 = vmatpush1.bf16.msk.msra.mxu1 %vm4845_vm3, %v5115_v19  ;;  %vm1953_vm13 = vmand %vm1681_vm14, %vm1825_vm7  ;;  %vm1688_vm7 = vcmp.ge.s32.totalorder %v6398_v60, %v6815_v36  ;;  %vm1682_vm3 = vcmp.ge.s32.totalorder %v6517_v4, %v6812_v35 }
 0x108   : > { %vm1961_vm1 = vmand %vm1689_vm6, %vm1833_vm0 }
 0x109   : > { %vm4815_vm5 = vmpackc.low %vm1961_vm1, %vm1953_vm13  ;;  %vm1826_vm13 = vcmp.lt.s32.totalorder %v6517_v4, %v6827_v30  ;;  %vm1834_vm1 = vcmp.lt.s32.totalorder %v6517_v4, %v6835_v31 }
 0x10a   : > { %4816 = vmatprep.subr.msk.bf16.mxu0 %vm4815_vm5, %v5115_v19  ;;  %vm1955_vm9 = vmand %vm1683_vm11, %vm1827_vm12  ;;  %vm1690_vm12 = vcmp.ge.s32.totalorder %v6517_v4, %v6815_v36  ;;  %vm1573_vm5 = vcmp.ge.s32.totalorder %v6869_v38, %v6408_v61 }
 0x10b   : > { %vm1963_vm14 = vmand %vm1691_vm10, %vm1835_vm4 }
 0x10c   : > { %vm4847_vm6 = vmpackc.low %vm1963_vm14, %vm1955_vm9  ;;  %vm1717_vm9 = vcmp.lt.s32.totalorder %v6869_v38, %v6445_v0  ;;  %vm1725_vm14 = vcmp.lt.s32.totalorder %v6869_v38, %v6455_v1 }
 0x10d   : > { %4848 = vmatprep.subr.msk.bf16.mxu1 %vm4847_vm6, %v5115_v19  ;;  %vm1952_vm0 = vmand %vm1680_vm2, %vm1824_vm15  ;;  %vm1581_vm15 = vcmp.ge.s32.totalorder %v6869_v38, %v6418_v62  ;;  %vm1575_vm6 = vcmp.ge.s32.totalorder %v6885_v43, %v6408_v61 }
 0x10e   : > { %vm1960_vm11 = vmand %vm1688_vm7, %vm1832_vm8 }
 0x10f   : > { %vm4817_vm10 = vmpackc.low %vm1960_vm11, %vm1952_vm0  ;;  %vm1719_vm0 = vcmp.lt.s32.totalorder %v6885_v43, %v6445_v0  ;;  %vm1727_vm11 = vcmp.lt.s32.totalorder %v6885_v43, %v6455_v1 }
 0x110   : > { %4818 = vmatpush1.bf16.msk.msra.mxu0 %vm4817_vm10, %v5115_v19  ;;  %vm1954_vm4 = vmand %vm1682_vm3, %vm1826_vm13  ;;  %vm1583_vm13 = vcmp.ge.s32.totalorder %v6885_v43, %v6418_v62  ;;  %vm1572_vm10 = vcmp.ge.s32.totalorder %v6897_v44, %v6408_v61 }
 0x111   : > { %vm1962_vm2 = vmand %vm1690_vm12, %vm1834_vm1 }
 0x112   : > { %vm4849_vm7 = vmpackc.low %vm1962_vm2, %vm1954_vm4  ;;  %vm1716_vm4 = vcmp.lt.s32.totalorder %v6897_v44, %v6445_v0  ;;  %vm1724_vm2 = vcmp.lt.s32.totalorder %v6897_v44, %v6455_v1 }
 0x113   : > { %4850 = vmatpush1.bf16.msk.msra.mxu1 %vm4849_vm7, %v5115_v19  ;;  %2337 = vmatmul.mubr.bf16.vlgmr.msra.gmra.mrb[16].mxu0 %v6882_v39  ;;  %vm1845_vm8 = vmand %vm1573_vm5, %vm1717_vm9  ;;  %vm1580_vm9 = vcmp.ge.s32.totalorder %v6897_v44, %v6418_v62  ;;  %vm1574_vm7 = vcmp.ge.s32.totalorder %v6911_v45, %v6408_v61 }
 0x114   : > { %vm1853_vm3 = vmand %vm1581_vm15, %vm1725_vm14  ;;  %2346 = vmatprep.mubr.bf16.mxu0 %v8304_v59 }
 0x115   : > { %vm4851_vm12 = vmpackc.low %vm1853_vm3, %vm1845_vm8  ;;  %vm1718_vm8 = vcmp.lt.s32.totalorder %v6911_v45, %v6445_v0  ;;  %vm1726_vm3 = vcmp.lt.s32.totalorder %v6911_v45, %v6455_v1 }
 0x116   : > { %2390 = vmatmul.mubr.bf16.vlgmr.msra.gmra.mrb[16].mxu1 %v6882_v39  ;;  %4852 = vmatprep.subr.msk.bf16.mxu0 %vm4851_vm12, %v5115_v19  ;;  %vm1847_vm1 = vmand %vm1575_vm6, %vm1719_vm0  ;;  %vm1582_vm0 = vcmp.ge.s32.totalorder %v6911_v45, %v6418_v62  ;;  %vm1589_vm12 = vcmp.ge.s32.totalorder %v6869_v38, %v6513_v3 }
 0x117   : > { %vm1855_vm5 = vmand %vm1583_vm13, %vm1727_vm11  ;;  %2399 = vmatprep.mubr.bf16.mxu1 %v8304_v59 }
 0x118   : > { %vm4883_vm15 = vmpackc.low %vm1855_vm5, %vm1847_vm1  ;;  %vm1733_vm1 = vcmp.lt.s32.totalorder %v6869_v38, %v6535_v10  ;;  %vm1741_vm5 = vcmp.lt.s32.totalorder %v6869_v38, %v6543_v11 }
 0x119   : > { %4884 = vmatprep.subr.msk.bf16.mxu1 %vm4883_vm15, %v5115_v19  ;;  %vm1844_vm14 = vmand %vm1572_vm10, %vm1716_vm4  ;;  %vm1597_vm4 = vcmp.ge.s32.totalorder %v6869_v38, %v6520_v5  ;;  %vm1591_vm15 = vcmp.ge.s32.totalorder %v6885_v43, %v6513_v3 }
 0x11a   : > { %vm1852_vm6 = vmand %vm1580_vm9, %vm1724_vm2 }
 0x11b   : > { %vm4853_vm13 = vmpackc.low %vm1852_vm6, %vm1844_vm14  ;;  %2347 = vmatmul.mubr.bf16.gmra.mrb[20].mxu0 %v6926_v46  ;;  %vm1735_vm14 = vcmp.lt.s32.totalorder %v6885_v43, %v6535_v10  ;;  %vm1743_vm6 = vcmp.lt.s32.totalorder %v6885_v43, %v6543_v11 }
 0x11c   : > { %4854 = vmatpush1.bf16.msk.msra.mxu0 %vm4853_vm13, %v5115_v19  ;;  %vm1846_vm11 = vmand %vm1574_vm7, %vm1718_vm8  ;;  %2442 = vmatprep.mubr.bf16.mxu0 %v8304_v59  ;;  %vm1599_vm8 = vcmp.ge.s32.totalorder %v6885_v43, %v6520_v5  ;;  %vm1588_vm13 = vcmp.ge.s32.totalorder %v6897_v44, %v6513_v3 }
 0x11d   : > { %vm1854_vm10 = vmand %vm1582_vm0, %vm1726_vm3 }
 0x11e   : > { %vm4885_vm9 = vmpackc.low %vm1854_vm10, %vm1846_vm11  ;;  %2400 = vmatmul.mubr.bf16.gmra.mrb[20].mxu1 %v6926_v46  ;;  %vm1732_vm11 = vcmp.lt.s32.totalorder %v6897_v44, %v6535_v10  ;;  %vm1740_vm10 = vcmp.lt.s32.totalorder %v6897_v44, %v6543_v11 }
 0x11f   : > { %4886 = vmatpush1.bf16.msk.msra.mxu1 %vm4885_vm9, %v5115_v19  ;;  %vm1861_vm2 = vmand %vm1589_vm12, %vm1733_vm1  ;;  %2495 = vmatprep.mubr.bf16.mxu1 %v8304_v59  ;;  %vm1596_vm1 = vcmp.ge.s32.totalorder %v6897_v44, %v6520_v5  ;;  %vm1590_vm9 = vcmp.ge.s32.totalorder %v6911_v45, %v6513_v3 }
 0x120   : > { %vm1869_vm7 = vmand %vm1597_vm4, %vm1741_vm5 }
 0x121   : > { %vm4855_vm0 = vmpackc.low %vm1869_vm7, %vm1861_vm2  ;;  %vm1734_vm2 = vcmp.lt.s32.totalorder %v6911_v45, %v6535_v10  ;;  %vm1742_vm7 = vcmp.lt.s32.totalorder %v6911_v45, %v6543_v11 }
 0x122   : > { %4856 = vmatprep.subr.msk.bf16.mxu0 %vm4855_vm0, %v5115_v19  ;;  %vm1863_vm3 = vmand %vm1591_vm15, %vm1735_vm14  ;;  %vm1598_vm14 = vcmp.ge.s32.totalorder %v6911_v45, %v6520_v5  ;;  %vm1605_vm0 = vcmp.ge.s32.totalorder %v6869_v38, %v6572_v12 }
 0x123   : > { %vm1871_vm12 = vmand %vm1599_vm8, %vm1743_vm6 }
 0x124   : > { %vm4887_vm4 = vmpackc.low %vm1871_vm12, %vm1863_vm3  ;;  %vm1749_vm3 = vcmp.lt.s32.totalorder %v6869_v38, %v6587_v14  ;;  %vm1757_vm12 = vcmp.lt.s32.totalorder %v6869_v38, %v6595_v15 }
 0x125   : > { %4888 = vmatprep.subr.msk.bf16.mxu1 %vm4887_vm4, %v5115_v19  ;;  %vm1860_vm5 = vmand %vm1588_vm13, %vm1732_vm11  ;;  %vm1613_vm11 = vcmp.ge.s32.totalorder %v6869_v38, %v6575_v13  ;;  %vm1607_vm4 = vcmp.ge.s32.totalorder %v6885_v43, %v6572_v12 }
 0x126   : > { %vm1868_vm15 = vmand %vm1596_vm1, %vm1740_vm10 }
 0x127   : > { %vm4857_vm8 = vmpackc.low %vm1868_vm15, %vm1860_vm5  ;;  %vm1751_vm5 = vcmp.lt.s32.totalorder %v6885_v43, %v6587_v14  ;;  %vm1759_vm15 = vcmp.lt.s32.totalorder %v6885_v43, %v6595_v15 }
 0x128   : > { %4858 = vmatpush1.bf16.msk.msra.mxu0 %vm4857_vm8, %v5115_v19  ;;  %vm1862_vm6 = vmand %vm1590_vm9, %vm1734_vm2  ;;  %vm1615_vm2 = vcmp.ge.s32.totalorder %v6885_v43, %v6575_v13  ;;  %vm1604_vm8 = vcmp.ge.s32.totalorder %v6897_v44, %v6572_v12 }
 0x129   : > { %vm1870_vm13 = vmand %vm1598_vm14, %vm1742_vm7 }
 0x12a   : > { %vm4889_vm1 = vmpackc.low %vm1870_vm13, %vm1862_vm6  ;;  %vm1748_vm6 = vcmp.lt.s32.totalorder %v6897_v44, %v6587_v14  ;;  %vm1756_vm13 = vcmp.lt.s32.totalorder %v6897_v44, %v6595_v15 }
 0x12b   : > { %4890 = vmatpush1.bf16.msk.msra.mxu1 %vm4889_vm1, %v5115_v19  ;;  %vm1877_vm10 = vmand %vm1605_vm0, %vm1749_vm3  ;;  %vm1612_vm3 = vcmp.ge.s32.totalorder %v6897_v44, %v6575_v13  ;;  %vm1606_vm1 = vcmp.ge.s32.totalorder %v6911_v45, %v6572_v12 }
 0x12c   : > { %vm1885_vm9 = vmand %vm1613_vm11, %vm1757_vm12 }
 0x12d   : > { %vm4859_vm14 = vmpackc.low %vm1885_vm9, %vm1877_vm10  ;;  %vm1750_vm10 = vcmp.lt.s32.totalorder %v6911_v45, %v6587_v14  ;;  %vm1758_vm9 = vcmp.lt.s32.totalorder %v6911_v45, %v6595_v15 }
 0x12e   : > { %4860 = vmatprep.subr.msk.bf16.mxu0 %vm4859_vm14, %v5115_v19  ;;  %vm1879_vm7 = vmand %vm1607_vm4, %vm1751_vm5  ;;  %vm1614_vm5 = vcmp.ge.s32.totalorder %v6911_v45, %v6575_v13  ;;  %vm1621_vm14 = vcmp.ge.s32.totalorder %v6869_v38, %v6620_v16 }
 0x12f   : > { %vm1887_vm0 = vmand %vm1615_vm2, %vm1759_vm15 }
 0x130   : > { %vm4891_vm11 = vmpackc.low %vm1887_vm0, %vm1879_vm7  ;;  %vm1765_vm7 = vcmp.lt.s32.totalorder %v6869_v38, %v6635_v18  ;;  %vm1773_vm0 = vcmp.lt.s32.totalorder %v6869_v38, %v6643_v20 }
 0x131   : > { %4892 = vmatprep.subr.msk.bf16.mxu1 %vm4891_vm11, %v5115_v19  ;;  %vm1876_vm12 = vmand %vm1604_vm8, %vm1748_vm6  ;;  %vm1629_vm6 = vcmp.ge.s32.totalorder %v6869_v38, %v6623_v17  ;;  %vm1623_vm11 = vcmp.ge.s32.totalorder %v6885_v43, %v6620_v16 }
 0x132   : > { %vm1884_vm4 = vmand %vm1612_vm3, %vm1756_vm13 }
 0x133   : > { %vm4861_vm2 = vmpackc.low %vm1884_vm4, %vm1876_vm12  ;;  %vm1767_vm12 = vcmp.lt.s32.totalorder %v6885_v43, %v6635_v18  ;;  %vm1775_vm4 = vcmp.lt.s32.totalorder %v6885_v43, %v6643_v20 }
 0x134   : > { %4862 = vmatpush1.bf16.msk.msra.mxu0 %vm4861_vm2, %v5115_v19  ;;  %vm1878_vm15 = vmand %vm1606_vm1, %vm1750_vm10  ;;  %vm1631_vm10 = vcmp.ge.s32.totalorder %v6885_v43, %v6623_v17  ;;  %vm1620_vm2 = vcmp.ge.s32.totalorder %v6897_v44, %v6620_v16 }
 0x135   : > { %vm1886_vm8 = vmand %vm1614_vm5, %vm1758_vm9 }
 0x136   : > { %vm4893_vm3 = vmpackc.low %vm1886_vm8, %vm1878_vm15  ;;  %vm1764_vm15 = vcmp.lt.s32.totalorder %v6897_v44, %v6635_v18  ;;  %vm1772_vm8 = vcmp.lt.s32.totalorder %v6897_v44, %v6643_v20 }
 0x137   : > { %4894 = vmatpush1.bf16.msk.msra.mxu1 %vm4893_vm3, %v5115_v19  ;;  %vm1893_vm13 = vmand %vm1621_vm14, %vm1765_vm7  ;;  %vm1628_vm7 = vcmp.ge.s32.totalorder %v6897_v44, %v6623_v17  ;;  %vm1622_vm3 = vcmp.ge.s32.totalorder %v6911_v45, %v6620_v16 }
 0x138   : > { %vm1901_vm1 = vmand %vm1629_vm6, %vm1773_vm0 }
 0x139   : > { %vm4863_vm5 = vmpackc.low %vm1901_vm1, %vm1893_vm13  ;;  %vm1766_vm13 = vcmp.lt.s32.totalorder %v6911_v45, %v6635_v18  ;;  %vm1774_vm1 = vcmp.lt.s32.totalorder %v6911_v45, %v6643_v20 }
 0x13a   : > { %4864 = vmatprep.subr.msk.bf16.mxu0 %vm4863_vm5, %v5115_v19  ;;  %vm1895_vm9 = vmand %vm1623_vm11, %vm1767_vm12  ;;  %vm1630_vm12 = vcmp.ge.s32.totalorder %v6911_v45, %v6623_v17  ;;  %vm1637_vm5 = vcmp.ge.s32.totalorder %v6869_v38, %v6668_v21 }
 0x13b   : > { %vm1903_vm14 = vmand %vm1631_vm10, %vm1775_vm4 }
 0x13c   : > { %vm4895_vm6 = vmpackc.low %vm1903_vm14, %vm1895_vm9  ;;  %vm1781_vm9 = vcmp.lt.s32.totalorder %v6869_v38, %v6683_v23  ;;  %vm1789_vm14 = vcmp.lt.s32.totalorder %v6869_v38, %v6691_v24 }
 0x13d   : > { %4896 = vmatprep.subr.msk.bf16.mxu1 %vm4895_vm6, %v5115_v19  ;;  %vm1892_vm0 = vmand %vm1620_vm2, %vm1764_vm15  ;;  %vm1645_vm15 = vcmp.ge.s32.totalorder %v6869_v38, %v6671_v22  ;;  %vm1639_vm6 = vcmp.ge.s32.totalorder %v6885_v43, %v6668_v21 }
 0x13e   : > { %vm1900_vm11 = vmand %vm1628_vm7, %vm1772_vm8 }
 0x13f   : > { %vm4865_vm10 = vmpackc.low %vm1900_vm11, %vm1892_vm0  ;;  %vm1783_vm0 = vcmp.lt.s32.totalorder %v6885_v43, %v6683_v23  ;;  %vm1791_vm11 = vcmp.lt.s32.totalorder %v6885_v43, %v6691_v24 }
 0x140   : > { %4866 = vmatpush1.bf16.msk.msra.mxu0 %vm4865_vm10, %v5115_v19  ;;  %vm1894_vm4 = vmand %vm1622_vm3, %vm1766_vm13  ;;  %vm1647_vm13 = vcmp.ge.s32.totalorder %v6885_v43, %v6671_v22  ;;  %vm1636_vm10 = vcmp.ge.s32.totalorder %v6897_v44, %v6668_v21 }
 0x141   : > { %vm1902_vm2 = vmand %vm1630_vm12, %vm1774_vm1 }
 0x142   : > { %vm4897_vm7 = vmpackc.low %vm1902_vm2, %vm1894_vm4  ;;  %vm1780_vm4 = vcmp.lt.s32.totalorder %v6897_v44, %v6683_v23  ;;  %vm1788_vm2 = vcmp.lt.s32.totalorder %v6897_v44, %v6691_v24 }
 0x143   : > { %4898 = vmatpush1.bf16.msk.msra.mxu1 %vm4897_vm7, %v5115_v19  ;;  %vm1909_vm8 = vmand %vm1637_vm5, %vm1781_vm9  ;;  %vm1644_vm9 = vcmp.ge.s32.totalorder %v6897_v44, %v6671_v22  ;;  %vm1638_vm7 = vcmp.ge.s32.totalorder %v6911_v45, %v6668_v21 }
 0x144   : > { %vm1917_vm3 = vmand %vm1645_vm15, %vm1789_vm14 }
 0x145   : > { %vm4867_vm12 = vmpackc.low %vm1917_vm3, %vm1909_vm8  ;;  %vm1782_vm8 = vcmp.lt.s32.totalorder %v6911_v45, %v6683_v23  ;;  %vm1790_vm3 = vcmp.lt.s32.totalorder %v6911_v45, %v6691_v24 }
 0x146   : > { %4868 = vmatprep.subr.msk.bf16.mxu0 %vm4867_vm12, %v5115_v19  ;;  %vm1911_vm1 = vmand %vm1639_vm6, %vm1783_vm0  ;;  %vm1646_vm0 = vcmp.ge.s32.totalorder %v6911_v45, %v6671_v22  ;;  %vm1653_vm12 = vcmp.ge.s32.totalorder %v6869_v38, %v6716_v25 }
 0x147   : > { %vm1919_vm5 = vmand %vm1647_vm13, %vm1791_vm11 }
 0x148   : > { %vm4899_vm15 = vmpackc.low %vm1919_vm5, %vm1911_vm1  ;;  %v7078_v47 = vpop.f32.mrb[0].mxu0  ;;  %vm1797_vm1 = vcmp.lt.s32.totalorder %v6869_v38, %v6731_v26  ;;  %vm1805_vm5 = vcmp.lt.s32.totalorder %v6869_v38, %v6739_v27 }
 0x149   : > { %4900 = vmatprep.subr.msk.bf16.mxu1 %vm4899_vm15, %v5115_v19  ;;  %vm7081_vm14 = vmand %vm1636_vm10, %vm1780_vm4  ;;  %3824 = vst [vmem:[%s7089_s18 + $0x80] sm:$0xff] %v7078_v47  ;;  %v7093_v49 = vpop.f32.mrb[0].mxu1  ;;  %v7095_v50 = vpop.f32.mrb[1].mxu0  ;;  %vm1661_vm4 = vcmp.ge.s32.totalorder %v6869_v38, %v6719_v32  ;;  %vm1655_vm15 = vcmp.ge.s32.totalorder %v6885_v43, %v6716_v25 }
 0x14a   : > { %vm1916_vm6 = vmand %vm1644_vm9, %vm1788_vm2  ;;  %3826 = vst [vmem:[%s7089_s18 + $0x90] sm:$0xff] %v7093_v49  ;;  %v7105_v51 = vpop.f32.mrb[1].mxu1  ;;  %v7107_v52 = vpop.f32.mrb[2].mxu0 }
 0x14b   : > { %3825 = vst [vmem:[%s7089_s18 + $0x88] sm:$0xff] %v7095_v50  ;;  %vm4869_vm13 = vmpackc.low %vm1916_vm6, %vm7081_vm14  ;;  %v3551_v53 = vpack.c.bf16 %v7107_v52, %v7078_v47  ;;  %v7117_v54 = vpop.f32.mrb[2].mxu1  ;;  %v7119_v55 = vpop.f32.mrb[3].mxu0  ;;  %vm1799_vm14 = vcmp.lt.s32.totalorder %v6885_v43, %v6731_v26  ;;  %vm1807_vm6 = vcmp.lt.s32.totalorder %v6885_v43, %v6739_v27 }
 0x14c   : > { %3827 = vst [vmem:[%s7089_s18 + $0x98] sm:$0xff] %v7105_v51  ;;  %3832 = vst [vmem:[%s7089_s18 + $0xc0] sm:$0xff] %v7107_v52  ;;  %4870 = vmatpush1.bf16.msk.msra.mxu0 %vm4869_vm13, %v5115_v19  ;;  %v3553_v56 = vpack.c.bf16 %v7117_v54, %v7093_v49  ;;  %v3552_v57 = vpack.c.bf16 %v7119_v55, %v7095_v50  ;;  %v7140_v58 = vpop.f32.mrb[3].mxu1  ;;  %vm1652_vm13 = vcmp.ge.s32.totalorder %v6897_v44, %v6716_v25 }
 0x14d   : > { %vm1910_vm11 = vmand %vm1638_vm7, %vm1782_vm8  ;;  %3834 = vst [vmem:[%s7089_s18 + $0xd0] sm:$0xff] %v7117_v54  ;;  %v3554_v60 = vpack.c.bf16 %v7140_v58, %v7105_v51  ;;  %vm1663_vm8 = vcmp.ge.s32.totalorder %v6885_v43, %v6719_v32 }
 0x14e   : > { %3833 = vst [vmem:[%s7089_s18 + $0xc8] sm:$0xff] %v7119_v55  ;;  %vm1918_vm10 = vmand %vm1646_vm0, %vm1790_vm3 }
 0x14f   : > { %3835 = vst [vmem:[%s7089_s18 + $0xd8] sm:$0xff] %v7140_v58  ;;  %vm4901_vm9 = vmpackc.low %vm1918_vm10, %vm1910_vm11  ;;  %vm1796_vm11 = vcmp.lt.s32.totalorder %v6897_v44, %v6731_v26  ;;  %vm1804_vm10 = vcmp.lt.s32.totalorder %v6897_v44, %v6739_v27 }
 0x150   : > { %4902 = vmatpush1.bf16.msk.msra.mxu1 %vm4901_vm9, %v5115_v19  ;;  %vm1925_vm2 = vmand %vm1653_vm12, %vm1797_vm1  ;;  %v7165_v61 = vpop.f32.mrb[4].mxu0  ;;  %vm1660_vm1 = vcmp.ge.s32.totalorder %v6897_v44, %v6719_v32  ;;  %vm1654_vm9 = vcmp.ge.s32.totalorder %v6911_v45, %v6716_v25 }
 0x151   : > { %vm1933_vm7 = vmand %vm1661_vm4, %vm1805_vm5  ;;  %v7167_v62 = vpop.f32.mrb[4].mxu1  ;;  %v7169_v63 = vpop.f32.mrb[5].mxu0 }
 0x152   : > { %vm4871_vm0 = vmpackc.low %vm1933_vm7, %vm1925_vm2  ;;  %v7176_v0 = vpop.f32.mrb[5].mxu1  ;;  %v7178_v1 = vpop.f32.mrb[6].mxu0  ;;  %vm1798_vm2 = vcmp.lt.s32.totalorder %v6911_v45, %v6731_v26  ;;  %vm1806_vm7 = vcmp.lt.s32.totalorder %v6911_v45, %v6739_v27 }
 0x153   : > { %4872 = vmatprep.subr.msk.bf16.mxu0 %vm4871_vm0, %v5115_v19  ;;  %vm1927_vm3 = vmand %vm1655_vm15, %vm1799_vm14  ;;  %v7184_v2 = vpop.f32.mrb[6].mxu1  ;;  %v7186_v3 = vpop.f32.mrb[7].mxu0  ;;  %vm1662_vm14 = vcmp.ge.s32.totalorder %v6911_v45, %v6719_v32  ;;  %vm1669_vm0 = vcmp.ge.s32.totalorder %v6869_v38, %v6764_v33 }
 0x154   : > { %vm1935_vm12 = vmand %vm1663_vm8, %vm1807_vm6  ;;  %v7188_v4 = vpop.f32.mrb[7].mxu1 }
 0x155   : > { %vm4903_vm4 = vmpackc.low %vm1935_vm12, %vm1927_vm3  ;;  %vm1813_vm3 = vcmp.lt.s32.totalorder %v6869_v38, %v6779_v28  ;;  %vm1821_vm12 = vcmp.lt.s32.totalorder %v6869_v38, %v6787_v29 }
 0x156   : > { %4904 = vmatprep.subr.msk.bf16.mxu1 %vm4903_vm4, %v5115_v19  ;;  %vm1924_vm5 = vmand %vm1652_vm13, %vm1796_vm11  ;;  %vm1677_vm11 = vcmp.ge.s32.totalorder %v6869_v38, %v6767_v34  ;;  %vm1671_vm4 = vcmp.ge.s32.totalorder %v6885_v43, %v6764_v33 }
 0x157   : > { %vm1932_vm15 = vmand %vm1660_vm1, %vm1804_vm10 }
 0x158   : > { %vm4873_vm8 = vmpackc.low %vm1932_vm15, %vm1924_vm5  ;;  %vm1815_vm5 = vcmp.lt.s32.totalorder %v6885_v43, %v6779_v28  ;;  %vm1823_vm15 = vcmp.lt.s32.totalorder %v6885_v43, %v6787_v29 }
 0x159   : > { %4874 = vmatpush1.bf16.msk.msra.mxu0 %vm4873_vm8, %v5115_v19  ;;  %vm1926_vm6 = vmand %vm1654_vm9, %vm1798_vm2  ;;  %vm1679_vm2 = vcmp.ge.s32.totalorder %v6885_v43, %v6767_v34  ;;  %vm1668_vm8 = vcmp.ge.s32.totalorder %v6897_v44, %v6764_v33 }
 0x15a   : > { %vm1934_vm13 = vmand %vm1662_vm14, %vm1806_vm7 }
 0x15b   : > { %vm4905_vm1 = vmpackc.low %vm1934_vm13, %vm1926_vm6  ;;  %vm1812_vm6 = vcmp.lt.s32.totalorder %v6897_v44, %v6779_v28  ;;  %vm1820_vm13 = vcmp.lt.s32.totalorder %v6897_v44, %v6787_v29 }
 0x15c   : > { %4906 = vmatpush1.bf16.msk.msra.mxu1 %vm4905_vm1, %v5115_v19  ;;  %vm1941_vm10 = vmand %vm1669_vm0, %vm1813_vm3  ;;  %vm1676_vm3 = vcmp.ge.s32.totalorder %v6897_v44, %v6767_v34  ;;  %vm1670_vm1 = vcmp.ge.s32.totalorder %v6911_v45, %v6764_v33 }
 0x15d   : > { %vm1949_vm9 = vmand %vm1677_vm11, %vm1821_vm12 }
 0x15e   : > { %vm4875_vm14 = vmpackc.low %vm1949_vm9, %vm1941_vm10  ;;  %vm1814_vm10 = vcmp.lt.s32.totalorder %v6911_v45, %v6779_v28  ;;  %vm1822_vm9 = vcmp.lt.s32.totalorder %v6911_v45, %v6787_v29 }
 0x15f   : > { %4876 = vmatprep.subr.msk.bf16.mxu0 %vm4875_vm14, %v5115_v19  ;;  %vm1943_vm7 = vmand %vm1671_vm4, %vm1815_vm5  ;;  %vm1678_vm5 = vcmp.ge.s32.totalorder %v6911_v45, %v6767_v34  ;;  %vm1685_vm14 = vcmp.ge.s32.totalorder %v6869_v38, %v6812_v35 }
 0x160   : > { %vm1951_vm0 = vmand %vm1679_vm2, %vm1823_vm15 }
 0x161   : > { %vm4907_vm11 = vmpackc.low %vm1951_vm0, %vm1943_vm7  ;;  %vm1829_vm7 = vcmp.lt.s32.totalorder %v6869_v38, %v6827_v30  ;;  %vm1837_vm0 = vcmp.lt.s32.totalorder %v6869_v38, %v6835_v31 }
 0x162   : > { %4908 = vmatprep.subr.msk.bf16.mxu1 %vm4907_vm11, %v5115_v19  ;;  %vm1940_vm12 = vmand %vm1668_vm8, %vm1812_vm6  ;;  %vm1693_vm6 = vcmp.ge.s32.totalorder %v6869_v38, %v6815_v36  ;;  %vm1687_vm11 = vcmp.ge.s32.totalorder %v6885_v43, %v6812_v35 }
 0x163   : > { %vm1948_vm4 = vmand %vm1676_vm3, %vm1820_vm13 }
 0x164   : > { %vm4877_vm2 = vmpackc.low %vm1948_vm4, %vm1940_vm12  ;;  %vm1831_vm12 = vcmp.lt.s32.totalorder %v6885_v43, %v6827_v30  ;;  %vm1839_vm4 = vcmp.lt.s32.totalorder %v6885_v43, %v6835_v31 }
 0x165   : > { %4878 = vmatpush1.bf16.msk.msra.mxu0 %vm4877_vm2, %v5115_v19  ;;  %vm1942_vm15 = vmand %vm1670_vm1, %vm1814_vm10  ;;  %vm1695_vm10 = vcmp.ge.s32.totalorder %v6885_v43, %v6815_v36  ;;  %vm1684_vm2 = vcmp.ge.s32.totalorder %v6897_v44, %v6812_v35 }
 0x166   : > { %vm1950_vm8 = vmand %vm1678_vm5, %vm1822_vm9 }
 0x167   : > { %vm4909_vm3 = vmpackc.low %vm1950_vm8, %vm1942_vm15  ;;  %vm1828_vm15 = vcmp.lt.s32.totalorder %v6897_v44, %v6827_v30  ;;  %vm1836_vm8 = vcmp.lt.s32.totalorder %v6897_v44, %v6835_v31 }
 0x168   : > { %4910 = vmatpush1.bf16.msk.msra.mxu1 %vm4909_vm3, %v5115_v19  ;;  %vm1957_vm13 = vmand %vm1685_vm14, %vm1829_vm7  ;;  %vm1692_vm7 = vcmp.ge.s32.totalorder %v6897_v44, %v6815_v36  ;;  %vm1686_vm3 = vcmp.ge.s32.totalorder %v6911_v45, %v6812_v35 }
 0x169   : > { %vm1965_vm1 = vmand %vm1693_vm6, %vm1837_vm0 }
 0x16a   : > { %vm4879_vm5 = vmpackc.low %vm1965_vm1, %vm1957_vm13  ;;  %vm1830_vm13 = vcmp.lt.s32.totalorder %v6911_v45, %v6827_v30  ;;  %vm1838_vm1 = vcmp.lt.s32.totalorder %v6911_v45, %v6835_v31 }
 0x16b   : > { %4880 = vmatprep.subr.msk.bf16.mxu0 %vm4879_vm5, %v5115_v19  ;;  %vm1959_vm9 = vmand %vm1687_vm11, %vm1831_vm12  ;;  %vm1694_vm12 = vcmp.ge.s32.totalorder %v6911_v45, %v6815_v36 }
 0x16c   : > { %vm1967_vm14 = vmand %vm1695_vm10, %vm1839_vm4 }
 0x16d   : > { %vm4911_vm6 = vmpackc.low %vm1967_vm14, %vm1959_vm9 }
 0x16e   : > { %4912 = vmatprep.subr.msk.bf16.mxu1 %vm4911_vm6, %v5115_v19  ;;  %vm1956_vm0 = vmand %vm1684_vm2, %vm1828_vm15 }
 0x16f   : > { %vm1964_vm11 = vmand %vm1692_vm7, %vm1836_vm8  ;;  %vm3524_vm8 = vcmask 1043456  }
 0x170   : > { %vm4881_vm10 = vmpackc.low %vm1964_vm11, %vm1956_vm0 }
 0x171   : > { %4882 = vmatpush1.bf16.msk.msra.mxu0 %vm4881_vm10, %v5115_v19  ;;  %vm1958_vm4 = vmand %vm1686_vm3, %vm1830_vm13 }
 0x172   : > { %vm1966_vm5 = vmand %vm1694_vm12, %vm1838_vm1 }
 0x173   : > { %vm4913_vm9 = vmpackc.low %vm1966_vm5, %vm1958_vm4 }
 0x174   : > { %4914 = vmatpush1.bf16.msk.msra.mxu1 %vm4913_vm9, %v5115_v19  ;;  %2443 = vmatmul.mubr.bf16.vlgmr.msra.gmra.mrb[24].mxu0 %v6882_v39 }
 0x175   : > { %2452 = vmatprep.mubr.bf16.mxu0 %v8304_v59 }
 0x177   : > { %2496 = vmatmul.mubr.bf16.vlgmr.msra.gmra.mrb[24].mxu1 %v6882_v39 }
 0x178   : > { %2505 = vmatprep.mubr.bf16.mxu1 %v8304_v59 }
 0x17c   : > { %2453 = vmatmul.mubr.bf16.gmra.mrb[28].mxu0 %v6926_v46 }
 0x17d   : > { %3620 = vmatprep.mubr.bf16.mxu0 %v8304_v59 }
 0x17f   : > { %2506 = vmatmul.mubr.bf16.gmra.mrb[28].mxu1 %v6926_v46 }
 0x180   : > { %3663 = vmatprep.mubr.bf16.mxu1 %v8304_v59 }
 0x188   : > { %v7281_v19 = vpop.f32.mrb[8].mxu0 }
 0x189   : > { %3828 = vst [vmem:[%s7089_s18 + $0xa0] sm:$0xff] %v7281_v19  ;;  %v7285_v5 = vpop.f32.mrb[8].mxu1  ;;  %v7287_v10 = vpop.f32.mrb[9].mxu0 }
 0x18a   : > { %3830 = vst [vmem:[%s7089_s18 + $0xb0] sm:$0xff] %v7285_v5  ;;  %3829 = vst [vmem:[%s7089_s18 + $0xa8] sm:$0xff] %v7287_v10  ;;  %v7293_v11 = vpop.f32.mrb[9].mxu1  ;;  %v7295_v12 = vpop.f32.mrb[10].mxu0 }
 0x18b   : > { %3831 = vst [vmem:[%s7089_s18 + $0xb8] sm:$0xff] %v7293_v11  ;;  %3836 = vst [vmem:[%s7089_s18 + $0xe0] sm:$0xff] %v7295_v12  ;;  %v7303_v14 = vpop.f32.mrb[10].mxu1  ;;  %v7305_v15 = vpop.f32.mrb[11].mxu0 }
 0x18c   : > { %3838 = vst [vmem:[%s7089_s18 + $0xf0] sm:$0xff] %v7303_v14  ;;  %3837 = vst [vmem:[%s7089_s18 + $0xe8] sm:$0xff] %v7305_v15  ;;  %v7315_v18 = vpop.f32.mrb[11].mxu1 }
 0x18d   : > { %3839 = vst [vmem:[%s7089_s18 + $0xf8] sm:$0xff] %v7315_v18 }
 0x190   : > { %v7321_v21 = vpop.f32.mrb[12].mxu0 }
 0x191   : > { %v7323_v22 = vpop.f32.mrb[12].mxu1  ;;  %v7325_v23 = vpop.f32.mrb[13].mxu0 }
 0x192   : > { %v7327_v24 = vpop.f32.mrb[13].mxu1  ;;  %v7329_v25 = vpop.f32.mrb[14].mxu0 }
 0x193   : > { %8397 = vst [vmem:[#allocation4_spill] sm:$0xff] %v7327_v24  ;;  %v7331_v32 = vpop.f32.mrb[14].mxu1  ;;  %v7333_v26 = vpop.f32.mrb[15].mxu0 }
 0x194   : > { %8398 = vst [vmem:[#allocation5_spill] sm:$0xff] %v7333_v26  ;;  %v7335_v27 = vpop.f32.mrb[15].mxu1 }
 0x195   : > { %8399 = vst [vmem:[#allocation6_spill] sm:$0xff] %v7335_v27 }
 0x1e6   : > { %v2338_v33 = vpop.f32.mrb[16].mxu0 }
 0x1e7   : > { %3808 = vst [vmem:[%s7089_s18] sm:$0xff] %v2338_v33  ;;  %v2340_v34 = vpop.f32.mrb[17].mxu0 }
 0x1e8   : > { %3809 = vst [vmem:[%s7089_s18 + $0x8] sm:$0xff] %v2340_v34  ;;  %v2342_v28 = vpop.f32.mrb[18].mxu0 }
 0x1e9   : > { %v2391_v29 = vpop.f32.mrb[16].mxu1  ;;  %v3543_v35 = vpack.c.bf16 %v2342_v28, %v2338_v33  ;;  %3816 = vst [vmem:[%s7089_s18 + $0x40] sm:$0xff] %v2342_v28  ;;  %v2344_v36 = vpop.f32.mrb[19].mxu0 }
 0x1ea   : > { %3810 = vst [vmem:[%s7089_s18 + $0x10] sm:$0xff] %v2391_v29  ;;  %v2393_v30 = vpop.f32.mrb[17].mxu1  ;;  %v3544_v31 = vpack.c.bf16 %v2344_v36, %v2340_v34  ;;  %3817 = vst [vmem:[%s7089_s18 + $0x48] sm:$0xff] %v2344_v36 }
 0x1eb   : > { %3811 = vst [vmem:[%s7089_s18 + $0x18] sm:$0xff] %v2393_v30  ;;  %v2395_v38 = vpop.f32.mrb[18].mxu1 }
 0x1ec   : > { %v3545_v39 = vpack.c.bf16 %v2395_v38, %v2391_v29  ;;  %3818 = vst [vmem:[%s7089_s18 + $0x50] sm:$0xff] %v2395_v38  ;;  %v2397_v43 = vpop.f32.mrb[19].mxu1  ;;  %3588 = vmatprep.subr.bf16.mxu0 %v3544_v31 }
 0x1ed   : > { %v3546_v44 = vpack.c.bf16 %v2397_v43, %v2393_v30  ;;  %3819 = vst [vmem:[%s7089_s18 + $0x58] sm:$0xff] %v2397_v43  ;;  %3589 = vmatpush1.bf16.msra.mxu0 %v3543_v35 }
 0x1ee   : > { %v2348_v45 = vpop.f32.mrb[20].mxu0  ;;  %3590 = vmatprep.subr.bf16.mxu0 %v3552_v57 }
 0x1ef   : > { %3631 = vmatprep.subr.bf16.mxu1 %v3546_v44  ;;  %v7348_v46 = vpop.f32.mrb[21].mxu0  ;;  %v2519_v48 = vrot.slane %v2348_v45, %v5231_v8  ;;  %v2559_v33 = vrot.slane %v2348_v45, %v5561_v41  ;;  %v2759_v34 = vrot.slane %v2348_v45, %v5225_v6  ;;  %v2799_v28 = vrot.slane %v2348_v45, %v5504_v37 }
 0x1f0   : > { %3632 = vmatpush1.bf16.msra.mxu1 %v3545_v39  ;;  %v2352_v29 = vpop.f32.mrb[22].mxu0  ;;  %v2999_v35 = vrot.slane %v2348_v45, %v5234_v9  ;;  %v3039_v36 = vrot.slane %v2348_v45, %v5564_v42  ;;  %v3239_v50 = vrot.slane %v2348_v45, %v5228_v7  ;;  %v3279_v55 = vrot.slane %v2348_v45, %v5558_v40 }
 0x1f1   : > { %v7358_v57 = vpop.f32.mrb[20].mxu1  ;;  %3633 = vmatprep.subr.bf16.mxu1 %v3554_v60  ;;  %v2548_v30 = vsub.f32 %v2519_v48, %v7165_v61  ;;  %v2588_v31 = vsub.f32 %v2559_v33, %v7165_v61  ;;  %v2599_v38 = vrot.slane %v2352_v29, %v5231_v8  ;;  %v2788_v39 = vsub.f32 %v2759_v34, %v7165_v61  ;;  %v7367_v43 = vpop.f32.mrb[23].mxu0 }
 0x1f2   : > { %v7369_v44 = vpop.f32.mrb[21].mxu1  ;;  %v2828_v45 = vsub.f32 %v2799_v28, %v7165_v61  ;;  %v2839_v16 = vrot.slane %v2352_v29, %v5225_v6  ;;  %v3028_v13 = vsub.f32 %v2999_v35, %v7165_v61  ;;  %v3068_v51 = vsub.f32 %v3039_v36, %v7165_v61  ;;  %3591 = vmatpush1.bf16.msra.mxu0 %v3551_v53 }
 0x1f3   : > { %v2628_v58 = vsub.f32 %v2599_v38, %v7178_v1  ;;  %v2636_v60 = vmul.f32 %v2548_v30, %v2548_v30  ;;  %v2644_v48 = vmul.f32 %v2588_v31, %v2588_v31  ;;  %v2876_v33 = vmul.f32 %v2788_v39, %v2788_v39  ;;  %v7379_v34 = vpop.f32.mrb[22].mxu1 }
 0x1f4   : > { %v2868_v20 = vsub.f32 %v2839_v16, %v7178_v1  ;;  %v2884_v28 = vmul.f32 %v2828_v45, %v2828_v45  ;;  %v3079_v17 = vrot.slane %v2352_v29, %v5234_v9  ;;  %v3116_v59 = vmul.f32 %v3028_v13, %v3028_v13  ;;  %v7383_v35 = vpop.f32.mrb[23].mxu1  ;;  %3634 = vmatpush1.bf16.msra.mxu1 %v3553_v56 }
 0x1f5   : > { %v2660_v47 = vrot.slane %v2644_v48, 4  ;;  %v2684_v52 = vmul.f32 %v2628_v58, %v2628_v58  ;;  %v3124_v53 = vmul.f32 %v3068_v51, %v3068_v51  ;;  %v3268_v36 = vsub.f32 %v3239_v50, %v7165_v61 }
 0x1f6   : > { %v2900_v30 = vrot.slane %v2884_v28, 4  ;;  %v2924_v31 = vmul.f32 %v2868_v20, %v2868_v20  ;;  %v3108_v38 = vsub.f32 %v3079_v17, %v7178_v1  ;;  %v3308_v16 = vsub.f32 %v3279_v55, %v7165_v61 }
 0x1f7   : > { %v2676_v39 = vadd.f32 %v2660_v47, %v2636_v60  ;;  %v3140_v45 = vrot.slane %v3124_v53, 4  ;;  %v3319_v13 = vrot.slane %v2352_v29, %v5228_v7  ;;  %v3356_v27 = vmul.f32 %v3268_v36, %v3268_v36 }
 0x1f8   : > { %v2916_v24 = vadd.f32 %v2900_v30, %v2876_v33  ;;  %v3164_v26 = vmul.f32 %v3108_v38, %v3108_v38  ;;  %v3364_v49 = vmul.f32 %v3308_v16, %v3308_v16  ;;  %v2527_v54 = vrot.slane %v7358_v57, %v5231_v8 }
 0x1f9   : > { %v7394_v56 = vadd.f32 %v2684_v52, %v2676_v39  ;;  %v3156_v50 = vadd.f32 %v3140_v45, %v3116_v59  ;;  %v3348_v20 = vsub.f32 %v3319_v13, %v7178_v1  ;;  %v2567_v17 = vrot.slane %v7358_v57, %v5561_v41 }
 0x1fa   : > { %v7399_v61 = vadd.f32 %v2924_v31, %v2916_v24  ;;  %v3380_v55 = vrot.slane %v3364_v49, 4  ;;  %v2550_v29 = vsub.f32 %v2527_v54, %v7167_v62  ;;  %v2607_v51 = vrot.slane %v7379_v34, %v5231_v8 }
 0x1fb   : > { %v7404_v58 = vadd.f32 %v3164_v26, %v3156_v50  ;;  %v2590_v60 = vsub.f32 %v2567_v17, %v7167_v62  ;;  %v3404_v33 = vmul.f32 %v3348_v20, %v3348_v20  ;;  %v2767_v28 = vrot.slane %v7358_v57, %v5225_v6 }
 0x1fc   : > { %v3396_v48 = vadd.f32 %v3380_v55, %v3356_v27  ;;  %v2630_v59 = vsub.f32 %v2607_v51, %v7184_v2  ;;  %v2807_v24 = vrot.slane %v7358_v57, %v5504_v37  ;;  %v2638_v52 = vmul.f32 %v2550_v29, %v2550_v29 }
 0x1fd   : > { %v2646_v1 = vmul.f32 %v2590_v60, %v2590_v60  ;;  %v2847_v26 = vrot.slane %v7379_v34, %v5225_v6  ;;  %v3007_v53 = vrot.slane %v7358_v57, %v5234_v9  ;;  %v2790_v36 = vsub.f32 %v2767_v28, %v7167_v62 }
 0x1fe   : > { %v7412_v47 = vadd.f32 %v3404_v33, %v3396_v48  ;;  %v2830_v30 = vsub.f32 %v2807_v24, %v7167_v62  ;;  %v3047_v31 = vrot.slane %v7358_v57, %v5564_v42  ;;  %4995 = vrsqrt.f32 %v7394_v56 }
 0x1ff   : > { %v2662_v27 = vrot.slane %v2646_v1, 4  ;;  %v2870_v38 = vsub.f32 %v2847_v26, %v7184_v2  ;;  %v3030_v16 = vsub.f32 %v3007_v53, %v7167_v62  ;;  %v3087_v39 = vrot.slane %v7379_v34, %v5234_v9 }
 0x200   : > { %v2686_v13 = vmul.f32 %v2630_v59, %v2630_v59  ;;  %v2886_v49 = vmul.f32 %v2830_v30, %v2830_v30  ;;  %v3070_v54 = vsub.f32 %v3047_v31, %v7167_v62  ;;  %4997 = vrsqrt.f32 %v7399_v61 }
 0x201   : > { %v2678_v45 = vadd.f32 %v2662_v27, %v2638_v52  ;;  %v2878_v50 = vmul.f32 %v2790_v36, %v2790_v36  ;;  %v3110_v20 = vsub.f32 %v3087_v39, %v7184_v2  ;;  %v3247_v17 = vrot.slane %v7358_v57, %v5228_v7 }
 0x202   : > { %v2902_v29 = vrot.slane %v2886_v49, 4  ;;  %v3126_v51 = vmul.f32 %v3070_v54, %v3070_v54  ;;  %v3287_v60 = vrot.slane %v7358_v57, %v5558_v40  ;;  %v2926_v48 = vmul.f32 %v2870_v38, %v2870_v38 }
 0x203   : > { %v7432_v55 = vadd.f32 %v2686_v13, %v2678_v45  ;;  %v3270_v33 = vsub.f32 %v3247_v17, %v7167_v62  ;;  %v3327_v59 = vrot.slane %v7379_v34, %v5228_v7  ;;  %v2523_v1 = vrot.slane %v7348_v46, %v5231_v8 }
 0x204   : > { %v2918_v28 = vadd.f32 %v2902_v29, %v2878_v50  ;;  %v3118_v24 = vmul.f32 %v3030_v16, %v3030_v16  ;;  %v3142_v52 = vrot.slane %v3126_v51, 4  ;;  %v3310_v26 = vsub.f32 %v3287_v60, %v7167_v62 }
 0x205   : > { %v3166_v53 = vmul.f32 %v3110_v20, %v3110_v20  ;;  %v3350_v27 = vsub.f32 %v3327_v59, %v7184_v2  ;;  %v2549_v36 = vsub.f32 %v2523_v1, %v7169_v63  ;;  %v2563_v57 = vrot.slane %v7348_v46, %v5561_v41 }
 0x206   : > { %v7446_v30 = vadd.f32 %v2926_v48, %v2918_v28  ;;  %v3158_v31 = vadd.f32 %v3142_v52, %v3118_v24  ;;  %v3366_v34 = vmul.f32 %v3310_v26, %v3310_v26  ;;  %v2603_v38 = vrot.slane %v7367_v43, %v5231_v8 }
 0x207   : > { %4999 = vrsqrt.f32 %v7404_v58  ;;  %v2589_v16 = vsub.f32 %v2563_v57, %v7169_v63  ;;  %v2763_v62 = vrot.slane %v7348_v46, %v5225_v6  ;;  %v3358_v39 = vmul.f32 %v3270_v33, %v3270_v33 }
 0x208   : > { %v7454_v2 = vadd.f32 %v3166_v53, %v3158_v31  ;;  %v3382_v45 = vrot.slane %v3366_v34, 4  ;;  %v2629_v13 = vsub.f32 %v2603_v38, %v7186_v3  ;;  %v7457_v49 = vpop.eup %4995  ;;  %v2803_v20 = vrot.slane %v7348_v46, %v5504_v37 }
 0x209   : > { %v2645_v54 = vmul.f32 %v2589_v16, %v2589_v16  ;;  %v2789_v50 = vsub.f32 %v2763_v62, %v7169_v63  ;;  %v2843_v17 = vrot.slane %v7367_v43, %v5225_v6  ;;  %5001 = vrsqrt.f32 %v7412_v47 }
 0x20a   : > { %v3398_v29 = vadd.f32 %v3382_v45, %v3358_v39  ;;  %v3406_v51 = vmul.f32 %v3350_v27, %v3350_v27  ;;  %v3003_v60 = vrot.slane %v7348_v46, %v5234_v9  ;;  %v7467_v48 = vpop.eup %4997  ;;  %v2637_v33 = vmul.f32 %v2549_v36, %v2549_v36 }
 0x20b   : > { %v2661_v59 = vrot.slane %v2645_v54, 4  ;;  %v2829_v1 = vsub.f32 %v2803_v20, %v7169_v63  ;;  %v2869_v28 = vsub.f32 %v2843_v17, %v7186_v3  ;;  %v3043_v26 = vrot.slane %v7348_v46, %v5564_v42 }
 0x20c   : > { %v7471_v24 = vadd.f32 %v3406_v51, %v3398_v29  ;;  %v3029_v52 = vsub.f32 %v3003_v60, %v7169_v63  ;;  %v3083_v53 = vrot.slane %v7367_v43, %v5234_v9  ;;  %v2685_v57 = vmul.f32 %v2629_v13, %v2629_v13 }
 0x20d   : > { %v2677_v27 = vadd.f32 %v2661_v59, %v2637_v33  ;;  %v2885_v31 = vmul.f32 %v2829_v1, %v2829_v1  ;;  %v3243_v36 = vrot.slane %v7348_v46, %v5228_v7  ;;  %v2877_v34 = vmul.f32 %v2789_v50, %v2789_v50 }
 0x20e   : > { %v2925_v38 = vmul.f32 %v2869_v28, %v2869_v28  ;;  %v3069_v16 = vsub.f32 %v3043_v26, %v7169_v63  ;;  %v3109_v62 = vsub.f32 %v3083_v53, %v7186_v3  ;;  %v3283_v20 = vrot.slane %v7348_v46, %v5558_v40 }
 0x20f   : > { %v7482_v39 = vadd.f32 %v2685_v57, %v2677_v27  ;;  %v2901_v45 = vrot.slane %v2885_v31, 4  ;;  %v3269_v54 = vsub.f32 %v3243_v36, %v7169_v63  ;;  %v3117_v17 = vmul.f32 %v3029_v52, %v3029_v52 }
 0x210   : > { %v3125_v13 = vmul.f32 %v3069_v16, %v3069_v16  ;;  %v3323_v29 = vrot.slane %v7367_v43, %v5228_v7  ;;  %v2531_v50 = vrot.slane %v7369_v44, %v5231_v8  ;;  %v3165_v33 = vmul.f32 %v3109_v62, %v3109_v62 }
 0x211   : > { %v7491_v51 = vpop.eup %4999  ;;  %v2917_v60 = vadd.f32 %v2901_v45, %v2877_v34  ;;  %v3309_v59 = vsub.f32 %v3283_v20, %v7169_v63  ;;  %v2571_v1 = vrot.slane %v7369_v44, %v5561_v41  ;;  %v2611_v43 = vrot.slane %v7383_v35, %v5231_v8 }
 0x212   : > { %v3141_v28 = vrot.slane %v3125_v13, 4  ;;  %v3349_v46 = vsub.f32 %v3323_v29, %v7186_v3  ;;  %v2551_v52 = vsub.f32 %v2531_v50, %v7176_v0  ;;  %v2771_v57 = vrot.slane %v7369_v44, %v5225_v6 }
 0x213   : > { %v7500_v26 = vadd.f32 %v2925_v38, %v2917_v60  ;;  %v3365_v53 = vmul.f32 %v3309_v59, %v3309_v59  ;;  %v2591_v27 = vsub.f32 %v2571_v1, %v7176_v0  ;;  %v7505_v63 = vpop.eup %5001  ;;  %v3357_v36 = vmul.f32 %v3269_v54, %v3269_v54 }
 0x214   : > { %v3157_v31 = vadd.f32 %v3141_v28, %v3117_v17  ;;  %v3405_v34 = vmul.f32 %v3349_v46, %v3349_v46  ;;  %v2631_v3 = vsub.f32 %v2611_v43, %v7188_v4  ;;  %v2791_v45 = vsub.f32 %v2771_v57, %v7176_v0 }
 0x215   : > { %v3381_v16 = vrot.slane %v3365_v53, 4  ;;  %v2647_v62 = vmul.f32 %v2591_v27, %v2591_v27  ;;  %v2811_v38 = vrot.slane %v7369_v44, %v5504_v37  ;;  %v2639_v13 = vmul.f32 %v2551_v52, %v2551_v52 }
 0x216   : > { %v7511_v20 = vadd.f32 %v3165_v33, %v3157_v31  ;;  %v2851_v29 = vrot.slane %v7383_v35, %v5225_v6  ;;  %v3011_v17 = vrot.slane %v7369_v44, %v5234_v9  ;;  %v2687_v60 = vmul.f32 %v2631_v3, %v2631_v3 }
 0x217   : > { %v3397_v54 = vadd.f32 %v3381_v16, %v3357_v36  ;;  %v2663_v50 = vrot.slane %v2647_v62, 4  ;;  %v2831_v59 = vsub.f32 %v2811_v38, %v7176_v0  ;;  %v3051_v33 = vrot.slane %v7369_v44, %v5564_v42 }
 0x218   : > { %v2871_v1 = vsub.f32 %v2851_v29, %v7188_v4  ;;  %v3031_v28 = vsub.f32 %v3011_v17, %v7176_v0  ;;  %v3091_v46 = vrot.slane %v7383_v35, %v5234_v9  ;;  %v3251_v27 = vrot.slane %v7369_v44, %v5228_v7 }
 0x219   : > { %v7524_v52 = vadd.f32 %v3405_v34, %v3397_v54  ;;  %v2679_v43 = vadd.f32 %v2663_v50, %v2639_v13  ;;  %v2887_v53 = vmul.f32 %v2831_v59, %v2831_v59  ;;  %5003 = vrsqrt.f32 %v7432_v55 }
 0x21a   : > { %v2879_v57 = vmul.f32 %v2791_v45, %v2791_v45  ;;  %v3071_v31 = vsub.f32 %v3051_v33, %v7176_v0  ;;  %v3111_v36 = vsub.f32 %v3091_v46, %v7188_v4  ;;  %v3271_v62 = vsub.f32 %v3251_v27, %v7176_v0 }
 0x21b   : > { %v7531_v3 = vadd.f32 %v2687_v60, %v2679_v43  ;;  %v2903_v16 = vrot.slane %v2887_v53, 4  ;;  %v3291_v34 = vrot.slane %v7369_v44, %v5558_v40  ;;  %v3331_v13 = vrot.slane %v7383_v35, %v5228_v7 }
 0x21c   : > { %v3127_v38 = vmul.f32 %v3071_v31, %v3071_v31  ;;  %5005 = vrsqrt.f32 %v7482_v39  ;;  %v2927_v29 = vmul.f32 %v2871_v1, %v2871_v1  ;;  %v3119_v54 = vmul.f32 %v3031_v28, %v3031_v28 }
 0x21d   : > { %5007 = vrsqrt.f32 %v7446_v30  ;;  %v2919_v45 = vadd.f32 %v2903_v16, %v2879_v57  ;;  %v3311_v17 = vsub.f32 %v3291_v34, %v7176_v0  ;;  %v3351_v60 = vsub.f32 %v3331_v13, %v7188_v4 }
 0x21e   : > { %5009 = vrsqrt.f32 %v7454_v2  ;;  %v3143_v50 = vrot.slane %v3127_v38, 4  ;;  %v3167_v33 = vmul.f32 %v3111_v36, %v3111_v36  ;;  %v3359_v46 = vmul.f32 %v3271_v62, %v3271_v62  ;;  %v3567_v38 = vld [vmem:[%s8302_s4] sm:$0xff] }
 0x21f   : > { %v7543_v59 = vadd.f32 %v2927_v29, %v2919_v45  ;;  %v3367_v44 = vmul.f32 %v3311_v17, %v3311_v17  ;;  %5011 = vrsqrt.f32 %v7500_v26  ;;  %v3407_v28 = vmul.f32 %v3351_v60, %v3351_v60  ;;  %3571 = vperm.xlu0 %4985, %v3567_v38  }
 0x220   : > { %5013 = vrsqrt.f32 %v7471_v24  ;;  %v3159_v35 = vadd.f32 %v3143_v50, %v3119_v54  ;;  %vm2709_vm2 = vcmp.eq.f32.partialorder %v7482_v39, inf  ;;  %vm2711_vm15 = vcmp.eq.f32.partialorder %v7482_v39, 0.0 }
 0x221   : > { %v3383_v43 = vrot.slane %v3367_v44, 4  ;;  %5015 = vrsqrt.f32 %v7511_v20  ;;  %v2712_v53 = vand.u32 2147483648, %v7482_v39  ;;  %vm2949_vm14 = vcmp.eq.f32.partialorder %v7500_v26, inf }
 0x222   : > { %v7548_v0 = vadd.f32 %v3167_v33, %v3159_v35  ;;  %5017 = vrsqrt.f32 %v7524_v52  ;;  %vm2951_vm7 = vcmp.eq.f32.partialorder %v7500_v26, 0.0  ;;  %v2952_v57 = vand.u32 2147483648, %v7500_v26 }
 0x223   : > { %v3399_v1 = vadd.f32 %v3383_v43, %v3359_v46  ;;  %5019 = vrsqrt.f32 %v7531_v3  ;;  %v7552_v4 = vpop.eup %5003  ;;  %vm3189_vm6 = vcmp.eq.f32.partialorder %v7511_v20, inf  ;;  %v3192_v36 = vand.u32 2147483648, %v7511_v20 }
 0x224   : > { %5021 = vrsqrt.f32 %v7543_v59  ;;  %vm3429_vm0 = vcmp.eq.f32.partialorder %v7524_v52, inf  ;;  %vm3431_vm3 = vcmp.eq.f32.partialorder %v7524_v52, 0.0  ;;  %v3432_v34 = vand.u32 2147483648, %v7524_v52 }
 0x225   : > { %v7558_v27 = vadd.f32 %v3407_v28, %v3399_v1  ;;  %5023 = vrsqrt.f32 %v7548_v0  ;;  %vm2723_vm13 = vcmp.eq.f32.partialorder %v7531_v3, inf  ;;  %v2726_v45 = vand.u32 2147483648, %v7531_v3 }
 0x226   : > { %v5006_v31 = vpop.eup %5005  ;;  %vm2963_vm11 = vcmp.eq.f32.partialorder %v7543_v59, inf  ;;  %v2701_v29 = vmul.f32 %v7457_v49, %v7394_v56  ;;  %vm3191_vm12 = vcmp.eq.f32.partialorder %v7511_v20, 0.0  ;;  %vm2965_vm1 = vcmp.eq.f32.partialorder %v7543_v59, 0.0  ;;  %v3568_v49 = vld [vmem:[%s8302_s4 + $0x8] sm:$0xff] }
 0x227   : > { %v7567_v16 = vpop.eup %5007  ;;  %v2708_v62 = vmul.f32 %v5006_v31, %v7482_v39  ;;  %5025 = vrsqrt.f32 %v7558_v27  ;;  %v2966_v50 = vand.u32 2147483648, %v7543_v59  ;;  %v2941_v44 = vmul.f32 %v7467_v48, %v7399_v61  ;;  %3576 = vperm.xlu0 %4985, %v3568_v49  }
 0x228   : > { %v7576_v13 = vpop.eup %5009  ;;  %v3446_v46 = vand.u32 2147483648, %v7558_v27  ;;  %vm2702_vm4 = vcmp.eq.f32.partialorder %v7394_v56, inf  ;;  %vm2942_vm5 = vcmp.eq.f32.partialorder %v7399_v61, inf  ;;  %vm3203_vm9 = vcmp.eq.f32.partialorder %v7548_v0, inf }
 0x229   : > { %v5012_v17 = vpop.eup %5011  ;;  %v2710_v54 = vsel %vm2709_vm2, %v7482_v39, %v2708_v62  ;;  %vm3443_vm2 = vcmp.eq.f32.partialorder %v7558_v27, inf  ;;  %v2703_v1 = vsel %vm2702_vm4, %v7394_v56, %v2701_v29  ;;  %v2705_v28 = vand.u32 2147483648, %v7394_v56 }
 0x22a   : > { %v7595_v35 = vpop.eup %5013  ;;  %v2948_v33 = vmul.f32 %v5012_v17, %v7500_v26  ;;  %v2713_v48 = vsel %vm2711_vm15, %v2712_v53, %v2710_v54  ;;  %v2943_v31 = vsel %vm2942_vm5, %v7399_v61, %v2941_v44  ;;  %v2945_v39 = vand.u32 2147483648, %v7399_v61 }
 0x22b   : > { %v5016_v43 = vpop.eup %5015  ;;  %v3181_v53 = vmul.f32 %v7491_v51, %v7404_v58  ;;  %vm2704_vm15 = vcmp.eq.f32.partialorder %v7394_v56, 0.0  ;;  %vm3182_vm4 = vcmp.eq.f32.partialorder %v7404_v58, inf  ;;  %vm3205_vm5 = vcmp.eq.f32.partialorder %v7548_v0, 0.0 }
 0x22c   : > { %v5018_v62 = vpop.eup %5017  ;;  %v2950_v38 = vsel %vm2949_vm14, %v7500_v26, %v2948_v33  ;;  %v3188_v17 = vmul.f32 %v5016_v43, %v7511_v20  ;;  %vm2944_vm14 = vcmp.eq.f32.partialorder %v7399_v61, 0.0  ;;  %vm3184_vm10 = vcmp.eq.f32.partialorder %v7404_v58, 0.0 }
 0x22d   : > { %v5020_v29 = vpop.eup %5019  ;;  %v2953_v54 = vsel %vm2951_vm7, %v2952_v57, %v2950_v38  ;;  %v3428_v44 = vmul.f32 %v5018_v62, %v7524_v52  ;;  %v2946_v51 = vsel %vm2944_vm14, %v2945_v39, %v2943_v31  ;;  %v3421_v49 = vmul.f32 %v7505_v63, %v7412_v47 }
 0x22e   : > { %v5022_v33 = vpop.eup %5021  ;;  %v3485_v43 = vrot.slane %v2953_v54, 4  ;;  %v2722_v60 = vmul.f32 %v5020_v29, %v7531_v3  ;;  %v3190_v26 = vsel %vm3189_vm6, %v7511_v20, %v3188_v17  ;;  %v3183_v17 = vsel %vm3182_vm4, %v7404_v58, %v3181_v53 }
 0x22f   : > { %v3430_v61 = vsel %vm3429_vm0, %v7524_v52, %v3428_v44  ;;  %v2962_v57 = vmul.f32 %v5022_v33, %v7543_v59  ;;  %v5024_v62 = vpop.eup %5023  ;;  %v3185_v52 = vand.u32 2147483648, %v7404_v58  ;;  %vm3422_vm7 = vcmp.eq.f32.partialorder %v7412_v47, inf }
 0x230   : > { %v3433_v38 = vsel %vm3431_vm3, %v3432_v34, %v3430_v61  ;;  %v3526_v31 = vsel %vm3524_vm8, %v2713_v48, %v3485_v43  ;;  %v2724_v39 = vsel %vm2723_vm13, %v7531_v3, %v2722_v60  ;;  %v3202_v44 = vmul.f32 %v5024_v62, %v7548_v0 }
 0x231   : > { %v5026_v29 = vpop.eup %5025  ;;  %v3509_v54 = vrot.slane %v3433_v38, 4  ;;  %3841 = vst [vmem:[%s7089_s18 + $0x108] sm:$0xff] %v3526_v31  ;;  %v2964_v63 = vsel %vm2963_vm11, %v7543_v59, %v2962_v57  ;;  %v3193_v34 = vsel %vm3191_vm12, %v3192_v36, %v3190_v26  ;;  %vm8400_vm6 = vcmp.eq.f32.partialorder %v7531_v3, 0.0 }
 0x232   : > { %v2967_v60 = vsel %vm2965_vm1, %v2966_v50, %v2964_v63  ;;  %v3442_v48 = vmul.f32 %v5026_v29, %v7558_v27  ;;  %v2727_v33 = vsel %vm8400_vm6, %v2726_v45, %v2724_v39  ;;  %v3423_v61 = vsel %vm3422_vm7, %v7412_v47, %v3421_v49  ;;  %v7708_v63 = vld [vmem:[%s8301_s3] sm:$0xff]  }
 0x233   : > { %v3534_v53 = vsel %vm3524_vm8, %v3193_v34, %v3509_v54  ;;  %v3487_v43 = vrot.slane %v2967_v60, 4  ;;  %v3204_v59 = vsel %vm3203_vm9, %v7548_v0, %v3202_v44  ;;  %v3425_v50 = vand.u32 2147483648, %v7412_v47 }
 0x234   : > { %v3560_v20 = vpack.c.bf16 %v3534_v53, %v3526_v31  ;;  %3849 = vst [vmem:[%s7089_s18 + $0x148] sm:$0xff] %v3534_v53  ;;  %v3444_v36 = vsel %vm3443_vm2, %v7558_v27, %v3442_v48  ;;  %vm8401_vm0 = vcmp.eq.f32.partialorder %v7558_v27, 0.0  ;;  %vm3424_vm3 = vcmp.eq.f32.partialorder %v7412_v47, 0.0 }
 0x235   : > { %v3447_v3 = vsel %vm8401_vm0, %v3446_v46, %v3444_v36  ;;  %v3528_v45 = vsel %vm3524_vm8, %v2727_v33, %v3487_v43  ;;  %v3484_v26 = vrot.slane %v2946_v51, 4  ;;  %v2706_v49 = vsel %vm2704_vm15, %v2705_v28, %v2703_v1 }
 0x236   : > { %3592 = vmatprep.subr.bf16.mxu0 %v3560_v20  ;;  %v3511_v57 = vrot.slane %v3447_v3, 4  ;;  %3843 = vst [vmem:[%s7089_s18 + $0x118] sm:$0xff] %v3528_v45  ;;  %v3186_v62 = vsel %vm3184_vm10, %v3185_v52, %v3183_v17  ;;  %v3426_v38 = vsel %vm3424_vm3, %v3425_v50, %v3423_v61  ;;  %v8402_v27 = vand.u32 2147483648, %v7548_v0 }
 0x237   : > { %v3508_v31 = vrot.slane %v3426_v38, 4  ;;  %v3525_v47 = vsel %vm3524_vm8, %v2706_v49, %v3484_v26  ;;  %v2715_v51 = vmul.f32 %v7552_v4, %v7432_v55  ;;  %vm2716_vm13 = vcmp.eq.f32.partialorder %v7432_v55, inf }
 0x238   : > { %v3207_v46 = vsel %vm3205_vm5, %v8402_v27, %v3204_v59  ;;  %3840 = vst [vmem:[%s7089_s18 + $0x100] sm:$0xff] %v3525_v47  ;;  %vm2718_vm11 = vcmp.eq.f32.partialorder %v7432_v55, 0.0  ;;  %v2955_v56 = vmul.f32 %v7567_v16, %v7446_v30  ;;  %vm2956_vm12 = vcmp.eq.f32.partialorder %v7446_v30, inf }
 0x239   : > { %v3536_v39 = vsel %vm3524_vm8, %v3207_v46, %v3511_v57  ;;  %v3533_v0 = vsel %vm3524_vm8, %v3186_v62, %v3508_v31  ;;  %v2959_v1 = vand.u32 2147483648, %v7446_v30  ;;  %vm2958_vm1 = vcmp.eq.f32.partialorder %v7446_v30, 0.0 }
 0x23a   : > { %v3562_v58 = vpack.c.bf16 %v3536_v39, %v3528_v45  ;;  %3851 = vst [vmem:[%s7089_s18 + $0x158] sm:$0xff] %v3536_v39  ;;  %v3559_v28 = vpack.c.bf16 %v3533_v0, %v3525_v47  ;;  %3848 = vst [vmem:[%s7089_s18 + $0x140] sm:$0xff] %v3533_v0  ;;  %v2957_v4 = vsel %vm2956_vm12, %v7446_v30, %v2955_v56  ;;  %vm3196_vm10 = vcmp.eq.f32.partialorder %v7454_v2, inf }
 0x23b   : > { %v3195_v17 = vmul.f32 %v7576_v13, %v7454_v2  ;;  %v2717_v16 = vsel %vm2716_vm13, %v7432_v55, %v2715_v51  ;;  %v2960_v29 = vsel %vm2958_vm1, %v2959_v1, %v2957_v4  ;;  %v3435_v54 = vmul.f32 %v7595_v35, %v7471_v24 }
 0x23c   : > { %3635 = vmatprep.subr.bf16.mxu1 %v3562_v58  ;;  %3593 = vmatpush1.bf16.msra.mxu0 %v3559_v28  ;;  %v2719_v30 = vand.u32 2147483648, %v7432_v55  ;;  %vm3436_vm9 = vcmp.eq.f32.partialorder %v7471_v24, inf  ;;  %v3439_v44 = vand.u32 2147483648, %v7471_v24  ;;  %vm3438_vm2 = vcmp.eq.f32.partialorder %v7471_v24, 0.0 }
 0x23d   : > { %v3197_v13 = vsel %vm3196_vm10, %v7454_v2, %v3195_v17  ;;  %v3437_v52 = vsel %vm3436_vm9, %v7471_v24, %v3435_v54  ;;  %v3486_v35 = vrot.slane %v2960_v29, 4  ;;  %vm8309_vm15 = vcmask 392192  }
 0x23e   : > { %v2720_v34 = vsel %vm2718_vm11, %v2719_v30, %v2717_v16  ;;  %v3199_v60 = vand.u32 2147483648, %v7454_v2  ;;  %v3440_v48 = vsel %vm3438_vm2, %v3439_v44, %v3437_v52  ;;  %vm3198_vm14 = vcmp.eq.f32.partialorder %v7454_v2, 0.0 }
 0x23f   : > { %v3510_v53 = vrot.slane %v3440_v48, 4  ;;  %v3527_v33 = vsel %vm3524_vm8, %v2720_v34, %v3486_v35  ;;  %4916 = vmatmul.mubr.msk.bf16.vlgmr.msra.gmra.mrb[32].mxu0 %vm8309_vm15, %v7708_v63  ;;  %v8403_v43 = vmov 0   ;;  %v8404_v46 = vpack.c.bf16 %v7305_v15, %v7287_v10 }
 0x240   : > { %v3200_v24 = vsel %vm3198_vm14, %v3199_v60, %v3197_v13  ;;  %3842 = vst [vmem:[%s7089_s18 + $0x110] sm:$0xff] %v3527_v33  ;;  %3706 = vmatprep.mubr.bf16.mxu0 %v8403_v43  ;;  %v8405_v30 = vpack.c.bf16 %v7315_v18, %v7293_v11  ;;  %v8406_v60 = vpack.c.bf16 %v7295_v12, %v7281_v19 }
 0x241   : > { %v3535_v55 = vsel %vm3524_vm8, %v3200_v24, %v3510_v53 }
 0x242   : > { %v3561_v61 = vpack.c.bf16 %v3535_v55, %v3527_v33  ;;  %3850 = vst [vmem:[%s7089_s18 + $0x150] sm:$0xff] %v3535_v55 }
 0x244   : > { %3636 = vmatpush1.bf16.msra.mxu1 %v3561_v61 }
 0x247   : > { %v2444_v2 = vpop.f32.mrb[24].mxu0  ;;  %4917 = vmatmul.mubr.msk.bf16.vlgmr.msra.gmra.mrb[32].mxu1 %vm8309_vm15, %v7708_v63 }
 0x248   : > { %3812 = vst [vmem:[%s7089_s18 + $0x20] sm:$0xff] %v2444_v2  ;;  %v2446_v20 = vpop.f32.mrb[25].mxu0  ;;  %3749 = vmatprep.mubr.bf16.mxu1 %v8403_v43 }
 0x249   : > { %3813 = vst [vmem:[%s7089_s18 + $0x28] sm:$0xff] %v2446_v20  ;;  %v2448_v59 = vpop.f32.mrb[26].mxu0 }
 0x24a   : > { %v2497_v36 = vpop.f32.mrb[24].mxu1  ;;  %v3547_v50 = vpack.c.bf16 %v2448_v59, %v2444_v2  ;;  %3820 = vst [vmem:[%s7089_s18 + $0x60] sm:$0xff] %v2448_v59  ;;  %v2450_v3 = vpop.f32.mrb[27].mxu0 }
 0x24b   : > { %3814 = vst [vmem:[%s7089_s18 + $0x30] sm:$0xff] %v2497_v36  ;;  %v2499_v45 = vpop.f32.mrb[25].mxu1  ;;  %v3548_v26 = vpack.c.bf16 %v2450_v3, %v2446_v20  ;;  %3821 = vst [vmem:[%s7089_s18 + $0x68] sm:$0xff] %v2450_v3  ;;  %v8407_v20 = vpack.c.bf16 %v7303_v14, %v7285_v5 }
 0x24c   : > { %3815 = vst [vmem:[%s7089_s18 + $0x38] sm:$0xff] %v2499_v45  ;;  %v2501_v57 = vpop.f32.mrb[26].mxu1 }
 0x24d   : > { %v3549_v49 = vpack.c.bf16 %v2501_v57, %v2497_v36  ;;  %3822 = vst [vmem:[%s7089_s18 + $0x70] sm:$0xff] %v2501_v57  ;;  %v2503_v62 = vpop.f32.mrb[27].mxu1  ;;  %3674 = vmatprep.subr.bf16.mxu0 %v3548_v26 }
 0x24e   : > { %v3550_v38 = vpack.c.bf16 %v2503_v62, %v2499_v45  ;;  %3823 = vst [vmem:[%s7089_s18 + $0x78] sm:$0xff] %v2503_v62  ;;  %3675 = vmatpush1.bf16.msra.mxu0 %v3547_v50 }
 0x24f   : > { %v2454_v27 = vpop.f32.mrb[28].mxu0  ;;  %3676 = vmatprep.subr.bf16.mxu0 %v8404_v46 }
 0x250   : > { %v7741_v31 = vpop.f32.mrb[29].mxu0  ;;  %v2535_v47 = vrot.slane %v2454_v27, %v5231_v8  ;;  %v2575_v51 = vrot.slane %v2454_v27, %v5561_v41  ;;  %v2775_v39 = vrot.slane %v2454_v27, %v5225_v6  ;;  %v2815_v56 = vrot.slane %v2454_v27, %v5504_v37  ;;  %3717 = vmatprep.subr.bf16.mxu1 %v3550_v38 }
 0x251   : > { %v2458_v58 = vpop.f32.mrb[30].mxu0  ;;  %v3015_v0 = vrot.slane %v2454_v27, %v5234_v9  ;;  %v3055_v1 = vrot.slane %v2454_v27, %v5564_v42  ;;  %v3255_v28 = vrot.slane %v2454_v27, %v5228_v7  ;;  %v3295_v10 = vrot.slane %v2454_v27, %v5558_v40  ;;  %3718 = vmatpush1.bf16.msra.mxu1 %v3549_v49 }
 0x252   : > { %v7751_v15 = vpop.f32.mrb[28].mxu1  ;;  %v2552_v4 = vsub.f32 %v2535_v47, %v7321_v21  ;;  %v2592_v17 = vsub.f32 %v2575_v51, %v7321_v21  ;;  %v2615_v16 = vrot.slane %v2458_v58, %v5231_v8  ;;  %v2792_v29 = vsub.f32 %v2775_v39, %v7321_v21  ;;  %v7757_v54 = vpop.f32.mrb[31].mxu0  ;;  %3719 = vmatprep.subr.bf16.mxu1 %v8405_v30 }
 0x253   : > { %v7762_v13 = vpop.f32.mrb[29].mxu1  ;;  %v2832_v44 = vsub.f32 %v2815_v56, %v7321_v21  ;;  %v2855_v52 = vrot.slane %v2458_v58, %v5225_v6  ;;  %v3032_v35 = vsub.f32 %v3015_v0, %v7321_v21  ;;  %v3072_v34 = vsub.f32 %v3055_v1, %v7321_v21  ;;  %3677 = vmatpush1.bf16.msra.mxu0 %v8406_v60 }
 0x254   : > { %v2632_v48 = vsub.f32 %v2615_v16, %v7329_v25  ;;  %v2640_v53 = vmul.f32 %v2552_v4, %v2552_v4  ;;  %v2648_v33 = vmul.f32 %v2592_v17, %v2592_v17  ;;  %v2880_v11 = vmul.f32 %v2792_v29, %v2792_v29  ;;  %v7772_v18 = vpop.f32.mrb[30].mxu1 }
 0x255   : > { %v2872_v24 = vsub.f32 %v2855_v52, %v7329_v25  ;;  %v2888_v43 = vmul.f32 %v2832_v44, %v2832_v44  ;;  %v3095_v55 = vrot.slane %v2458_v58, %v5234_v9  ;;  %v3120_v61 = vmul.f32 %v3032_v35, %v3032_v35  ;;  %v7776_v2 = vpop.f32.mrb[31].mxu1  ;;  %3720 = vmatpush1.bf16.msra.mxu1 %v8407_v20 }
 0x256   : > { %v2664_v19 = vrot.slane %v2648_v33, 4  ;;  %v2688_v12 = vmul.f32 %v2632_v48, %v2632_v48  ;;  %v3128_v59 = vmul.f32 %v3072_v34, %v3072_v34  ;;  %v3272_v36 = vsub.f32 %v3255_v28, %v7321_v21 }
 0x257   : > { %v2904_v50 = vrot.slane %v2888_v43, 4  ;;  %v2928_v3 = vmul.f32 %v2872_v24, %v2872_v24  ;;  %v3112_v45 = vsub.f32 %v3095_v55, %v7329_v25  ;;  %v3312_v26 = vsub.f32 %v3295_v10, %v7321_v21 }
 0x258   : > { %v2680_v57 = vadd.f32 %v2664_v19, %v2640_v53  ;;  %v3144_v49 = vrot.slane %v3128_v59, 4  ;;  %v3335_v62 = vrot.slane %v2458_v58, %v5228_v7  ;;  %v3360_v38 = vmul.f32 %v3272_v36, %v3272_v36 }
 0x259   : > { %v2920_v27 = vadd.f32 %v2904_v50, %v2880_v11  ;;  %v3168_v46 = vmul.f32 %v3112_v45, %v3112_v45  ;;  %v3368_v5 = vmul.f32 %v3312_v26, %v3312_v26  ;;  %v2543_v14 = vrot.slane %v7751_v15, %v5231_v8 }
 0x25a   : > { %v7787_v47 = vadd.f32 %v2688_v12, %v2680_v57  ;;  %v3160_v51 = vadd.f32 %v3144_v49, %v3120_v61  ;;  %v3352_v39 = vsub.f32 %v3335_v62, %v7329_v25  ;;  %v2583_v56 = vrot.slane %v7751_v15, %v5561_v41 }
 0x25b   : > { %v7792_v21 = vadd.f32 %v2928_v3, %v2920_v27  ;;  %v3384_v0 = vrot.slane %v3368_v5, 4  ;;  %v2554_v58 = vsub.f32 %v2543_v14, %v7323_v22  ;;  %v2623_v1 = vrot.slane %v7772_v18, %v5231_v8 }
 0x25c   : > { %v7797_v28 = vadd.f32 %v3168_v46, %v3160_v51  ;;  %v2594_v10 = vsub.f32 %v2583_v56, %v7323_v22  ;;  %v3408_v17 = vmul.f32 %v3352_v39, %v3352_v39  ;;  %v2783_v29 = vrot.slane %v7751_v15, %v5225_v6 }
 0x25d   : > { %v3400_v4 = vadd.f32 %v3384_v0, %v3360_v38  ;;  %v2634_v16 = vsub.f32 %v2623_v1, %v7331_v32  ;;  %v2823_v30 = vrot.slane %v7751_v15, %v5504_v37  ;;  %v2642_v52 = vmul.f32 %v2554_v58, %v2554_v58 }
 0x25e   : > { %v2650_v25 = vmul.f32 %v2594_v10, %v2594_v10  ;;  %v2863_v35 = vrot.slane %v7772_v18, %v5225_v6  ;;  %v3023_v34 = vrot.slane %v7751_v15, %v5234_v9  ;;  %v2794_v48 = vsub.f32 %v2783_v29, %v7323_v22 }
 0x25f   : > { %v7805_v44 = vadd.f32 %v3408_v17, %v3400_v4  ;;  %v2834_v53 = vsub.f32 %v2823_v30, %v7323_v22  ;;  %v3063_v33 = vrot.slane %v7751_v15, %v5564_v42  ;;  %5027 = vrsqrt.f32 %v7787_v47 }
 0x260   : > { %v2666_v60 = vrot.slane %v2650_v25, 4  ;;  %v2874_v11 = vsub.f32 %v2863_v35, %v7331_v32  ;;  %v3034_v24 = vsub.f32 %v3023_v34, %v7323_v22  ;;  %v3103_v43 = vrot.slane %v7772_v18, %v5234_v9 }
 0x261   : > { %v2690_v61 = vmul.f32 %v2634_v16, %v2634_v16  ;;  %v2890_v20 = vmul.f32 %v2834_v53, %v2834_v53  ;;  %v3074_v19 = vsub.f32 %v3063_v33, %v7323_v22  ;;  %5029 = vrsqrt.f32 %v7792_v21  ;;  %v8408_v16 = vld [vmem:[#allocation5_spill] sm:$0xff] }
 0x262   : > { %v2682_v55 = vadd.f32 %v2666_v60, %v2642_v52  ;;  %v2882_v12 = vmul.f32 %v2794_v48, %v2794_v48  ;;  %v3114_v59 = vsub.f32 %v3103_v43, %v7331_v32  ;;  %v3263_v36 = vrot.slane %v7751_v15, %v5228_v7 }
 0x263   : > { %v2906_v3 = vrot.slane %v2890_v20, 4  ;;  %v3130_v45 = vmul.f32 %v3074_v19, %v3074_v19  ;;  %v3303_v26 = vrot.slane %v7751_v15, %v5558_v40  ;;  %v2930_v57 = vmul.f32 %v2874_v11, %v2874_v11 }
 0x264   : > { %v7825_v50 = vadd.f32 %v2690_v61, %v2682_v55  ;;  %v3274_v49 = vsub.f32 %v3263_v36, %v7323_v22  ;;  %v3343_v62 = vrot.slane %v7772_v18, %v5228_v7  ;;  %v2539_v38 = vrot.slane %v7741_v31, %v5231_v8 }
 0x265   : > { %v2922_v27 = vadd.f32 %v2906_v3, %v2882_v12  ;;  %v3122_v46 = vmul.f32 %v3034_v24, %v3034_v24  ;;  %v3146_v5 = vrot.slane %v3130_v45, 4  ;;  %v3314_v14 = vsub.f32 %v3303_v26, %v7323_v22 }
 0x266   : > { %v3170_v51 = vmul.f32 %v3114_v59, %v3114_v59  ;;  %v3354_v39 = vsub.f32 %v3343_v62, %v7331_v32  ;;  %v2553_v56 = vsub.f32 %v2539_v38, %v7325_v23  ;;  %v2579_v15 = vrot.slane %v7741_v31, %v5561_v41 }
 0x267   : > { %v7839_v0 = vadd.f32 %v2930_v57, %v2922_v27  ;;  %v3162_v58 = vadd.f32 %v3146_v5, %v3122_v46  ;;  %v3370_v18 = vmul.f32 %v3314_v14, %v3314_v14  ;;  %v2619_v1 = vrot.slane %v7757_v54, %v5231_v8 }
 0x268   : > { %5031 = vrsqrt.f32 %v7797_v28  ;;  %v2593_v10 = vsub.f32 %v2579_v15, %v7325_v23  ;;  %v2779_v22 = vrot.slane %v7741_v31, %v5225_v6  ;;  %v3362_v4 = vmul.f32 %v3274_v49, %v3274_v49 }
 0x269   : > { %v7847_v32 = vadd.f32 %v3170_v51, %v3162_v58  ;;  %v3386_v17 = vrot.slane %v3370_v18, 4  ;;  %v2633_v25 = vsub.f32 %v2619_v1, %v8408_v16  ;;  %v7850_v29 = vpop.eup %5027  ;;  %v2819_v35 = vrot.slane %v7741_v31, %v5504_v37 }
 0x26a   : > { %v2649_v30 = vmul.f32 %v2593_v10, %v2593_v10  ;;  %v2793_v52 = vsub.f32 %v2779_v22, %v7325_v23  ;;  %v2859_v34 = vrot.slane %v7757_v54, %v5225_v6  ;;  %5033 = vrsqrt.f32 %v7805_v44 }
 0x26b   : > { %v3402_v60 = vadd.f32 %v3386_v17, %v3362_v4  ;;  %v3410_v48 = vmul.f32 %v3354_v39, %v3354_v39  ;;  %v3019_v53 = vrot.slane %v7741_v31, %v5234_v9  ;;  %v7860_v33 = vpop.eup %5029  ;;  %v2641_v11 = vmul.f32 %v2553_v56, %v2553_v56  ;;  %v8409_v4 = vld [vmem:[#allocation4_spill] sm:$0xff] }
 0x26c   : > { %v2665_v24 = vrot.slane %v2649_v30, 4  ;;  %v2833_v43 = vsub.f32 %v2819_v35, %v7325_v23  ;;  %v2873_v55 = vsub.f32 %v2859_v34, %v8408_v16  ;;  %v3059_v19 = vrot.slane %v7741_v31, %v5564_v42 }
 0x26d   : > { %v7864_v61 = vadd.f32 %v3410_v48, %v3402_v60  ;;  %v3033_v20 = vsub.f32 %v3019_v53, %v7325_v23  ;;  %v3099_v12 = vrot.slane %v7757_v54, %v5234_v9  ;;  %v2689_v36 = vmul.f32 %v2633_v25, %v2633_v25  ;;  %v8410_v48 = vld [vmem:[#allocation6_spill] sm:$0xff] }
 0x26e   : > { %v2681_v59 = vadd.f32 %v2665_v24, %v2641_v11  ;;  %v2889_v3 = vmul.f32 %v2833_v43, %v2833_v43  ;;  %v3259_v45 = vrot.slane %v7741_v31, %v5228_v7  ;;  %v2881_v26 = vmul.f32 %v2793_v52, %v2793_v52 }
 0x26f   : > { %v2929_v57 = vmul.f32 %v2873_v55, %v2873_v55  ;;  %v3073_v49 = vsub.f32 %v3059_v19, %v7325_v23  ;;  %v3113_v62 = vsub.f32 %v3099_v12, %v8408_v16  ;;  %v3299_v5 = vrot.slane %v7741_v31, %v5558_v40 }
 0x270   : > { %v7875_v38 = vadd.f32 %v2689_v36, %v2681_v59  ;;  %v2905_v27 = vrot.slane %v2889_v3, 4  ;;  %v3273_v46 = vsub.f32 %v3259_v45, %v7325_v23  ;;  %v3121_v14 = vmul.f32 %v3033_v20, %v3033_v20 }
 0x271   : > { %v3129_v51 = vmul.f32 %v3073_v49, %v3073_v49  ;;  %v3339_v39 = vrot.slane %v7757_v54, %v5228_v7  ;;  %v2547_v56 = vrot.slane %v7762_v13, %v5231_v8  ;;  %v3169_v18 = vmul.f32 %v3113_v62, %v3113_v62 }
 0x272   : > { %v7884_v15 = vpop.eup %5031  ;;  %v2921_v58 = vadd.f32 %v2905_v27, %v2881_v26  ;;  %v3313_v1 = vsub.f32 %v3299_v5, %v7325_v23  ;;  %v2587_v10 = vrot.slane %v7762_v13, %v5561_v41  ;;  %v2627_v54 = vrot.slane %v7776_v2, %v5231_v8 }
 0x273   : > { %v3145_v22 = vrot.slane %v3129_v51, 4  ;;  %v3353_v31 = vsub.f32 %v3339_v39, %v8408_v16  ;;  %v2555_v17 = vsub.f32 %v2547_v56, %v8409_v4  ;;  %v2787_v35 = vrot.slane %v7762_v13, %v5225_v6 }
 0x274   : > { %v7893_v25 = vadd.f32 %v2929_v57, %v2921_v58  ;;  %v3369_v30 = vmul.f32 %v3313_v1, %v3313_v1  ;;  %v2595_v52 = vsub.f32 %v2587_v10, %v8409_v4  ;;  %v7898_v23 = vpop.eup %5033  ;;  %v3361_v41 = vmul.f32 %v3273_v46, %v3273_v46 }
 0x275   : > { %v3161_v34 = vadd.f32 %v3145_v22, %v3121_v14  ;;  %v3409_v60 = vmul.f32 %v3353_v31, %v3353_v31  ;;  %v2635_v16 = vsub.f32 %v2627_v54, %v8410_v48  ;;  %v2795_v24 = vsub.f32 %v2787_v35, %v8409_v4 }
 0x276   : > { %v3385_v53 = vrot.slane %v3369_v30, 4  ;;  %v2651_v11 = vmul.f32 %v2595_v52, %v2595_v52  ;;  %v2827_v8 = vrot.slane %v7762_v13, %v5504_v37  ;;  %v2643_v55 = vmul.f32 %v2555_v17, %v2555_v17 }
 0x277   : > { %v7904_v43 = vadd.f32 %v3169_v18, %v3161_v34  ;;  %v2867_v20 = vrot.slane %v7776_v2, %v5225_v6  ;;  %v3027_v19 = vrot.slane %v7762_v13, %v5234_v9  ;;  %v2691_v36 = vmul.f32 %v2635_v16, %v2635_v16 }
 0x278   : > { %v3401_v12 = vadd.f32 %v3385_v53, %v3361_v41  ;;  %v2667_v59 = vrot.slane %v2651_v11, 4  ;;  %v2835_v3 = vsub.f32 %v2827_v8, %v8409_v4  ;;  %v3067_v37 = vrot.slane %v7762_v13, %v5564_v42 }
 0x279   : > { %v2875_v45 = vsub.f32 %v2867_v20, %v8410_v48  ;;  %v3035_v26 = vsub.f32 %v3027_v19, %v8409_v4  ;;  %v3107_v57 = vrot.slane %v7776_v2, %v5234_v9  ;;  %v3267_v27 = vrot.slane %v7762_v13, %v5228_v7 }
 0x27a   : > { %v7917_v49 = vadd.f32 %v3409_v60, %v3401_v12  ;;  %v2683_v6 = vadd.f32 %v2667_v59, %v2643_v55  ;;  %v2891_v62 = vmul.f32 %v2835_v3, %v2835_v3  ;;  %5035 = vrsqrt.f32 %v7825_v50 }
 0x27b   : > { %v2883_v46 = vmul.f32 %v2795_v24, %v2795_v24  ;;  %v3075_v5 = vsub.f32 %v3067_v37, %v8409_v4  ;;  %v3115_v14 = vsub.f32 %v3107_v57, %v8410_v48  ;;  %v3275_v39 = vsub.f32 %v3267_v27, %v8409_v4 }
 0x27c   : > { %v7924_v51 = vadd.f32 %v2691_v36, %v2683_v6  ;;  %v2907_v42 = vrot.slane %v2891_v62, 4  ;;  %v3307_v9 = vrot.slane %v7762_v13, %v5558_v40  ;;  %v3347_v58 = vrot.slane %v7776_v2, %v5228_v7 }
 0x27d   : > { %v3131_v56 = vmul.f32 %v3075_v5, %v3075_v5  ;;  %5037 = vrsqrt.f32 %v7875_v38  ;;  %v2931_v1 = vmul.f32 %v2875_v45, %v2875_v45  ;;  %v3123_v22 = vmul.f32 %v3035_v26, %v3035_v26 }
 0x27e   : > { %5039 = vrsqrt.f32 %v7839_v0  ;;  %v2923_v18 = vadd.f32 %v2907_v42, %v2883_v46  ;;  %v3315_v10 = vsub.f32 %v3307_v9, %v8409_v4  ;;  %v3355_v17 = vsub.f32 %v3347_v58, %v8410_v48 }
 0x27f   : > { %5041 = vrsqrt.f32 %v7847_v32  ;;  %v3147_v31 = vrot.slane %v3131_v56, 4  ;;  %v3171_v13 = vmul.f32 %v3115_v14, %v3115_v14  ;;  %v3363_v2 = vmul.f32 %v3275_v39, %v3275_v39 }
 0x280   : > { %v7936_v54 = vadd.f32 %v2931_v1, %v2923_v18  ;;  %v3371_v40 = vmul.f32 %v3315_v10, %v3315_v10  ;;  %5043 = vrsqrt.f32 %v7893_v25  ;;  %v3411_v35 = vmul.f32 %v3355_v17, %v3355_v17 }
 0x281   : > { %5045 = vrsqrt.f32 %v7864_v61  ;;  %v3163_v7 = vadd.f32 %v3147_v31, %v3123_v22  ;;  %vm2737_vm4 = vcmp.eq.f32.partialorder %v7875_v38, inf  ;;  %vm2739_vm5 = vcmp.eq.f32.partialorder %v7875_v38, 0.0 }
 0x282   : > { %v3387_v30 = vrot.slane %v3371_v40, 4  ;;  %5047 = vrsqrt.f32 %v7904_v43  ;;  %v2740_v41 = vand.u32 2147483648, %v7875_v38  ;;  %vm2977_vm7 = vcmp.eq.f32.partialorder %v7893_v25, inf }
 0x283   : > { %v7941_v4 = vadd.f32 %v3171_v13, %v3163_v7  ;;  %5049 = vrsqrt.f32 %v7917_v49  ;;  %vm2979_vm6 = vcmp.eq.f32.partialorder %v7893_v25, 0.0  ;;  %v2980_v48 = vand.u32 2147483648, %v7893_v25 }
 0x284   : > { %v3403_v52 = vadd.f32 %v3387_v30, %v3363_v2  ;;  %5051 = vrsqrt.f32 %v7924_v51  ;;  %v7945_v34 = vpop.eup %5035  ;;  %vm3217_vm0 = vcmp.eq.f32.partialorder %v7904_v43, inf  ;;  %v3220_v53 = vand.u32 2147483648, %v7904_v43 }
 0x285   : > { %5053 = vrsqrt.f32 %v7936_v54  ;;  %vm3457_vm3 = vcmp.eq.f32.partialorder %v7917_v49, inf  ;;  %vm3459_vm13 = vcmp.eq.f32.partialorder %v7917_v49, 0.0  ;;  %v3460_v8 = vand.u32 2147483648, %v7917_v49 }
 0x286   : > { %v7951_v60 = vadd.f32 %v3411_v35, %v3403_v52  ;;  %5055 = vrsqrt.f32 %v7941_v4  ;;  %vm2751_vm11 = vcmp.eq.f32.partialorder %v7924_v51, inf  ;;  %v2754_v20 = vand.u32 2147483648, %v7924_v51 }
 0x287   : > { %v5038_v16 = vpop.eup %5037  ;;  %vm2991_vm12 = vcmp.eq.f32.partialorder %v7936_v54, inf  ;;  %v2729_v19 = vmul.f32 %v7850_v29, %v7787_v47  ;;  %vm3219_vm1 = vcmp.eq.f32.partialorder %v7904_v43, 0.0  ;;  %vm2993_vm10 = vcmp.eq.f32.partialorder %v7936_v54, 0.0 }
 0x288   : > { %v7960_v11 = vpop.eup %5039  ;;  %v2736_v24 = vmul.f32 %v5038_v16, %v7875_v38  ;;  %5057 = vrsqrt.f32 %v7951_v60  ;;  %v2994_v36 = vand.u32 2147483648, %v7936_v54  ;;  %vm2730_vm9 = vcmp.eq.f32.partialorder %v7787_v47, inf }
 0x289   : > { %v7966_v55 = vpop.eup %5041  ;;  %v2969_v3 = vmul.f32 %v7860_v33, %v7792_v21  ;;  %v3234_v26 = vand.u32 2147483648, %v7941_v4  ;;  %v2731_v37 = vsel %vm2730_vm9, %v7787_v47, %v2729_v19  ;;  %v2733_v57 = vand.u32 2147483648, %v7787_v47 }
 0x28a   : > { %v5044_v12 = vpop.eup %5043  ;;  %v2738_v59 = vsel %vm2737_vm4, %v7875_v38, %v2736_v24  ;;  %vm3231_vm14 = vcmp.eq.f32.partialorder %v7941_v4, inf  ;;  %vm3471_vm4 = vcmp.eq.f32.partialorder %v7951_v60, inf  ;;  %v3474_v33 = vand.u32 2147483648, %v7951_v60 }
 0x28b   : > { %v7982_v45 = vpop.eup %5045  ;;  %v2976_v29 = vmul.f32 %v5044_v12, %v7893_v25  ;;  %v2741_v62 = vsel %vm2739_vm5, %v2740_v41, %v2738_v59  ;;  %vm2732_vm15 = vcmp.eq.f32.partialorder %v7787_v47, 0.0  ;;  %vm2970_vm2 = vcmp.eq.f32.partialorder %v7792_v21, inf }
 0x28c   : > { %v5048_v6 = vpop.eup %5047  ;;  %vm3473_vm9 = vcmp.eq.f32.partialorder %v7951_v60, 0.0  ;;  %v2734_v38 = vsel %vm2732_vm15, %v2733_v57, %v2731_v37  ;;  %vm2972_vm5 = vcmp.eq.f32.partialorder %v7792_v21, 0.0  ;;  %v2971_v39 = vsel %vm2970_vm2, %v7792_v21, %v2969_v3 }
 0x28d   : > { %v5050_v27 = vpop.eup %5049  ;;  %v2978_v46 = vsel %vm2977_vm7, %v7893_v25, %v2976_v29  ;;  %v3216_v5 = vmul.f32 %v5048_v6, %v7904_v43  ;;  %v3209_v9 = vmul.f32 %v7884_v15, %v7797_v28  ;;  %vm3233_vm15 = vcmp.eq.f32.partialorder %v7941_v4, 0.0 }
 0x28e   : > { %v5052_v14 = vpop.eup %5051  ;;  %v2981_v42 = vsel %vm2979_vm6, %v2980_v48, %v2978_v46  ;;  %v3456_v47 = vmul.f32 %v5050_v27, %v7917_v49  ;;  %v2973_v1 = vand.u32 2147483648, %v7792_v21  ;;  %vm3210_vm7 = vcmp.eq.f32.partialorder %v7797_v28, inf }
 0x28f   : > { %v5054_v56 = vpop.eup %5053  ;;  %v3489_v58 = vrot.slane %v2981_v42, 4  ;;  %v2750_v18 = vmul.f32 %v5052_v14, %v7924_v51  ;;  %v3218_v25 = vsel %vm3217_vm0, %v7904_v43, %v3216_v5  ;;  %v3449_v22 = vmul.f32 %v7898_v23, %v7805_v44 }
 0x290   : > { %v3458_v10 = vsel %vm3457_vm3, %v7917_v49, %v3456_v47  ;;  %v2990_v15 = vmul.f32 %v5054_v56, %v7936_v54  ;;  %v5056_v31 = vpop.eup %5055  ;;  %v2974_v13 = vsel %vm2972_vm5, %v2973_v1, %v2971_v39  ;;  %v3211_v52 = vsel %vm3210_vm7, %v7797_v28, %v3209_v9 }
 0x291   : > { %v3461_v17 = vsel %vm3459_vm13, %v3460_v8, %v3458_v10  ;;  %v3530_v40 = vsel %vm3524_vm8, %v2741_v62, %v3489_v58  ;;  %v2752_v7 = vsel %vm2751_vm11, %v7924_v51, %v2750_v18  ;;  %v3230_v49 = vmul.f32 %v5056_v31, %v7941_v4 }
 0x292   : > { %v5058_v2 = vpop.eup %5057  ;;  %v3513_v30 = vrot.slane %v3461_v17, 4  ;;  %3845 = vst [vmem:[%s7089_s18 + $0x128] sm:$0xff] %v3530_v40  ;;  %v2992_v23 = vsel %vm2991_vm12, %v7936_v54, %v2990_v15  ;;  %v3221_v35 = vsel %vm3219_vm1, %v3220_v53, %v3218_v25  ;;  %vm3450_vm6 = vcmp.eq.f32.partialorder %v7805_v44, inf }
 0x293   : > { %v2995_v21 = vsel %vm2993_vm10, %v2994_v36, %v2992_v23  ;;  %v3470_v41 = vmul.f32 %v5058_v2, %v7951_v60  ;;  %vm8411_vm0 = vcmp.eq.f32.partialorder %v7924_v51, 0.0  ;;  %v3451_v8 = vsel %vm3450_vm6, %v7805_v44, %v3449_v22 }
 0x294   : > { %v3538_v48 = vsel %vm3524_vm8, %v3221_v35, %v3513_v30  ;;  %v2755_v16 = vsel %vm8411_vm0, %v2754_v20, %v2752_v7  ;;  %v3491_v24 = vrot.slane %v2995_v21, 4  ;;  %v3232_v43 = vsel %vm3231_vm14, %v7941_v4, %v3230_v49 }
 0x295   : > { %v3564_v19 = vpack.c.bf16 %v3538_v48, %v3530_v40  ;;  %3853 = vst [vmem:[%s7089_s18 + $0x168] sm:$0xff] %v3538_v48  ;;  %v3472_v54 = vsel %vm3471_vm4, %v7951_v60, %v3470_v41  ;;  %v3453_v53 = vand.u32 2147483648, %v7805_v44  ;;  %vm3452_vm3 = vcmp.eq.f32.partialorder %v7805_v44, 0.0 }
 0x296   : > { %v3475_v12 = vsel %vm3473_vm9, %v3474_v33, %v3472_v54  ;;  %v3532_v51 = vsel %vm3524_vm8, %v2755_v16, %v3491_v24  ;;  %v3488_v20 = vrot.slane %v2974_v13, 4  ;;  %vm3212_vm13 = vcmp.eq.f32.partialorder %v7797_v28, 0.0 }
 0x297   : > { %3678 = vmatprep.subr.bf16.mxu0 %v3564_v19  ;;  %v3515_v59 = vrot.slane %v3475_v12, 4  ;;  %3847 = vst [vmem:[%s7089_s18 + $0x138] sm:$0xff] %v3532_v51  ;;  %v3213_v36 = vand.u32 2147483648, %v7797_v28  ;;  %v3454_v3 = vsel %vm3452_vm3, %v3453_v53, %v3451_v8  ;;  %v3235_v60 = vsel %vm3233_vm15, %v3234_v26, %v3232_v43 }
 0x298   : > { %v3512_v29 = vrot.slane %v3454_v3, 4  ;;  %v3529_v37 = vsel %vm3524_vm8, %v2734_v38, %v3488_v20  ;;  %v2743_v44 = vmul.f32 %v7945_v34, %v7825_v50  ;;  %vm2744_vm11 = vcmp.eq.f32.partialorder %v7825_v50, inf }
 0x299   : > { %v3540_v57 = vsel %vm3524_vm8, %v3235_v60, %v3515_v59  ;;  %v3214_v6 = vsel %vm3212_vm13, %v3213_v36, %v3211_v52  ;;  %3844 = vst [vmem:[%s7089_s18 + $0x120] sm:$0xff] %v3529_v37  ;;  %v2983_v28 = vmul.f32 %v7960_v11, %v7839_v0  ;;  %vm2984_vm12 = vcmp.eq.f32.partialorder %v7839_v0, inf }
 0x29a   : > { %v3566_v62 = vpack.c.bf16 %v3540_v57, %v3532_v51  ;;  %3855 = vst [vmem:[%s7089_s18 + $0x178] sm:$0xff] %v3540_v57  ;;  %v3537_v4 = vsel %vm3524_vm8, %v3214_v6, %v3512_v29  ;;  %v2987_v26 = vand.u32 2147483648, %v7839_v0  ;;  %vm2986_vm1 = vcmp.eq.f32.partialorder %v7839_v0, 0.0 }
 0x29b   : > { %v3563_v33 = vpack.c.bf16 %v3537_v4, %v3529_v37  ;;  %3852 = vst [vmem:[%s7089_s18 + $0x160] sm:$0xff] %v3537_v4  ;;  %v2985_v34 = vsel %vm2984_vm12, %v7839_v0, %v2983_v28  ;;  %v3223_v27 = vmul.f32 %v7966_v55, %v7847_v32  ;;  %v2745_v11 = vsel %vm2744_vm11, %v7825_v50, %v2743_v44 }
 0x29c   : > { %3721 = vmatprep.subr.bf16.mxu1 %v3566_v62  ;;  %vm2746_vm10 = vcmp.eq.f32.partialorder %v7825_v50, 0.0  ;;  %v2988_v46 = vsel %vm2986_vm1, %v2987_v26, %v2985_v34  ;;  %v3463_v5 = vmul.f32 %v7982_v45, %v7864_v61  ;;  %v2747_v38 = vand.u32 2147483648, %v7825_v50 }
 0x29d   : > { %3679 = vmatpush1.bf16.msra.mxu0 %v3563_v33  ;;  %vm3224_vm2 = vcmp.eq.f32.partialorder %v7847_v32, inf  ;;  %vm3464_vm14 = vcmp.eq.f32.partialorder %v7864_v61, inf  ;;  %v3467_v0 = vand.u32 2147483648, %v7864_v61  ;;  %vm3466_vm4 = vcmp.eq.f32.partialorder %v7864_v61, 0.0 }
 0x29e   : > { %v3225_v55 = vsel %vm3224_vm2, %v7847_v32, %v3223_v27  ;;  %v3465_v14 = vsel %vm3464_vm14, %v7864_v61, %v3463_v5  ;;  %v3490_v42 = vrot.slane %v2988_v46, 4  ;;  %v2748_v47 = vsel %vm2746_vm10, %v2747_v38, %v2745_v11  ;;  %v8104_v61 = vpop.permute.xlu0 %3571 }
 0x29f   : > { %v3227_v45 = vand.u32 2147483648, %v7847_v32  ;;  %v3468_v39 = vsel %vm3466_vm4, %v3467_v0, %v3465_v14  ;;  %vm3226_vm9 = vcmp.eq.f32.partialorder %v7847_v32, 0.0  ;;  %vm8412_vm5 = vcmask 392192  }
 0x2a0   : > { %v3514_v50 = vrot.slane %v3468_v39, 4  ;;  %v3531_v9 = vsel %vm3524_vm8, %v2748_v47, %v3490_v42  ;;  %4918 = vmatmul.mubr.msk.bf16.vlgmr.msra.gmra.mrb[36].mxu0 %vm8412_vm5, %v7708_v63  ;;  %vm8413_vm15 = vmmov %vm8412_vm5 }
 0x2a1   : > { %v3228_v56 = vsel %vm3226_vm9, %v3227_v45, %v3225_v55  ;;  %3846 = vst [vmem:[%s7089_s18 + $0x130] sm:$0xff] %v3531_v9 }
 0x2a2   : > { %v3539_v58 = vsel %vm3524_vm8, %v3228_v56, %v3514_v50 }
 0x2a3   : > { %v3565_v18 = vpack.c.bf16 %v3539_v58, %v3531_v9  ;;  %3854 = vst [vmem:[%s7089_s18 + $0x170] sm:$0xff] %v3539_v58 }
 0x2a5   : > { %3722 = vmatpush1.bf16.msra.mxu1 %v3565_v18 }
 0x2a6   : > { %v8106_v32 = vpop.permute.xlu0 %3576 }
 0x2a8   : > { %4919 = vmatmul.mubr.msk.bf16.vlgmr.msra.gmra.mrb[36].mxu1 %vm8413_vm15, %v7708_v63 }
 0x312   : > { %v3622_v1 = vpop.f32.mrb[32].mxu0 }
 0x313   : > { %v3623_v25 = vadd.f32 %v3622_v1, %v8104_v61  ;;  %v3624_v10 = vpop.f32.mrb[33].mxu0 }
 0x314   : > { %v3625_v15 = vadd.f32 %v3624_v10, %v8104_v61  ;;  %v3626_v22 = vpop.f32.mrb[34].mxu0  ;;  %v3900_v10 = vld [vmem:[%s7089_s18 + $0x10] sm:$0xff] (%p5195_p6) }
 0x315   : > { %vm3760_vm8 = vcmp.gt.f32.partialorder %v3623_v25, 0.0  ;;  %v3776_v31 = vmul.f32 0.2, %v3623_v25  ;;  %v3627_v17 = vadd.f32 %v3626_v22, %v8106_v32  ;;  %v3628_v40 = vpop.f32.mrb[35].mxu0  ;;  %v3904_v22 = vld [vmem:[%s7089_s18 + $0x20] sm:$0xff] (%p5195_p6)  ;;  %3901 = vst [vmem:[%s8156_s15 + $0x10] sm:$0xff] (%p5195_p6), %v3900_v10 }
 0x316   : > { %vm3761_vm7 = vcmp.gt.f32.partialorder %v3625_v15, 0.0  ;;  %v3777_v63 = vmul.f32 0.2, %v3625_v15  ;;  %v3629_v7 = vadd.f32 %v3628_v40, %v8106_v32  ;;  %v3910_v40 = vld [vmem:[%s7089_s18 + $0x38] sm:$0xff] (%p5195_p6)  ;;  %3905 = vst [vmem:[%s8156_s15 + $0x20] sm:$0xff] (%p5195_p6), %v3904_v22 }
 0x317   : > { %v3792_v13 = vsel %vm3760_vm8, %v3623_v25, %v3776_v31  ;;  %vm3768_vm6 = vcmp.gt.f32.partialorder %v3627_v17, 0.0  ;;  %v3784_v2 = vmul.f32 0.2, %v3627_v17  ;;  %v3898_v25 = vld [vmem:[%s7089_s18 + $0x8] sm:$0xff] (%p5195_p6)  ;;  %3911 = vst [vmem:[%s8156_s15 + $0x38] sm:$0xff] (%p5195_p6), %v3910_v40 }
 0x318   : > { %3856 = vst [vmem:[%s7089_s18 + $0x180] sm:$0xff] %v3792_v13  ;;  %v3793_v30 = vsel %vm3761_vm7, %v3625_v15, %v3777_v63  ;;  %vm3769_vm0 = vcmp.gt.f32.partialorder %v3629_v7, 0.0  ;;  %v3785_v23 = vmul.f32 0.2, %v3629_v7  ;;  %v3902_v15 = vld [vmem:[%s7089_s18 + $0x18] sm:$0xff] (%p5195_p6)  ;;  %v3906_v31 = vld [vmem:[%s7089_s18 + $0x28] sm:$0xff] (%p5195_p6) }
 0x319   : > { %3857 = vst [vmem:[%s7089_s18 + $0x188] sm:$0xff] %v3793_v30  ;;  %v3800_v49 = vsel %vm3768_vm6, %v3627_v17, %v3784_v2  ;;  %v3908_v17 = vld [vmem:[%s7089_s18 + $0x30] sm:$0xff] (%p5195_p6)  ;;  %v3912_v63 = vld [vmem:[%s7089_s18 + $0x40] sm:$0xff] (%p5195_p6)  ;;  %v3918_v2 = vld [vmem:[%s7089_s18 + $0x58] sm:$0xff] (%p5195_p6) }
 0x31a   : > { %v3665_v52 = vpop.f32.mrb[32].mxu1  ;;  %3864 = vst [vmem:[%s7089_s18 + $0x1c0] sm:$0xff] %v3800_v49  ;;  %v3801_v35 = vsel %vm3769_vm0, %v3629_v7, %v3785_v23  ;;  %v3914_v7 = vld [vmem:[%s7089_s18 + $0x48] sm:$0xff] (%p5195_p6)  ;;  %v3916_v13 = vld [vmem:[%s7089_s18 + $0x50] sm:$0xff] (%p5195_p6)  ;;  %3899 = vst [vmem:[%s8156_s15 + $0x8] sm:$0xff] (%p5195_p6), %v3898_v25 }
 0x31b   : > { %v3666_v21 = vadd.f32 %v3665_v52, %v8104_v61  ;;  %v3667_v41 = vpop.f32.mrb[33].mxu1  ;;  %3865 = vst [vmem:[%s7089_s18 + $0x1c8] sm:$0xff] %v3801_v35  ;;  %3903 = vst [vmem:[%s8156_s15 + $0x18] sm:$0xff] (%p5195_p6), %v3902_v15  ;;  %v3920_v30 = vld [vmem:[%s7089_s18 + $0x60] sm:$0xff] (%p5195_p6)  ;;  %v3922_v23 = vld [vmem:[%s7089_s18 + $0x68] sm:$0xff] (%p5195_p6) }
 0x31c   : > { %v3668_v48 = vadd.f32 %v3667_v41, %v8104_v61  ;;  %v3669_v16 = vpop.f32.mrb[34].mxu1  ;;  %3907 = vst [vmem:[%s8156_s15 + $0x28] sm:$0xff] (%p5195_p6), %v3906_v31  ;;  %3909 = vst [vmem:[%s8156_s15 + $0x30] sm:$0xff] (%p5195_p6), %v3908_v17  ;;  %v3924_v49 = vld [vmem:[%s7089_s18 + $0x70] sm:$0xff] (%p5195_p6)  ;;  %v3926_v52 = vld [vmem:[%s7089_s18 + $0x78] sm:$0xff] (%p5195_p6) }
 0x31d   : > { %vm3762_vm3 = vcmp.gt.f32.partialorder %v3666_v21, 0.0  ;;  %v3778_v24 = vmul.f32 0.2, %v3666_v21  ;;  %v3670_v8 = vadd.f32 %v3669_v16, %v8106_v32  ;;  %v3671_v19 = vpop.f32.mrb[35].mxu1  ;;  %3913 = vst [vmem:[%s8156_s15 + $0x80] sm:$0xff] (%p5195_p6), %v3912_v63  ;;  %3915 = vst [vmem:[%s8156_s15 + $0x88] sm:$0xff] (%p5195_p6), %v3914_v7 }
 0x31e   : > { %vm3763_vm13 = vcmp.gt.f32.partialorder %v3668_v48, 0.0  ;;  %v3779_v43 = vmul.f32 0.2, %v3668_v48  ;;  %v3672_v54 = vadd.f32 %v3671_v19, %v8106_v32  ;;  %3917 = vst [vmem:[%s8156_s15 + $0x90] sm:$0xff] (%p5195_p6), %v3916_v13  ;;  %3919 = vst [vmem:[%s8156_s15 + $0x98] sm:$0xff] (%p5195_p6), %v3918_v2  ;;  %v3928_v35 = vld [vmem:[%s7089_s18 + $0x80] sm:$0xff] (%p5195_p6) }
 0x31f   : > { %v3794_v53 = vsel %vm3762_vm3, %v3666_v21, %v3778_v24  ;;  %vm3770_vm11 = vcmp.gt.f32.partialorder %v3670_v8, 0.0  ;;  %v3786_v12 = vmul.f32 0.2, %v3670_v8  ;;  %3921 = vst [vmem:[%s8156_s15 + $0xa0] sm:$0xff] (%p5195_p6), %v3920_v30  ;;  %3923 = vst [vmem:[%s8156_s15 + $0xa8] sm:$0xff] (%p5195_p6), %v3922_v23  ;;  %v3930_v21 = vld [vmem:[%s7089_s18 + $0x88] sm:$0xff] (%p5195_p6) }
 0x320   : > { %3858 = vst [vmem:[%s7089_s18 + $0x190] sm:$0xff] %v3794_v53  ;;  %v3795_v51 = vsel %vm3763_vm13, %v3668_v48, %v3779_v43  ;;  %vm3771_vm12 = vcmp.gt.f32.partialorder %v3672_v54, 0.0  ;;  %v3787_v20 = vmul.f32 0.2, %v3672_v54  ;;  %3925 = vst [vmem:[%s8156_s15 + $0xb0] sm:$0xff] (%p5195_p6), %v3924_v49  ;;  %v3932_v41 = vld [vmem:[%s7089_s18 + $0x90] sm:$0xff] (%p5195_p6) }
 0x321   : > { %3859 = vst [vmem:[%s7089_s18 + $0x198] sm:$0xff] %v3795_v51  ;;  %v3802_v59 = vsel %vm3770_vm11, %v3670_v8, %v3786_v12  ;;  %3927 = vst [vmem:[%s8156_s15 + $0xb8] sm:$0xff] (%p5195_p6), %v3926_v52  ;;  %v3934_v48 = vld [vmem:[%s7089_s18 + $0x98] sm:$0xff] (%p5195_p6)  ;;  %v3936_v16 = vld [vmem:[%s7089_s18 + $0xa0] sm:$0xff] (%p5195_p6) }
 0x322   : > { %3866 = vst [vmem:[%s7089_s18 + $0x1d0] sm:$0xff] %v3802_v59  ;;  %v3803_v36 = vsel %vm3771_vm12, %v3672_v54, %v3787_v20  ;;  %3929 = vst [vmem:[%s8156_s15 + $0x100] sm:$0xff] (%p5195_p6), %v3928_v35  ;;  %v3938_v24 = vld [vmem:[%s7089_s18 + $0xa8] sm:$0xff] (%p5195_p6)  ;;  %v3940_v8 = vld [vmem:[%s7089_s18 + $0xb0] sm:$0xff] (%p5195_p6) }
 0x323   : > { %3867 = vst [vmem:[%s7089_s18 + $0x1d8] sm:$0xff] %v3803_v36  ;;  %3931 = vst [vmem:[%s8156_s15 + $0x108] sm:$0xff] (%p5195_p6), %v3930_v21  ;;  %v3942_v19 = vld [vmem:[%s7089_s18 + $0xb8] sm:$0xff] (%p5195_p6)  ;;  %v3944_v43 = vld [vmem:[%s7089_s18 + $0xc0] sm:$0xff] (%p5195_p6) }
 0x324   : > { %3933 = vst [vmem:[%s8156_s15 + $0x110] sm:$0xff] (%p5195_p6), %v3932_v41  ;;  %3935 = vst [vmem:[%s8156_s15 + $0x118] sm:$0xff] (%p5195_p6), %v3934_v48  ;;  %v3946_v54 = vld [vmem:[%s7089_s18 + $0xc8] sm:$0xff] (%p5195_p6)  ;;  %v3948_v53 = vld [vmem:[%s7089_s18 + $0xd0] sm:$0xff] (%p5195_p6) }
 0x325   : > { %3937 = vst [vmem:[%s8156_s15 + $0x120] sm:$0xff] (%p5195_p6), %v3936_v16  ;;  %3939 = vst [vmem:[%s8156_s15 + $0x128] sm:$0xff] (%p5195_p6), %v3938_v24  ;;  %v3950_v12 = vld [vmem:[%s7089_s18 + $0xd8] sm:$0xff] (%p5195_p6)  ;;  %v3952_v51 = vld [vmem:[%s7089_s18 + $0xe0] sm:$0xff] (%p5195_p6) }
 0x326   : > { %3941 = vst [vmem:[%s8156_s15 + $0x130] sm:$0xff] (%p5195_p6), %v3940_v8  ;;  %3943 = vst [vmem:[%s8156_s15 + $0x138] sm:$0xff] (%p5195_p6), %v3942_v19  ;;  %v3954_v20 = vld [vmem:[%s7089_s18 + $0xe8] sm:$0xff] (%p5195_p6)  ;;  %v3956_v59 = vld [vmem:[%s7089_s18 + $0xf0] sm:$0xff] (%p5195_p6) }
 0x327   : > { %3945 = vst [vmem:[%s8156_s15 + $0x180] sm:$0xff] (%p5195_p6), %v3944_v43  ;;  %3947 = vst [vmem:[%s8156_s15 + $0x188] sm:$0xff] (%p5195_p6), %v3946_v54  ;;  %v3958_v36 = vld [vmem:[%s7089_s18 + $0xf8] sm:$0xff] (%p5195_p6) }
 0x328   : > { %3949 = vst [vmem:[%s8156_s15 + $0x190] sm:$0xff] (%p5195_p6), %v3948_v53  ;;  %3951 = vst [vmem:[%s8156_s15 + $0x198] sm:$0xff] (%p5195_p6), %v3950_v12 }
 0x329   : > { %3953 = vst [vmem:[%s8156_s15 + $0x1a0] sm:$0xff] (%p5195_p6), %v3952_v51  ;;  %3955 = vst [vmem:[%s8156_s15 + $0x1a8] sm:$0xff] (%p5195_p6), %v3954_v20 }
 0x32a   : > { %3957 = vst [vmem:[%s8156_s15 + $0x1b0] sm:$0xff] (%p5195_p6), %v3956_v59  ;;  %3959 = vst [vmem:[%s8156_s15 + $0x1b8] sm:$0xff] (%p5195_p6), %v3958_v36 }
 0x373   : > { %v3708_v3 = vpop.f32.mrb[36].mxu0 }
 0x374   : > { %v3709_v60 = vadd.f32 %v3708_v3, %v8104_v61  ;;  %v3710_v29 = vpop.f32.mrb[37].mxu0  ;;  %v3960_v3 = vld [vmem:[%s7089_s18 + $0x100] sm:$0xff] (%p5195_p6) }
 0x375   : > { %v3711_v37 = vadd.f32 %v3710_v29, %v8104_v61  ;;  %v3712_v44 = vpop.f32.mrb[38].mxu0  ;;  %3961 = vst [vmem:[%s8156_s15 + $0x200] sm:$0xff] (%p5195_p6), %v3960_v3  ;;  %v3964_v29 = vld [vmem:[%s7089_s18 + $0x110] sm:$0xff] (%p5195_p6) }
 0x376   : > { %vm3764_vm1 = vcmp.gt.f32.partialorder %v3709_v60, 0.0  ;;  %v3780_v57 = vmul.f32 0.2, %v3709_v60  ;;  %v3713_v6 = vadd.f32 %v3712_v44, %v8106_v32  ;;  %v3714_v28 = vpop.f32.mrb[39].mxu0  ;;  %3965 = vst [vmem:[%s8156_s15 + $0x210] sm:$0xff] (%p5195_p6), %v3964_v29  ;;  %v3968_v44 = vld [vmem:[%s7089_s18 + $0x120] sm:$0xff] (%p5195_p6) }
 0x377   : > { %vm3765_vm10 = vcmp.gt.f32.partialorder %v3711_v37, 0.0  ;;  %v3781_v62 = vmul.f32 0.2, %v3711_v37  ;;  %v3715_v4 = vadd.f32 %v3714_v28, %v8106_v32  ;;  %3969 = vst [vmem:[%s8156_s15 + $0x220] sm:$0xff] (%p5195_p6), %v3968_v44  ;;  %v3974_v28 = vld [vmem:[%s7089_s18 + $0x138] sm:$0xff] (%p5195_p6) }
 0x378   : > { %v3796_v26 = vsel %vm3764_vm1, %v3709_v60, %v3780_v57  ;;  %vm3772_vm2 = vcmp.gt.f32.partialorder %v3713_v6, 0.0  ;;  %v3788_v33 = vmul.f32 0.2, %v3713_v6  ;;  %v3962_v60 = vld [vmem:[%s7089_s18 + $0x108] sm:$0xff] (%p5195_p6)  ;;  %3975 = vst [vmem:[%s8156_s15 + $0x238] sm:$0xff] (%p5195_p6), %v3974_v28 }
 0x379   : > { %3860 = vst [vmem:[%s7089_s18 + $0x1a0] sm:$0xff] %v3796_v26  ;;  %v3797_v34 = vsel %vm3765_vm10, %v3711_v37, %v3781_v62  ;;  %vm3773_vm14 = vcmp.gt.f32.partialorder %v3715_v4, 0.0  ;;  %v3789_v27 = vmul.f32 0.2, %v3715_v4  ;;  %v3966_v37 = vld [vmem:[%s7089_s18 + $0x118] sm:$0xff] (%p5195_p6)  ;;  %3963 = vst [vmem:[%s8156_s15 + $0x208] sm:$0xff] (%p5195_p6), %v3962_v60 }
 0x37a   : > { %3861 = vst [vmem:[%s7089_s18 + $0x1a8] sm:$0xff] %v3797_v34  ;;  %v3804_v11 = vsel %vm3772_vm2, %v3713_v6, %v3788_v33  ;;  %3967 = vst [vmem:[%s8156_s15 + $0x218] sm:$0xff] (%p5195_p6), %v3966_v37  ;;  %v3970_v57 = vld [vmem:[%s7089_s18 + $0x128] sm:$0xff] (%p5195_p6)  ;;  %v3972_v6 = vld [vmem:[%s7089_s18 + $0x130] sm:$0xff] (%p5195_p6) }
 0x37b   : > { %v3751_v46 = vpop.f32.mrb[36].mxu1  ;;  %3868 = vst [vmem:[%s7089_s18 + $0x1e0] sm:$0xff] %v3804_v11  ;;  %v3805_v5 = vsel %vm3773_vm14, %v3715_v4, %v3789_v27  ;;  %3971 = vst [vmem:[%s8156_s15 + $0x228] sm:$0xff] (%p5195_p6), %v3970_v57  ;;  %v3976_v62 = vld [vmem:[%s7089_s18 + $0x140] sm:$0xff] (%p5195_p6)  ;;  %v3978_v4 = vld [vmem:[%s7089_s18 + $0x148] sm:$0xff] (%p5195_p6) }
 0x37c   : > { %v3752_v38 = vadd.f32 %v3751_v46, %v8104_v61  ;;  %v3753_v0 = vpop.f32.mrb[37].mxu1  ;;  %3869 = vst [vmem:[%s7089_s18 + $0x1e8] sm:$0xff] %v3805_v5  ;;  %3973 = vst [vmem:[%s8156_s15 + $0x230] sm:$0xff] (%p5195_p6), %v3972_v6  ;;  %v3980_v26 = vld [vmem:[%s7089_s18 + $0x150] sm:$0xff] (%p5195_p6)  ;;  %v3982_v33 = vld [vmem:[%s7089_s18 + $0x158] sm:$0xff] (%p5195_p6) }
 0x37d   : > { %v3754_v55 = vadd.f32 %v3753_v0, %v8104_v61  ;;  %v3755_v14 = vpop.f32.mrb[38].mxu1  ;;  %3977 = vst [vmem:[%s8156_s15 + $0x280] sm:$0xff] (%p5195_p6), %v3976_v62  ;;  %3979 = vst [vmem:[%s8156_s15 + $0x288] sm:$0xff] (%p5195_p6), %v3978_v4  ;;  %v3984_v34 = vld [vmem:[%s7089_s18 + $0x160] sm:$0xff] (%p5195_p6)  ;;  %v3986_v27 = vld [vmem:[%s7089_s18 + $0x168] sm:$0xff] (%p5195_p6) }
 0x37e   : > { %vm3766_vm4 = vcmp.gt.f32.partialorder %v3752_v38, 0.0  ;;  %v3782_v42 = vmul.f32 0.2, %v3752_v38  ;;  %v3756_v47 = vadd.f32 %v3755_v14, %v8106_v32  ;;  %v3757_v45 = vpop.f32.mrb[39].mxu1  ;;  %3878 = sbr.rel (!%p5195_p6) target bundleno = 909 (0x38d), region = 85  ;;  %3981 = vst [vmem:[%s8156_s15 + $0x290] sm:$0xff] (%p5195_p6), %v3980_v26 }
 0x37f   : > { %vm3767_vm9 = vcmp.gt.f32.partialorder %v3754_v55, 0.0  ;;  %v3783_v39 = vmul.f32 0.2, %v3754_v55  ;;  %v3758_v50 = vadd.f32 %v3757_v45, %v8106_v32  ;;  %v3896_v32 = vld [vmem:[%s7089_s18] sm:$0xff] (%p5195_p6)  ;;  %3983 = vst [vmem:[%s8156_s15 + $0x298] sm:$0xff] (%p5195_p6), %v3982_v33  ;;  %3985 = vst [vmem:[%s8156_s15 + $0x2a0] sm:$0xff] (%p5195_p6), %v3984_v34 }
 0x380   : > { %v3798_v9 = vsel %vm3766_vm4, %v3752_v38, %v3782_v42  ;;  %vm3774_vm5 = vcmp.gt.f32.partialorder %v3756_v47, 0.0  ;;  %v3790_v56 = vmul.f32 0.2, %v3756_v47  ;;  %3897 = vst [vmem:[%s8156_s15] sm:$0xff] (%p5195_p6), %v3896_v32  ;;  %v3988_v11 = vld [vmem:[%s7089_s18 + $0x170] sm:$0xff] (%p5195_p6)  ;;  %v3990_v46 = vld [vmem:[%s7089_s18 + $0x178] sm:$0xff] (%p5195_p6)  ;;  %3987 = vst [vmem:[%s8156_s15 + $0x2a8] sm:$0xff] (%p5195_p6), %v3986_v27 }
 0x381   : > { %3862 = vst [vmem:[%s7089_s18 + $0x1b0] sm:$0xff] %v3798_v9  ;;  %v3799_v58 = vsel %vm3767_vm9, %v3754_v55, %v3783_v39  ;;  %vm3775_vm15 = vcmp.gt.f32.partialorder %v3758_v50, 0.0  ;;  %v3791_v18 = vmul.f32 0.2, %v3758_v50  ;;  %3989 = vst [vmem:[%s8156_s15 + $0x2b0] sm:$0xff] (%p5195_p6), %v3988_v11  ;;  %v3992_v5 = vld [vmem:[%s7089_s18 + $0x180] sm:$0xff] (%p5195_p6) }
 0x382   : > { %3863 = vst [vmem:[%s7089_s18 + $0x1b8] sm:$0xff] %v3799_v58  ;;  %v3806_v61 = vsel %vm3774_vm5, %v3756_v47, %v3790_v56  ;;  %3991 = vst [vmem:[%s8156_s15 + $0x2b8] sm:$0xff] (%p5195_p6), %v3990_v46  ;;  %v3994_v38 = vld [vmem:[%s7089_s18 + $0x188] sm:$0xff] (%p5195_p6)  ;;  %v3996_v0 = vld [vmem:[%s7089_s18 + $0x190] sm:$0xff] (%p5195_p6) }
 0x383   : > { %3870 = vst [vmem:[%s7089_s18 + $0x1f0] sm:$0xff] %v3806_v61  ;;  %v3807_v1 = vsel %vm3775_vm15, %v3758_v50, %v3791_v18  ;;  %3993 = vst [vmem:[%s8156_s15 + $0x300] sm:$0xff] (%p5195_p6), %v3992_v5  ;;  %v3998_v55 = vld [vmem:[%s7089_s18 + $0x198] sm:$0xff] (%p5195_p6)  ;;  %v4000_v14 = vld [vmem:[%s7089_s18 + $0x1a0] sm:$0xff] (%p5195_p6) }
 0x384   : > { %3871 = vst [vmem:[%s7089_s18 + $0x1f8] sm:$0xff] %v3807_v1  ;;  %3995 = vst [vmem:[%s8156_s15 + $0x308] sm:$0xff] (%p5195_p6), %v3994_v38  ;;  %v4002_v42 = vld [vmem:[%s7089_s18 + $0x1a8] sm:$0xff] (%p5195_p6)  ;;  %v4008_v39 = vld [vmem:[%s7089_s18 + $0x1c0] sm:$0xff] (%p5195_p6) }
 0x385   : > { %3997 = vst [vmem:[%s8156_s15 + $0x310] sm:$0xff] %v3996_v0  ;;  %3999 = vst [vmem:[%s8156_s15 + $0x318] sm:$0xff] %v3998_v55  ;;  %v4010_v50 = vld [vmem:[%s7089_s18 + $0x1c8] sm:$0xff]  ;;  %v4012_v9 = vld [vmem:[%s7089_s18 + $0x1d0] sm:$0xff] }
 0x386   : > { %4001 = vst [vmem:[%s8156_s15 + $0x320] sm:$0xff] %v4000_v14  ;;  %4003 = vst [vmem:[%s8156_s15 + $0x328] sm:$0xff] %v4002_v42  ;;  %v4014_v56 = vld [vmem:[%s7089_s18 + $0x1d8] sm:$0xff]  ;;  %v4016_v58 = vld [vmem:[%s7089_s18 + $0x1e0] sm:$0xff] }
 0x387   : > { %4009 = vst [vmem:[%s8156_s15 + $0x380] sm:$0xff] %v4008_v39  ;;  %4011 = vst [vmem:[%s8156_s15 + $0x388] sm:$0xff] %v4010_v50  ;;  %v4018_v18 = vld [vmem:[%s7089_s18 + $0x1e8] sm:$0xff] }
 0x388   : > { %v4004_v47 = vld [vmem:[%s7089_s18 + $0x1b0] sm:$0xff]  ;;  %4013 = vst [vmem:[%s8156_s15 + $0x390] sm:$0xff] %v4012_v9  ;;  %4015 = vst [vmem:[%s8156_s15 + $0x398] sm:$0xff] %v4014_v56 }
 0x389   : > { %v4006_v45 = vld [vmem:[%s7089_s18 + $0x1b8] sm:$0xff]  ;;  %4005 = vst [vmem:[%s8156_s15 + $0x330] sm:$0xff] %v4004_v47  ;;  %4017 = vst [vmem:[%s8156_s15 + $0x3a0] sm:$0xff] %v4016_v58 }
 0x38a   : > { %4007 = vst [vmem:[%s8156_s15 + $0x338] sm:$0xff] %v4006_v45  ;;  %v4020_v61 = vld [vmem:[%s7089_s18 + $0x1f0] sm:$0xff]  ;;  %4019 = vst [vmem:[%s8156_s15 + $0x3a8] sm:$0xff] %v4018_v18 }
 0x38b   : > { %4021 = vst [vmem:[%s8156_s15 + $0x3b0] sm:$0xff] %v4020_v61  ;;  %v4022_v1 = vld [vmem:[%s7089_s18 + $0x1f8] sm:$0xff] }
 0x38c   : > { %4023 = vst [vmem:[%s8156_s15 + $0x3b8] sm:$0xff] %v4022_v1 }
 0x38d PF: > { %s15_s24 = sadd.s32 1, %s5113_s24   ;;  %s8414_s18 = smov %s5093_s19 }
 0x38e   : > { %p12_p0 = scmp.ge.s32.totalorder %s15_s24, 6   ;;  %s8415_s19 = smov %s5203_s8 }
 0x38f   : > { %s8416_s20 = smov %s5105_s22  ;;  %s8417_s21 = smov %s5109_s23 }
 0x390   : > { %s8418_s22 = smov %s8421_s25  ;;  %s8419_s23 = smov %s8425_s26 }
 0x391   :  { %14 = sbr.rel (!%p12_p0) target bundleno = 4 (0x4), region = 145 }

</bundles_post_ra>
